<compile_context>
chip_gen: v7x
topology: tpu7x:2x2x1
jax: 0.10.0
libtpu: 0.0.40
codegen_flags: <defaults>
</compile_context>

<pallas_src>
import functools

import jax
import jax.numpy as jnp
from jax.experimental import pallas as pl
from jax.experimental.pallas import tpu as pltpu

EPS = 1e-5

# Number of independent partial accumulators for the streaming reductions
# (matches v7x's 2 TensorCores; on 1-TC chips it is just a cheap outer loop).
_STAT_PARTS = 2
# Each partial accumulator is an (8, C) sublane-aligned block; the wrapper
# reduces over both the partials and the 8 per-sublane rows.
_PART_ROWS = 8

_PICK_BUDGET = 12 << 20       # per-step working-set budget used to pick tiles


def _round_up(x, m):
    return ((x + m - 1) // m) * m


def _vmem_limit(est_bytes):
    # Explicit scoped-VMEM request: at least 32 MiB (largest default, so small
    # problems never regress) and at most 48 MiB (never all of v7x's 64 MiB
    # physical VMEM -- leave headroom for compiler scratch + double buffers).
    return int(min(max(2 * est_bytes, 32 << 20), 48 << 20))


def _pick_row_tile(m_rows, io_row_bytes, fixed_bytes=0, target=2048,
                   budget=_PICK_BUDGET):
    """Largest row tile (multiple of 8, <= target) whose double-buffered in/out
    blocks + in-kernel temporaries + resident weights fit the budget."""
    tm = min(target, _round_up(m_rows, 8))
    while tm > 8 and (3 * tm * io_row_bytes + fixed_bytes) > budget:
        tm = _round_up(tm // 2, 8)
    return max(8, tm)


# ----------------------------------------------------------------------------
# Kernel 1: per-channel sum / sum-sq reduction over x viewed as (M, C).
# Grid = (_STAT_PARTS, row_blocks_per_part); each partial owns an (8, C) block.
# ----------------------------------------------------------------------------
def _stats_kernel(x_ref, sum_ref, sq_ref, *, n_rows, blocks_per_part):
    c = pl.program_id(0)              # partial / core index
    i = pl.program_id(1)              # row-block index within this partial

    @pl.when(i == 0)
    def _():
        sum_ref[...] = jnp.zeros_like(sum_ref)
        sq_ref[...] = jnp.zeros_like(sq_ref)

    tm = x_ref.shape[0]
    row0 = (c * blocks_per_part + i) * tm
    rows = jax.lax.broadcasted_iota(jnp.int32, (tm, 1), 0) + row0
    xb = jnp.where(rows < n_rows, x_ref[...], 0.0)   # mask tail / phantom rows
    # Per-sublane partial sums; the wrapper reduces the 8 rows at the end.
    sum_ref[...] += jnp.sum(xb.reshape(tm // _PART_ROWS, _PART_ROWS, -1), axis=0)
    sq_ref[...] += jnp.sum((xb * xb).reshape(tm // _PART_ROWS, _PART_ROWS, -1),
                           axis=0)


def channel_stats(x2d):
    """x2d: (M, C) f32 -> (sum, sum_sq) partials, each (_STAT_PARTS*8, C).
    Reduce with .sum(axis=0, keepdims=True) in the caller."""
    M, C = x2d.shape
    tm = _pick_row_tile(M, C * 4)
    nb = pl.cdiv(M, tm)
    bpp = pl.cdiv(nb, _STAT_PARTS)
    # Phantom steps (when nb does not split evenly) clamp to the last real block
    # and are fully masked out of the accumulation by the row test above.
    blk = lambda c, i: (jnp.minimum(c * bpp + i, nb - 1), 0)
    est = 3 * tm * C * 4
    return pl.pallas_call(
        functools.partial(_stats_kernel, n_rows=M, blocks_per_part=bpp),
        out_shape=(
            jax.ShapeDtypeStruct((_STAT_PARTS * _PART_ROWS, C), jnp.float32),
            jax.ShapeDtypeStruct((_STAT_PARTS * _PART_ROWS, C), jnp.float32),
        ),
        grid=(_STAT_PARTS, bpp),
        in_specs=[pl.BlockSpec((tm, C), blk)],
        out_specs=(
            pl.BlockSpec((_PART_ROWS, C), lambda c, i: (c, 0)),
            pl.BlockSpec((_PART_ROWS, C), lambda c, i: (c, 0)),
        ),
        compiler_params=pltpu.CompilerParams(
            dimension_semantics=("parallel", "arbitrary"),
            vmem_limit_bytes=_vmem_limit(est),
        ),
    )(x2d)


# ----------------------------------------------------------------------------
# Kernel 2: fused BN1(affine) + ReLU + 1x1 conv  +  bn2 statistics of the result.
#   y = relu(x*s1 + b1) @ w1 ; also emits per-channel sum(y) and sum(y*y).
# ----------------------------------------------------------------------------
def _bn_relu_conv1x1_stats_kernel(x_ref, s_ref, b_ref, w_ref,
                                  y_ref, sum_ref, sq_ref,
                                  *, n_rows, blocks_per_part):
    c = pl.program_id(0)
    i = pl.program_id(1)

    @pl.when(i == 0)
    def _():
        sum_ref[...] = jnp.zeros_like(sum_ref)
        sq_ref[...] = jnp.zeros_like(sq_ref)

    tm = x_ref.shape[0]
    act = jnp.maximum(x_ref[...] * s_ref[...] + b_ref[...], 0.0)   # f32 BN math
    y = jnp.dot(act.astype(w_ref.dtype), w_ref[...],               # bf16 MXU path
                preferred_element_type=jnp.float32)
    y_ref[...] = y

    row0 = (c * blocks_per_part + i) * tm
    rows = jax.lax.broadcasted_iota(jnp.int32, (tm, 1), 0) + row0
    ym = jnp.where(rows < n_rows, y, 0.0)            # mask tail / phantom rows
    sum_ref[...] += jnp.sum(ym.reshape(tm // _PART_ROWS, _PART_ROWS, -1), axis=0)
    sq_ref[...] += jnp.sum((ym * ym).reshape(tm // _PART_ROWS, _PART_ROWS, -1),
                           axis=0)


def bn_relu_conv1x1_stats(x2d, scale, shift, w):
    """x2d: (M, Cin); w: (Cin, Cout) -> (y (M, Cout), sum/sq partials)."""
    M, Cin = x2d.shape
    Cout = w.shape[1]
    io_row_bytes = (Cin + Cout) * 4
    fixed = 2 * Cin * Cout * w.dtype.itemsize
    tm = _pick_row_tile(M, io_row_bytes, fixed_bytes=fixed)
    nb = pl.cdiv(M, tm)
    bpp = pl.cdiv(nb, _STAT_PARTS)
    blk = lambda c, i: (jnp.minimum(c * bpp + i, nb - 1), 0)
    est = 3 * tm * io_row_bytes + fixed
    return pl.pallas_call(
        functools.partial(_bn_relu_conv1x1_stats_kernel,
                          n_rows=M, blocks_per_part=bpp),
        out_shape=(
            jax.ShapeDtypeStruct((M, Cout), jnp.float32),
            jax.ShapeDtypeStruct((_STAT_PARTS * _PART_ROWS, Cout), jnp.float32),
            jax.ShapeDtypeStruct((_STAT_PARTS * _PART_ROWS, Cout), jnp.float32),
        ),
        grid=(_STAT_PARTS, bpp),
        in_specs=[
            pl.BlockSpec((tm, Cin), blk),
            pl.BlockSpec((1, Cin), lambda c, i: (0, 0)),
            pl.BlockSpec((1, Cin), lambda c, i: (0, 0)),
            pl.BlockSpec((Cin, Cout), lambda c, i: (0, 0)),
        ],
        out_specs=(
            pl.BlockSpec((tm, Cout), blk),
            pl.BlockSpec((_PART_ROWS, Cout), lambda c, i: (c, 0)),
            pl.BlockSpec((_PART_ROWS, Cout), lambda c, i: (c, 0)),
        ),
        compiler_params=pltpu.CompilerParams(
            dimension_semantics=("parallel", "arbitrary"),
            vmem_limit_bytes=_vmem_limit(est),
        ),
    )(x2d, scale, shift, w)


# ----------------------------------------------------------------------------
# Kernel 3: fused BN2(affine) + ReLU + 3x3 conv (pad=1) + channel concat with x.
# Row-tiled with a one-row halo on each side; the halo rows are extra (W, C)
# input views of the same activation, clamped at image borders and zeroed there
# so the taps see the conv's zero padding.  The conv itself is 9 accumulated
# (rows, C) x (C, G) MXU dots; the shifted taps are XLU sublane rolls of the
# halo-extended activation plus left/right column masks.
# ----------------------------------------------------------------------------
def _bn_relu_conv3x3_concat_kernel(y_ref, top_ref, bot_ref, x_ref, s_ref, b_ref,
                                   w_ref, o_ref, *, th, w_img, tiles_per_img):
    i = pl.program_id(0)
    rows = th * w_img
    halo_len = (th + 2) * w_img

    s = s_ref[...]                                  # (1, Cmid)
    b = b_ref[...]

    def bn_relu(v):
        return jnp.maximum(v * s + b, 0.0)

    top_ok = ((i % tiles_per_img) != 0).astype(jnp.float32)
    bot_ok = (((i + 1) % tiles_per_img) != 0).astype(jnp.float32)
    act = jnp.concatenate(
        [bn_relu(top_ref[...]) * top_ok,            # zeroed at the top image edge
         bn_relu(y_ref[...]),
         bn_relu(bot_ref[...]) * bot_ok],           # zeroed at the bottom edge
        axis=0)                                     # ((th+2)*W, Cmid)

    # Output-pixel column index, for masking the dw=+-1 taps at the W borders
    # (the H borders are handled by the zeroed halo rows above).
    col = jax.lax.broadcasted_iota(jnp.int32, (rows, 1), 0) % w_img
    mask_l = (col >= 1).astype(jnp.float32)
    mask_r = (col <= w_img - 2).astype(jnp.float32)

    acc = jnp.zeros((rows, w_ref.shape[-1]), jnp.float32)
    for dh in (-1, 0, 1):
        for dw in (-1, 0, 1):
            off = (dh + 1) * w_img + dw             # flat offset into the halo buf
            tap = act if off == 0 else pltpu.roll(act, shift=(-off) % halo_len,
                                                  axis=0)
            tap = tap[:rows]
            if dw == -1:
                tap = tap * mask_l
            elif dw == 1:
                tap = tap * mask_r
            t = (dh + 1) * 3 + (dw + 1)
            acc = acc + jnp.dot(tap.astype(w_ref.dtype), w_ref[t],
                                preferred_element_type=jnp.float32)

    # Fused channel concat [conv_out, x]: single full-block store.
    # TODO(synk): for deep layers (Cin >> G) move the x passthrough off this
    # kernel (write it from K2 or via a raw HBM->HBM copy) and pad G / G+Cin to
    # multiples of 128 for unmasked lane-dense stores.
    o_ref[...] = jnp.concatenate([acc, x_ref[...]], axis=-1)


def bn_relu_conv3x3_concat(y2d, x2d, scale, shift, w9, *, img_h, img_w,
                           row_tile=None):
    """y2d: (M, Cmid), x2d: (M, Cin) with M = N*img_h*img_w (row-major NHWC);
    w9: (9, Cmid, G).  Returns (M, G+Cin) = [conv3x3(relu(bn2(y))), x]."""
    M, Cmid = y2d.shape
    Cin = x2d.shape[1]
    G = w9.shape[-1]
    Cout = G + Cin
    assert M % (img_h * img_w) == 0
    R = M // img_w                         # total image rows across the batch
    # Halo-row blocks are (img_w, Cmid); keep them sublane-aligned.
    assert img_w % 8 == 0, "TODO(synk): pad W to a multiple of 8 for general widths"

    def step_bytes(th):
        rows = th * img_w
        return (2 * rows * (Cmid + Cin + Cout) * 4          # double-buffered blocks
                + 4 * img_w * Cmid * 4                      # halo-row blocks
                + (th + 2) * img_w * Cmid * 4               # halo-extended activation
                + rows * (Cmid + G) * 4                     # live tap + accumulator
                + 9 * Cmid * G * w9.dtype.itemsize)         # weights

    if row_tile is not None:
        assert img_h % row_tile == 0, "k3_row_tile must divide H"
        th = row_tile
    else:
        th = 1
        for cand in range(img_h, 0, -1):                    # largest divisor fitting
            if img_h % cand == 0 and step_bytes(cand) <= _PICK_BUDGET:
                th = cand
                break

    rows = th * img_w
    tiles_per_img = img_h // th

    # TODO(synk): if an xprof trace still shows exposed DMA between steps, add
    # pipeline_mode=pl.Buffered(3) on the y/x streams (plenty of VMEM headroom
    # on v5e/v6e).
    return pl.pallas_call(
        functools.partial(_bn_relu_conv3x3_concat_kernel,
                          th=th, w_img=img_w, tiles_per_img=tiles_per_img),
        out_shape=jax.ShapeDtypeStruct((M, Cout), jnp.float32),
        grid=(R // th,),
        in_specs=[
            pl.BlockSpec((rows, Cmid), lambda i: (i, 0)),                  # main rows
            pl.BlockSpec((img_w, Cmid),
                         lambda i: (jnp.maximum(i * th - 1, 0), 0)),       # top halo
            pl.BlockSpec((img_w, Cmid),
                         lambda i: (jnp.minimum(i * th + th, R - 1), 0)),  # bottom halo
            pl.BlockSpec((rows, Cin), lambda i: (i, 0)),                   # x passthrough
            pl.BlockSpec((1, Cmid), lambda i: (0, 0)),
            pl.BlockSpec((1, Cmid), lambda i: (0, 0)),
            pl.BlockSpec((9, Cmid, G), lambda i: (0, 0, 0)),
        ],
        out_specs=pl.BlockSpec((rows, Cout), lambda i: (i, 0)),
        compiler_params=pltpu.CompilerParams(
            dimension_semantics=("parallel",),
            vmem_limit_bytes=_vmem_limit(step_bytes(th)),
        ),
    )(y2d, y2d, y2d, x2d, scale, shift, w9)


# ----------------------------------------------------------------------------
# DenseBottleneck forward
# ----------------------------------------------------------------------------
def make_params(key, in_planes, growth_rate):
    cmid = 4 * growth_rate
    k1, k2 = jax.random.split(key)
    return {
        # BatchNorm affine params (PyTorch init: weight=1, bias=0)
        "bn1_gamma": jnp.ones((1, in_planes), jnp.float32),
        "bn1_beta": jnp.zeros((1, in_planes), jnp.float32),
        "bn2_gamma": jnp.ones((1, cmid), jnp.float32),
        "bn2_beta": jnp.zeros((1, cmid), jnp.float32),
        # conv1: PyTorch (cmid, in_planes, 1, 1) -> matmul layout (in_planes, cmid)
        "w1": 0.1 * jax.random.normal(k1, (in_planes, cmid), jnp.float32),
        # conv2: PyTorch (growth, cmid, 3, 3) -> HWIO layout (3, 3, cmid, growth)
        "w2": 0.1 * jax.random.normal(k2, (3, 3, cmid, growth_rate), jnp.float32),
    }


def dense_bottleneck_nhwc(x_nhwc, params, *, use_bf16=True, k3_row_tile=None):
    """Layout-native entry point (NHWC in, NHWC out): no relayout passes."""
    x = x_nhwc.astype(jnp.float32)
    N, H, W, Cin = x.shape
    M = N * H * W
    x2d = x.reshape(M, Cin)                         # free HBM reshape

    cdt = jnp.bfloat16 if use_bf16 else jnp.float32
    Cmid = params["w2"].shape[2]
    G = params["w2"].shape[3]
    w1 = params["w1"].astype(cdt)
    w2 = params["w2"].astype(cdt).reshape(9, Cmid, G)   # tap-major (kh*3+kw, C, G)

    # bn1 batch statistics (biased variance), single streaming pass over x.
    # TODO(synk): single-pass E[x^2]-E[x]^2 can cancel for very large M; switch
    # to mean-shifted accumulation if batch*spatial grows a lot.
    p_sum, p_sq = channel_stats(x2d)
    s1_sum = jnp.sum(p_sum, axis=0, keepdims=True)
    s1_sq = jnp.sum(p_sq, axis=0, keepdims=True)
    mean1 = s1_sum / M
    var1 = jnp.maximum(s1_sq / M - mean1 * mean1, 0.0)
    s1 = params["bn1_gamma"] * jax.lax.rsqrt(var1 + EPS)
    b1 = params["bn1_beta"] - mean1 * s1

    # bn1 + relu + conv1 (1x1), fused with bn2's sum / sum-sq reduction.
    y2d, q_sum, q_sq = bn_relu_conv1x1_stats(x2d, s1, b1, w1)
    s2_sum = jnp.sum(q_sum, axis=0, keepdims=True)
    s2_sq = jnp.sum(q_sq, axis=0, keepdims=True)
    mean2 = s2_sum / M
    var2 = jnp.maximum(s2_sq / M - mean2 * mean2, 0.0)
    s2 = params["bn2_gamma"] * jax.lax.rsqrt(var2 + EPS)
    b2 = params["bn2_beta"] - mean2 * s2

    # bn2 + relu + conv2 (3x3 pad=1) + channel concat [conv2(out), x].
    out2d = bn_relu_conv3x3_concat(y2d, x2d, s2, b2, w2,
                                   img_h=H, img_w=W, row_tile=k3_row_tile)
    return out2d.reshape(N, H, W, G + Cin)


@functools.partial(jax.jit, static_argnames=("use_bf16", "k3_row_tile"))
def dense_bottleneck(x_nchw, params, *, use_bf16=True, k3_row_tile=None):
    # NCHW (PyTorch layout) compatibility wrapper.  Inside a NHWC DenseNet call
    # dense_bottleneck_nhwc directly to avoid the two full-HBM relayout passes.
    x = jnp.transpose(x_nchw, (0, 2, 3, 1))
    out = dense_bottleneck_nhwc(x, params, use_bf16=use_bf16,
                                k3_row_tile=k3_row_tile)
    return jnp.transpose(out, (0, 3, 1, 2))


# ----------------------------------------------------------------------------
# Pure-XLA reference (mirrors PyTorch semantics) for a correctness check.
# ----------------------------------------------------------------------------
def _reference(x_nchw, params):
    x = x_nchw.astype(jnp.float32)

    def bn(v, gamma, beta):
        mean = jnp.mean(v, axis=(0, 2, 3), keepdims=True)
        var = jnp.var(v, axis=(0, 2, 3), keepdims=True)     # biased, like BN norm
        g = gamma.reshape(1, -1, 1, 1)
        b = beta.reshape(1, -1, 1, 1)
        return (v - mean) * jax.lax.rsqrt(var + EPS) * g + b

    h = jax.nn.relu(bn(x, params["bn1_gamma"], params["bn1_beta"]))
    h = jnp.einsum("nchw,cd->ndhw", h, params["w1"])
    h = jax.nn.relu(bn(h, params["bn2_gamma"], params["bn2_beta"]))
    out = jax.lax.conv_general_dilated(
        h, params["w2"], window_strides=(1, 1), padding=((1, 1), (1, 1)),
        dimension_numbers=("NCHW", "HWIO", "NCHW"))
    return jnp.concatenate([out, x], axis=1)


if __name__ == "__main__":
    N, in_planes, H, W = 2, 4, 16, 16
    growth_rate = 8

    key = jax.random.PRNGKey(0)
    kx, kp = jax.random.split(key)
    x = jax.random.normal(kx, (N, in_planes, H, W), jnp.float32)
    params = make_params(kp, in_planes, growth_rate)

    ref = _reference(x, params)

    # f32 path with a forced 8-row tile: exercises the K3 halo-row path; strict.
    out_f32 = dense_bottleneck(x, params, use_bf16=False, k3_row_tile=8)
    jax.block_until_ready(out_f32)
    assert out_f32.shape == (N, growth_rate + in_planes, H, W), out_f32.shape
    err_f32 = float(jnp.max(jnp.abs(out_f32 - ref)))
    assert err_f32 < 1e-3, f"f32 path: max abs err vs reference: {err_f32}"

    # bf16-MXU path (perf default), auto row tile; tolerance covers bf16 operand
    # rounding (accumulation stays f32).
    out_bf16 = dense_bottleneck(x, params, use_bf16=True)
    jax.block_until_ready(out_bf16)
    assert out_bf16.shape == (N, growth_rate + in_planes, H, W), out_bf16.shape
    err_bf16 = float(jnp.max(jnp.abs(out_bf16 - ref)))
    assert err_bf16 < 5e-2, f"bf16 path: max abs err vs reference: {err_bf16}"

    print("KERNEL_OK")
</pallas_src>

<mosaic_0001>
module attributes {stable_mosaic.version = 11 : i64} {
  func.func @_stats_kernel(%arg0: i32, %arg1: i32, %arg2: memref<512x4xf32, #tpu.memory_space<vmem>>, %arg3: memref<8x4xf32, #tpu.memory_space<vmem>>, %arg4: memref<8x4xf32, #tpu.memory_space<vmem>>) attributes {dimension_semantics = [#tpu.dimension_semantics<parallel>, #tpu.dimension_semantics<arbitrary>], iteration_bounds = array<i64: 2, 1>, scalar_prefetch = 0 : i64, scratch_operands = 0 : i64, tpu.core_type = #tpu.core_type<tc>, window_params = [{transform_indices = @transform_0, window_bounds = array<i64: 512, 4>}, {transform_indices = @transform_1, window_bounds = array<i64: 8, 4>}, {transform_indices = @transform_2, window_bounds = array<i64: 8, 4>}]} {
    %c0_i32 = arith.constant 0 : i32
    %0 = arith.cmpi eq, %arg1, %c0_i32 : i32
    %1 = arith.extui %0 : i1 to i32
    %c0_i32_0 = arith.constant 0 : i32
    %2 = arith.cmpi ne, %1, %c0_i32_0 : i32
    scf.if %2 {
      %cst_13 = arith.constant 0.000000e+00 : f32
      %27 = vector.broadcast %cst_13 : f32 to vector<8x4xf32>
      %c0_14 = arith.constant 0 : index
      %c0_15 = arith.constant 0 : index
      %28 = vector.load %arg3[%c0_14, %c0_15] : memref<8x4xf32, #tpu.memory_space<vmem>>, vector<8x4xf32>
      tpu.vector_store %arg3[%c0_14, %c0_15], %27 {strides = array<i32>} : memref<8x4xf32, #tpu.memory_space<vmem>>, vector<8x4xf32>,
      %cst_16 = arith.constant 0.000000e+00 : f32
      %29 = vector.broadcast %cst_16 : f32 to vector<8x4xf32>
      %c0_17 = arith.constant 0 : index
      %c0_18 = arith.constant 0 : index
      %30 = vector.load %arg4[%c0_17, %c0_18] : memref<8x4xf32, #tpu.memory_space<vmem>>, vector<8x4xf32>
      tpu.vector_store %arg4[%c0_17, %c0_18], %29 {strides = array<i32>} : memref<8x4xf32, #tpu.memory_space<vmem>>, vector<8x4xf32>,
    } else {
    }
    %c1_i32 = arith.constant 1 : i32
    %3 = arith.muli %arg0, %c1_i32 : i32
    %4 = arith.addi %3, %arg1 : i32
    %c512_i32 = arith.constant 512 : i32
    %5 = arith.muli %4, %c512_i32 : i32
    %6 = tpu.iota {dimensions = array<i32: 0>} : vector<512x1xi32>
    %7 = vector.broadcast %5 : i32 to vector<512x1xi32>
    %8 = arith.addi %6, %7 : vector<512x1xi32>
    %c512_i32_1 = arith.constant 512 : i32
    %9 = vector.broadcast %c512_i32_1 : i32 to vector<512x1xi32>
    %10 = arith.cmpi slt, %8, %9 : vector<512x1xi32>
    %c0 = arith.constant 0 : index
    %c0_2 = arith.constant 0 : index
    %11 = vector.load %arg2[%c0, %c0_2] : memref<512x4xf32, #tpu.memory_space<vmem>>, vector<512x4xf32>
    %cst = arith.constant 0.000000e+00 : f32
    %12 = vector.shape_cast %10 : vector<512x1xi1> to vector<512x1xi1>
    %13 = vector.broadcast %12 : vector<512x1xi1> to vector<512x4xi1>
    %14 = vector.broadcast %cst : f32 to vector<512x4xf32>
    %15 = arith.select %13, %11, %14 : vector<512x4xi1>, vector<512x4xf32>
    %c0_3 = arith.constant 0 : index
    %c0_4 = arith.constant 0 : index
    %16 = vector.load %arg3[%c0_3, %c0_4] : memref<8x4xf32, #tpu.memory_space<vmem>>, vector<8x4xf32>
    %17 = vector.shape_cast %15 : vector<512x4xf32> to vector<64x8x4xf32>
    %cst_5 = arith.constant dense<0.000000e+00> : vector<8x4xf32>
    %18 = vector.multi_reduction <add>, %17, %cst_5 [0] : vector<64x8x4xf32> to vector<8x4xf32>
    %19 = arith.addf %16, %18 : vector<8x4xf32>
    %c0_6 = arith.constant 0 : index
    %c0_7 = arith.constant 0 : index
    %20 = vector.load %arg3[%c0_6, %c0_7] : memref<8x4xf32, #tpu.memory_space<vmem>>, vector<8x4xf32>
    tpu.vector_store %arg3[%c0_6, %c0_7], %19 {strides = array<i32>} : memref<8x4xf32, #tpu.memory_space<vmem>>, vector<8x4xf32>,
    %c0_8 = arith.constant 0 : index
    %c0_9 = arith.constant 0 : index
    %21 = vector.load %arg4[%c0_8, %c0_9] : memref<8x4xf32, #tpu.memory_space<vmem>>, vector<8x4xf32>
    %22 = arith.mulf %15, %15 : vector<512x4xf32>
    %23 = vector.shape_cast %22 : vector<512x4xf32> to vector<64x8x4xf32>
    %cst_10 = arith.constant dense<0.000000e+00> : vector<8x4xf32>
    %24 = vector.multi_reduction <add>, %23, %cst_10 [0] : vector<64x8x4xf32> to vector<8x4xf32>
    %25 = arith.addf %21, %24 : vector<8x4xf32>
    %c0_11 = arith.constant 0 : index
    %c0_12 = arith.constant 0 : index
    %26 = vector.load %arg4[%c0_11, %c0_12] : memref<8x4xf32, #tpu.memory_space<vmem>>, vector<8x4xf32>
    tpu.vector_store %arg4[%c0_11, %c0_12], %25 {strides = array<i32>} : memref<8x4xf32, #tpu.memory_space<vmem>>, vector<8x4xf32>,
    return
  }
  func.func @transform_0(%arg0: i32, %arg1: i32) -> (i32, i32) {
    %c1_i32 = arith.constant 1 : i32
    %0 = arith.muli %arg0, %c1_i32 : i32
    %1 = arith.addi %0, %arg1 : i32
    %c0_i32 = arith.constant 0 : i32
    %2 = arith.minsi %1, %c0_i32 : i32
    %c0_i32_0 = arith.constant 0 : i32
    %c0_i32_1 = arith.constant 0 : i32
    return %2, %c0_i32_0 : i32, i32
  }
  func.func @transform_1(%arg0: i32, %arg1: i32) -> (i32, i32) {
    %c0_i32 = arith.constant 0 : i32
    %c0_i32_0 = arith.constant 0 : i32
    return %arg0, %c0_i32 : i32, i32
  }
  func.func @transform_2(%arg0: i32, %arg1: i32) -> (i32, i32) {
    %c0_i32 = arith.constant 0 : i32
    %c0_i32_0 = arith.constant 0 : i32
    return %arg0, %c0_i32 : i32, i32
  }
}

module attributes {stable_mosaic.version = 11 : i64} {
  func.func @_bn_relu_conv1x1_stats_kernel(%arg0: i32, %arg1: i32, %arg2: memref<512x4xf32, #tpu.memory_space<vmem>>, %arg3: memref<1x4xf32, #tpu.memory_space<vmem>>, %arg4: memref<1x4xf32, #tpu.memory_space<vmem>>, %arg5: memref<4x32xf32, #tpu.memory_space<vmem>>, %arg6: memref<512x32xf32, #tpu.memory_space<vmem>>, %arg7: memref<8x32xf32, #tpu.memory_space<vmem>>, %arg8: memref<8x32xf32, #tpu.memory_space<vmem>>) attributes {dimension_semantics = [#tpu.dimension_semantics<parallel>, #tpu.dimension_semantics<arbitrary>], iteration_bounds = array<i64: 2, 1>, scalar_prefetch = 0 : i64, scratch_operands = 0 : i64, tpu.core_type = #tpu.core_type<tc>, window_params = [{transform_indices = @transform_0, window_bounds = array<i64: 512, 4>}, {pipeline_mode = #tpu.pipeline_mode<synchronous>, transform_indices = @transform_1, window_bounds = array<i64: 1, 4>}, {pipeline_mode = #tpu.pipeline_mode<synchronous>, transform_indices = @transform_2, window_bounds = array<i64: 1, 4>}, {pipeline_mode = #tpu.pipeline_mode<synchronous>, transform_indices = @transform_3, window_bounds = array<i64: 4, 32>}, {transform_indices = @transform_4, window_bounds = array<i64: 512, 32>}, {transform_indices = @transform_5, window_bounds = array<i64: 8, 32>}, {transform_indices = @transform_6, window_bounds = array<i64: 8, 32>}]} {
    %c0_i32 = arith.constant 0 : i32
    %0 = arith.cmpi eq, %arg1, %c0_i32 : i32
    %1 = arith.extui %0 : i1 to i32
    %c0_i32_0 = arith.constant 0 : i32
    %2 = arith.cmpi ne, %1, %c0_i32_0 : i32
    scf.if %2 {
      %cst_23 = arith.constant 0.000000e+00 : f32
      %38 = vector.broadcast %cst_23 : f32 to vector<8x32xf32>
      %c0_24 = arith.constant 0 : index
      %c0_25 = arith.constant 0 : index
      %39 = vector.load %arg7[%c0_24, %c0_25] : memref<8x32xf32, #tpu.memory_space<vmem>>, vector<8x32xf32>
      tpu.vector_store %arg7[%c0_24, %c0_25], %38 {strides = array<i32>} : memref<8x32xf32, #tpu.memory_space<vmem>>, vector<8x32xf32>,
      %cst_26 = arith.constant 0.000000e+00 : f32
      %40 = vector.broadcast %cst_26 : f32 to vector<8x32xf32>
      %c0_27 = arith.constant 0 : index
      %c0_28 = arith.constant 0 : index
      %41 = vector.load %arg8[%c0_27, %c0_28] : memref<8x32xf32, #tpu.memory_space<vmem>>, vector<8x32xf32>
      tpu.vector_store %arg8[%c0_27, %c0_28], %40 {strides = array<i32>} : memref<8x32xf32, #tpu.memory_space<vmem>>, vector<8x32xf32>,
    } else {
    }
    %c0 = arith.constant 0 : index
    %c0_1 = arith.constant 0 : index
    %3 = vector.load %arg2[%c0, %c0_1] : memref<512x4xf32, #tpu.memory_space<vmem>>, vector<512x4xf32>
    %c0_2 = arith.constant 0 : index
    %c0_3 = arith.constant 0 : index
    %4 = vector.load %arg3[%c0_2, %c0_3] : memref<1x4xf32, #tpu.memory_space<vmem>>, vector<1x4xf32>
    %5 = vector.broadcast %4 : vector<1x4xf32> to vector<512x4xf32>
    %6 = arith.mulf %3, %5 : vector<512x4xf32>
    %c0_4 = arith.constant 0 : index
    %c0_5 = arith.constant 0 : index
    %7 = vector.load %arg4[%c0_4, %c0_5] : memref<1x4xf32, #tpu.memory_space<vmem>>, vector<1x4xf32>
    %8 = vector.broadcast %7 : vector<1x4xf32> to vector<512x4xf32>
    %9 = arith.addf %6, %8 : vector<512x4xf32>
    %cst = arith.constant 0.000000e+00 : f32
    %10 = vector.broadcast %cst : f32 to vector<512x4xf32>
    %11 = arith.maximumf %9, %10 : vector<512x4xf32>
    %c0_6 = arith.constant 0 : index
    %c0_7 = arith.constant 0 : index
    %12 = vector.load %arg5[%c0_6, %c0_7] : memref<4x32xf32, #tpu.memory_space<vmem>>, vector<4x32xf32>
    %cst_8 = arith.constant dense<0.000000e+00> : vector<512x32xf32>
    %13 = tpu.matmul %11, %12, %cst_8 {dimension_numbers = #tpu.dot_dimension_numbers<[1], [0], [0], [1], [0, 0, 1, 1], [], []>} : vector<512x4xf32>, vector<4x32xf32>, vector<512x32xf32> -> vector<512x32xf32>
    %c0_9 = arith.constant 0 : index
    %c0_10 = arith.constant 0 : index
    %14 = vector.load %arg6[%c0_9, %c0_10] : memref<512x32xf32, #tpu.memory_space<vmem>>, vector<512x32xf32>
    tpu.vector_store %arg6[%c0_9, %c0_10], %13 {strides = array<i32>} : memref<512x32xf32, #tpu.memory_space<vmem>>, vector<512x32xf32>,
    %c1_i32 = arith.constant 1 : i32
    %15 = arith.muli %arg0, %c1_i32 : i32
    %16 = arith.addi %15, %arg1 : i32
    %c512_i32 = arith.constant 512 : i32
    %17 = arith.muli %16, %c512_i32 : i32
    %18 = tpu.iota {dimensions = array<i32: 0>} : vector<512x1xi32>
    %19 = vector.broadcast %17 : i32 to vector<512x1xi32>
    %20 = arith.addi %18, %19 : vector<512x1xi32>
    %c512_i32_11 = arith.constant 512 : i32
    %21 = vector.broadcast %c512_i32_11 : i32 to vector<512x1xi32>
    %22 = arith.cmpi slt, %20, %21 : vector<512x1xi32>
    %cst_12 = arith.constant 0.000000e+00 : f32
    %23 = vector.shape_cast %22 : vector<512x1xi1> to vector<512x1xi1>
    %24 = vector.broadcast %23 : vector<512x1xi1> to vector<512x32xi1>
    %25 = vector.broadcast %cst_12 : f32 to vector<512x32xf32>
    %26 = arith.select %24, %13, %25 : vector<512x32xi1>, vector<512x32xf32>
    %c0_13 = arith.constant 0 : index
    %c0_14 = arith.constant 0 : index
    %27 = vector.load %arg7[%c0_13, %c0_14] : memref<8x32xf32, #tpu.memory_space<vmem>>, vector<8x32xf32>
    %28 = vector.shape_cast %26 : vector<512x32xf32> to vector<64x8x32xf32>
    %cst_15 = arith.constant dense<0.000000e+00> : vector<8x32xf32>
    %29 = vector.multi_reduction <add>, %28, %cst_15 [0] : vector<64x8x32xf32> to vector<8x32xf32>
    %30 = arith.addf %27, %29 : vector<8x32xf32>
    %c0_16 = arith.constant 0 : index
    %c0_17 = arith.constant 0 : index
    %31 = vector.load %arg7[%c0_16, %c0_17] : memref<8x32xf32, #tpu.memory_space<vmem>>, vector<8x32xf32>
    tpu.vector_store %arg7[%c0_16, %c0_17], %30 {strides = array<i32>} : memref<8x32xf32, #tpu.memory_space<vmem>>, vector<8x32xf32>,
    %c0_18 = arith.constant 0 : index
    %c0_19 = arith.constant 0 : index
    %32 = vector.load %arg8[%c0_18, %c0_19] : memref<8x32xf32, #tpu.memory_space<vmem>>, vector<8x32xf32>
    %33 = arith.mulf %26, %26 : vector<512x32xf32>
    %34 = vector.shape_cast %33 : vector<512x32xf32> to vector<64x8x32xf32>
    %cst_20 = arith.constant dense<0.000000e+00> : vector<8x32xf32>
    %35 = vector.multi_reduction <add>, %34, %cst_20 [0] : vector<64x8x32xf32> to vector<8x32xf32>
    %36 = arith.addf %32, %35 : vector<8x32xf32>
    %c0_21 = arith.constant 0 : index
    %c0_22 = arith.constant 0 : index
    %37 = vector.load %arg8[%c0_21, %c0_22] : memref<8x32xf32, #tpu.memory_space<vmem>>, vector<8x32xf32>
    tpu.vector_store %arg8[%c0_21, %c0_22], %36 {strides = array<i32>} : memref<8x32xf32, #tpu.memory_space<vmem>>, vector<8x32xf32>,
    return
  }
  func.func @transform_0(%arg0: i32, %arg1: i32) -> (i32, i32) {
    %c1_i32 = arith.constant 1 : i32
    %0 = arith.muli %arg0, %c1_i32 : i32
    %1 = arith.addi %0, %arg1 : i32
    %c0_i32 = arith.constant 0 : i32
    %2 = arith.minsi %1, %c0_i32 : i32
    %c0_i32_0 = arith.constant 0 : i32
    %c0_i32_1 = arith.constant 0 : i32
    return %2, %c0_i32_0 : i32, i32
  }
  func.func @transform_1(%arg0: i32, %arg1: i32) -> (i32, i32) {
    %c0_i32 = arith.constant 0 : i32
    %c0_i32_0 = arith.constant 0 : i32
    %c0_i32_1 = arith.constant 0 : i32
    return %c0_i32, %c0_i32_0 : i32, i32
  }
  func.func @transform_2(%arg0: i32, %arg1: i32) -> (i32, i32) {
    %c0_i32 = arith.constant 0 : i32
    %c0_i32_0 = arith.constant 0 : i32
    %c0_i32_1 = arith.constant 0 : i32
    return %c0_i32, %c0_i32_0 : i32, i32
  }
  func.func @transform_3(%arg0: i32, %arg1: i32) -> (i32, i32) {
    %c0_i32 = arith.constant 0 : i32
    %c0_i32_0 = arith.constant 0 : i32
    %c0_i32_1 = arith.constant 0 : i32
    return %c0_i32, %c0_i32_0 : i32, i32
  }
  func.func @transform_4(%arg0: i32, %arg1: i32) -> (i32, i32) {
    %c1_i32 = arith.constant 1 : i32
    %0 = arith.muli %arg0, %c1_i32 : i32
    %1 = arith.addi %0, %arg1 : i32
    %c0_i32 = arith.constant 0 : i32
    %2 = arith.minsi %1, %c0_i32 : i32
    %c0_i32_0 = arith.constant 0 : i32
    %c0_i32_1 = arith.constant 0 : i32
    return %2, %c0_i32_0 : i32, i32
  }
  func.func @transform_5(%arg0: i32, %arg1: i32) -> (i32, i32) {
    %c0_i32 = arith.constant 0 : i32
    %c0_i32_0 = arith.constant 0 : i32
    return %arg0, %c0_i32 : i32, i32
  }
  func.func @transform_6(%arg0: i32, %arg1: i32) -> (i32, i32) {
    %c0_i32 = arith.constant 0 : i32
    %c0_i32_0 = arith.constant 0 : i32
    return %arg0, %c0_i32 : i32, i32
  }
}

module attributes {stable_mosaic.version = 11 : i64} {
  func.func @_bn_relu_conv3x3_concat_kernel(%arg0: i32, %arg1: memref<128x32xf32, #tpu.memory_space<vmem>>, %arg2: memref<16x32xf32, #tpu.memory_space<vmem>>, %arg3: memref<16x32xf32, #tpu.memory_space<vmem>>, %arg4: memref<128x4xf32, #tpu.memory_space<vmem>>, %arg5: memref<1x32xf32, #tpu.memory_space<vmem>>, %arg6: memref<1x32xf32, #tpu.memory_space<vmem>>, %arg7: memref<9x32x8xf32, #tpu.memory_space<vmem>>, %arg8: memref<128x12xf32, #tpu.memory_space<vmem>>) attributes {dimension_semantics = [#tpu.dimension_semantics<parallel>], iteration_bounds = array<i64: 4>, scalar_prefetch = 0 : i64, scratch_operands = 0 : i64, tpu.core_type = #tpu.core_type<tc>, window_params = [{transform_indices = @transform_0, window_bounds = array<i64: 128, 32>}, {transform_indices = @transform_1, window_bounds = array<i64: 16, 32>}, {transform_indices = @transform_2, window_bounds = array<i64: 16, 32>}, {transform_indices = @transform_3, window_bounds = array<i64: 128, 4>}, {pipeline_mode = #tpu.pipeline_mode<synchronous>, transform_indices = @transform_4, window_bounds = array<i64: 1, 32>}, {pipeline_mode = #tpu.pipeline_mode<synchronous>, transform_indices = @transform_5, window_bounds = array<i64: 1, 32>}, {pipeline_mode = #tpu.pipeline_mode<synchronous>, transform_indices = @transform_6, window_bounds = array<i64: 9, 32, 8>}, {transform_indices = @transform_7, window_bounds = array<i64: 128, 12>}]} {
    %c0 = arith.constant 0 : index
    %c0_0 = arith.constant 0 : index
    %0 = vector.load %arg5[%c0, %c0_0] : memref<1x32xf32, #tpu.memory_space<vmem>>, vector<1x32xf32>
    %c0_1 = arith.constant 0 : index
    %c0_2 = arith.constant 0 : index
    %1 = vector.load %arg6[%c0_1, %c0_2] : memref<1x32xf32, #tpu.memory_space<vmem>>, vector<1x32xf32>
    %c2_i32 = arith.constant 2 : i32
    %c0_i32 = arith.constant 0 : i32
    %2 = arith.cmpi eq, %c2_i32, %c0_i32 : i32
    %c1_i32 = arith.constant 1 : i32
    %3 = arith.select %2, %c1_i32, %c2_i32 : i32
    %4 = arith.remsi %arg0, %3 : i32
    %c0_i32_3 = arith.constant 0 : i32
    %5 = arith.cmpi ne, %4, %c0_i32_3 : i32
    %c0_i32_4 = arith.constant 0 : i32
    %6 = arith.cmpi slt, %4, %c0_i32_4 : i32
    %c0_i32_5 = arith.constant 0 : i32
    %7 = arith.cmpi slt, %3, %c0_i32_5 : i32
    %8 = arith.xori %6, %7 : i1
    %9 = arith.andi %8, %5 : i1
    %10 = arith.addi %4, %3 : i32
    %11 = arith.select %9, %10, %4 : i32
    %c0_i32_6 = arith.constant 0 : i32
    %12 = arith.cmpi ne, %11, %c0_i32_6 : i32
    %13 = arith.extui %12 : i1 to i32
    %14 = arith.sitofp %13 : i32 to f32
    %c1_i32_7 = arith.constant 1 : i32
    %15 = arith.addi %arg0, %c1_i32_7 : i32
    %c2_i32_8 = arith.constant 2 : i32
    %c0_i32_9 = arith.constant 0 : i32
    %16 = arith.cmpi eq, %c2_i32_8, %c0_i32_9 : i32
    %c1_i32_10 = arith.constant 1 : i32
    %17 = arith.select %16, %c1_i32_10, %c2_i32_8 : i32
    %18 = arith.remsi %15, %17 : i32
    %c0_i32_11 = arith.constant 0 : i32
    %19 = arith.cmpi ne, %18, %c0_i32_11 : i32
    %c0_i32_12 = arith.constant 0 : i32
    %20 = arith.cmpi slt, %18, %c0_i32_12 : i32
    %c0_i32_13 = arith.constant 0 : i32
    %21 = arith.cmpi slt, %17, %c0_i32_13 : i32
    %22 = arith.xori %20, %21 : i1
    %23 = arith.andi %22, %19 : i1
    %24 = arith.addi %18, %17 : i32
    %25 = arith.select %23, %24, %18 : i32
    %c0_i32_14 = arith.constant 0 : i32
    %26 = arith.cmpi ne, %25, %c0_i32_14 : i32
    %27 = arith.extui %26 : i1 to i32
    %28 = arith.sitofp %27 : i32 to f32
    %c0_15 = arith.constant 0 : index
    %c0_16 = arith.constant 0 : index
    %29 = vector.load %arg2[%c0_15, %c0_16] : memref<16x32xf32, #tpu.memory_space<vmem>>, vector<16x32xf32>
    %30 = vector.broadcast %0 : vector<1x32xf32> to vector<16x32xf32>
    %31 = arith.mulf %29, %30 : vector<16x32xf32>
    %32 = vector.broadcast %1 : vector<1x32xf32> to vector<16x32xf32>
    %33 = arith.addf %31, %32 : vector<16x32xf32>
    %cst = arith.constant 0.000000e+00 : f32
    %34 = vector.broadcast %cst : f32 to vector<16x32xf32>
    %35 = arith.maximumf %33, %34 : vector<16x32xf32>
    %36 = vector.broadcast %14 : f32 to vector<16x32xf32>
    %37 = arith.mulf %35, %36 : vector<16x32xf32>
    %c0_17 = arith.constant 0 : index
    %c0_18 = arith.constant 0 : index
    %38 = vector.load %arg1[%c0_17, %c0_18] : memref<128x32xf32, #tpu.memory_space<vmem>>, vector<128x32xf32>
    %39 = vector.broadcast %0 : vector<1x32xf32> to vector<128x32xf32>
    %40 = arith.mulf %38, %39 : vector<128x32xf32>
    %41 = vector.broadcast %1 : vector<1x32xf32> to vector<128x32xf32>
    %42 = arith.addf %40, %41 : vector<128x32xf32>
    %cst_19 = arith.constant 0.000000e+00 : f32
    %43 = vector.broadcast %cst_19 : f32 to vector<128x32xf32>
    %44 = arith.maximumf %42, %43 : vector<128x32xf32>
    %c0_20 = arith.constant 0 : index
    %c0_21 = arith.constant 0 : index
    %45 = vector.load %arg3[%c0_20, %c0_21] : memref<16x32xf32, #tpu.memory_space<vmem>>, vector<16x32xf32>
    %46 = vector.broadcast %0 : vector<1x32xf32> to vector<16x32xf32>
    %47 = arith.mulf %45, %46 : vector<16x32xf32>
    %48 = vector.broadcast %1 : vector<1x32xf32> to vector<16x32xf32>
    %49 = arith.addf %47, %48 : vector<16x32xf32>
    %cst_22 = arith.constant 0.000000e+00 : f32
    %50 = vector.broadcast %cst_22 : f32 to vector<16x32xf32>
    %51 = arith.maximumf %49, %50 : vector<16x32xf32>
    %52 = vector.broadcast %28 : f32 to vector<16x32xf32>
    %53 = arith.mulf %51, %52 : vector<16x32xf32>
    %54 = tpu.concatenate %37, %44, %53 in 0 : vector<16x32xf32>, vector<128x32xf32>, vector<16x32xf32> -> vector<160x32xf32>
    %55 = tpu.iota {dimensions = array<i32: 0>} : vector<128x1xi32>
    %c16_i32 = arith.constant 16 : i32
    %c0_i32_23 = arith.constant 0 : i32
    %56 = arith.cmpi eq, %c16_i32, %c0_i32_23 : i32
    %c1_i32_24 = arith.constant 1 : i32
    %57 = arith.select %56, %c1_i32_24, %c16_i32 : i32
    %58 = vector.broadcast %57 : i32 to vector<128x1xi32>
    %59 = arith.remsi %55, %58 : vector<128x1xi32>
    %c0_i32_25 = arith.constant 0 : i32
    %60 = vector.broadcast %c0_i32_25 : i32 to vector<128x1xi32>
    %61 = arith.cmpi ne, %59, %60 : vector<128x1xi32>
    %c0_i32_26 = arith.constant 0 : i32
    %62 = vector.broadcast %c0_i32_26 : i32 to vector<128x1xi32>
    %63 = arith.cmpi slt, %59, %62 : vector<128x1xi32>
    %c0_i32_27 = arith.constant 0 : i32
    %64 = arith.cmpi slt, %57, %c0_i32_27 : i32
    %65 = vector.broadcast %64 : i1 to vector<128x1xi1>
    %66 = vector.broadcast %65 : vector<128x1xi1> to vector<128x1xi1>
    %67 = arith.xori %63, %66 : vector<128x1xi1>
    %68 = arith.andi %67, %61 : vector<128x1xi1>
    %69 = vector.broadcast %57 : i32 to vector<128x1xi32>
    %70 = arith.addi %59, %69 : vector<128x1xi32>
    %71 = arith.select %68, %70, %59 : vector<128x1xi1>, vector<128x1xi32>
    %c1_i32_28 = arith.constant 1 : i32
    %72 = vector.broadcast %c1_i32_28 : i32 to vector<128x1xi32>
    %73 = arith.cmpi sge, %71, %72 : vector<128x1xi32>
    %74 = arith.extui %73 : vector<128x1xi1> to vector<128x1xi32>
    %75 = arith.sitofp %74 : vector<128x1xi32> to vector<128x1xf32>
    %c14_i32 = arith.constant 14 : i32
    %76 = vector.broadcast %c14_i32 : i32 to vector<128x1xi32>
    %77 = arith.cmpi sle, %71, %76 : vector<128x1xi32>
    %78 = arith.extui %77 : vector<128x1xi1> to vector<128x1xi32>
    %79 = arith.sitofp %78 : vector<128x1xi32> to vector<128x1xf32>
    %cst_29 = arith.constant 0.000000e+00 : f32
    %80 = vector.broadcast %cst_29 : f32 to vector<128x8xf32>
    %c1_i32_30 = arith.constant 1 : i32
    %81 = tpu.dynamic_rotate %54 by %c1_i32_30 dim 0 : vector<160x32xf32>, i32 -> vector<160x32xf32>
    %82 = vector.extract_strided_slice %81 {offsets = [0, 0], sizes = [128, 32], strides = [1, 1]} : vector<160x32xf32> to vector<128x32xf32>
    %83 = vector.broadcast %75 : vector<128x1xf32> to vector<128x32xf32>
    %84 = arith.mulf %82, %83 : vector<128x32xf32>
    %c0_31 = arith.constant 0 : index
    %c0_32 = arith.constant 0 : index
    %c0_33 = arith.constant 0 : index
    %85 = vector.load %arg7[%c0_31, %c0_32, %c0_33] : memref<9x32x8xf32, #tpu.memory_space<vmem>>, vector<1x32x8xf32>
    %86 = vector.shape_cast %85 : vector<1x32x8xf32> to vector<32x8xf32>
    %cst_34 = arith.constant dense<0.000000e+00> : vector<128x8xf32>
    %87 = tpu.matmul %84, %86, %cst_34 {dimension_numbers = #tpu.dot_dimension_numbers<[1], [0], [0], [1], [0, 0, 1, 1], [], []>} : vector<128x32xf32>, vector<32x8xf32>, vector<128x8xf32> -> vector<128x8xf32>
    %88 = arith.addf %80, %87 : vector<128x8xf32>
    %89 = vector.extract_strided_slice %54 {offsets = [0, 0], sizes = [128, 32], strides = [1, 1]} : vector<160x32xf32> to vector<128x32xf32>
    %c1 = arith.constant 1 : index
    %c0_35 = arith.constant 0 : index
    %c0_36 = arith.constant 0 : index
    %90 = vector.load %arg7[%c1, %c0_35, %c0_36] : memref<9x32x8xf32, #tpu.memory_space<vmem>>, vector<1x32x8xf32>
    %91 = vector.shape_cast %90 : vector<1x32x8xf32> to vector<32x8xf32>
    %cst_37 = arith.constant dense<0.000000e+00> : vector<128x8xf32>
    %92 = tpu.matmul %89, %91, %cst_37 {dimension_numbers = #tpu.dot_dimension_numbers<[1], [0], [0], [1], [0, 0, 1, 1], [], []>} : vector<128x32xf32>, vector<32x8xf32>, vector<128x8xf32> -> vector<128x8xf32>
    %93 = arith.addf %88, %92 : vector<128x8xf32>
    %c159_i32 = arith.constant 159 : i32
    %94 = tpu.dynamic_rotate %54 by %c159_i32 dim 0 : vector<160x32xf32>, i32 -> vector<160x32xf32>
    %95 = vector.extract_strided_slice %94 {offsets = [0, 0], sizes = [128, 32], strides = [1, 1]} : vector<160x32xf32> to vector<128x32xf32>
    %96 = vector.broadcast %79 : vector<128x1xf32> to vector<128x32xf32>
    %97 = arith.mulf %95, %96 : vector<128x32xf32>
    %c2 = arith.constant 2 : index
    %c0_38 = arith.constant 0 : index
    %c0_39 = arith.constant 0 : index
    %98 = vector.load %arg7[%c2, %c0_38, %c0_39] : memref<9x32x8xf32, #tpu.memory_space<vmem>>, vector<1x32x8xf32>
    %99 = vector.shape_cast %98 : vector<1x32x8xf32> to vector<32x8xf32>
    %cst_40 = arith.constant dense<0.000000e+00> : vector<128x8xf32>
    %100 = tpu.matmul %97, %99, %cst_40 {dimension_numbers = #tpu.dot_dimension_numbers<[1], [0], [0], [1], [0, 0, 1, 1], [], []>} : vector<128x32xf32>, vector<32x8xf32>, vector<128x8xf32> -> vector<128x8xf32>
    %101 = arith.addf %93, %100 : vector<128x8xf32>
    %c145_i32 = arith.constant 145 : i32
    %102 = tpu.dynamic_rotate %54 by %c145_i32 dim 0 : vector<160x32xf32>, i32 -> vector<160x32xf32>
    %103 = vector.extract_strided_slice %102 {offsets = [0, 0], sizes = [128, 32], strides = [1, 1]} : vector<160x32xf32> to vector<128x32xf32>
    %104 = vector.broadcast %75 : vector<128x1xf32> to vector<128x32xf32>
    %105 = arith.mulf %103, %104 : vector<128x32xf32>
    %c3 = arith.constant 3 : index
    %c0_41 = arith.constant 0 : index
    %c0_42 = arith.constant 0 : index
    %106 = vector.load %arg7[%c3, %c0_41, %c0_42] : memref<9x32x8xf32, #tpu.memory_space<vmem>>, vector<1x32x8xf32>
    %107 = vector.shape_cast %106 : vector<1x32x8xf32> to vector<32x8xf32>
    %cst_43 = arith.constant dense<0.000000e+00> : vector<128x8xf32>
    %108 = tpu.matmul %105, %107, %cst_43 {dimension_numbers = #tpu.dot_dimension_numbers<[1], [0], [0], [1], [0, 0, 1, 1], [], []>} : vector<128x32xf32>, vector<32x8xf32>, vector<128x8xf32> -> vector<128x8xf32>
    %109 = arith.addf %101, %108 : vector<128x8xf32>
    %c144_i32 = arith.constant 144 : i32
    %110 = tpu.dynamic_rotate %54 by %c144_i32 dim 0 : vector<160x32xf32>, i32 -> vector<160x32xf32>
    %111 = vector.extract_strided_slice %110 {offsets = [0, 0], sizes = [128, 32], strides = [1, 1]} : vector<160x32xf32> to vector<128x32xf32>
    %c4 = arith.constant 4 : index
    %c0_44 = arith.constant 0 : index
    %c0_45 = arith.constant 0 : index
    %112 = vector.load %arg7[%c4, %c0_44, %c0_45] : memref<9x32x8xf32, #tpu.memory_space<vmem>>, vector<1x32x8xf32>
    %113 = vector.shape_cast %112 : vector<1x32x8xf32> to vector<32x8xf32>
    %cst_46 = arith.constant dense<0.000000e+00> : vector<128x8xf32>
    %114 = tpu.matmul %111, %113, %cst_46 {dimension_numbers = #tpu.dot_dimension_numbers<[1], [0], [0], [1], [0, 0, 1, 1], [], []>} : vector<128x32xf32>, vector<32x8xf32>, vector<128x8xf32> -> vector<128x8xf32>
    %115 = arith.addf %109, %114 : vector<128x8xf32>
    %c143_i32 = arith.constant 143 : i32
    %116 = tpu.dynamic_rotate %54 by %c143_i32 dim 0 : vector<160x32xf32>, i32 -> vector<160x32xf32>
    %117 = vector.extract_strided_slice %116 {offsets = [0, 0], sizes = [128, 32], strides = [1, 1]} : vector<160x32xf32> to vector<128x32xf32>
    %118 = vector.broadcast %79 : vector<128x1xf32> to vector<128x32xf32>
    %119 = arith.mulf %117, %118 : vector<128x32xf32>
    %c5 = arith.constant 5 : index
    %c0_47 = arith.constant 0 : index
    %c0_48 = arith.constant 0 : index
    %120 = vector.load %arg7[%c5, %c0_47, %c0_48] : memref<9x32x8xf32, #tpu.memory_space<vmem>>, vector<1x32x8xf32>
    %121 = vector.shape_cast %120 : vector<1x32x8xf32> to vector<32x8xf32>
    %cst_49 = arith.constant dense<0.000000e+00> : vector<128x8xf32>
    %122 = tpu.matmul %119, %121, %cst_49 {dimension_numbers = #tpu.dot_dimension_numbers<[1], [0], [0], [1], [0, 0, 1, 1], [], []>} : vector<128x32xf32>, vector<32x8xf32>, vector<128x8xf32> -> vector<128x8xf32>
    %123 = arith.addf %115, %122 : vector<128x8xf32>
    %c129_i32 = arith.constant 129 : i32
    %124 = tpu.dynamic_rotate %54 by %c129_i32 dim 0 : vector<160x32xf32>, i32 -> vector<160x32xf32>
    %125 = vector.extract_strided_slice %124 {offsets = [0, 0], sizes = [128, 32], strides = [1, 1]} : vector<160x32xf32> to vector<128x32xf32>
    %126 = vector.broadcast %75 : vector<128x1xf32> to vector<128x32xf32>
    %127 = arith.mulf %125, %126 : vector<128x32xf32>
    %c6 = arith.constant 6 : index
    %c0_50 = arith.constant 0 : index
    %c0_51 = arith.constant 0 : index
    %128 = vector.load %arg7[%c6, %c0_50, %c0_51] : memref<9x32x8xf32, #tpu.memory_space<vmem>>, vector<1x32x8xf32>
    %129 = vector.shape_cast %128 : vector<1x32x8xf32> to vector<32x8xf32>
    %cst_52 = arith.constant dense<0.000000e+00> : vector<128x8xf32>
    %130 = tpu.matmul %127, %129, %cst_52 {dimension_numbers = #tpu.dot_dimension_numbers<[1], [0], [0], [1], [0, 0, 1, 1], [], []>} : vector<128x32xf32>, vector<32x8xf32>, vector<128x8xf32> -> vector<128x8xf32>
    %131 = arith.addf %123, %130 : vector<128x8xf32>
    %c128_i32 = arith.constant 128 : i32
    %132 = tpu.dynamic_rotate %54 by %c128_i32 dim 0 : vector<160x32xf32>, i32 -> vector<160x32xf32>
    %133 = vector.extract_strided_slice %132 {offsets = [0, 0], sizes = [128, 32], strides = [1, 1]} : vector<160x32xf32> to vector<128x32xf32>
    %c7 = arith.constant 7 : index
    %c0_53 = arith.constant 0 : index
    %c0_54 = arith.constant 0 : index
    %134 = vector.load %arg7[%c7, %c0_53, %c0_54] : memref<9x32x8xf32, #tpu.memory_space<vmem>>, vector<1x32x8xf32>
    %135 = vector.shape_cast %134 : vector<1x32x8xf32> to vector<32x8xf32>
    %cst_55 = arith.constant dense<0.000000e+00> : vector<128x8xf32>
    %136 = tpu.matmul %133, %135, %cst_55 {dimension_numbers = #tpu.dot_dimension_numbers<[1], [0], [0], [1], [0, 0, 1, 1], [], []>} : vector<128x32xf32>, vector<32x8xf32>, vector<128x8xf32> -> vector<128x8xf32>
    %137 = arith.addf %131, %136 : vector<128x8xf32>
    %c127_i32 = arith.constant 127 : i32
    %138 = tpu.dynamic_rotate %54 by %c127_i32 dim 0 : vector<160x32xf32>, i32 -> vector<160x32xf32>
    %139 = vector.extract_strided_slice %138 {offsets = [0, 0], sizes = [128, 32], strides = [1, 1]} : vector<160x32xf32> to vector<128x32xf32>
    %140 = vector.broadcast %79 : vector<128x1xf32> to vector<128x32xf32>
    %141 = arith.mulf %139, %140 : vector<128x32xf32>
    %c8 = arith.constant 8 : index
    %c0_56 = arith.constant 0 : index
    %c0_57 = arith.constant 0 : index
    %142 = vector.load %arg7[%c8, %c0_56, %c0_57] : memref<9x32x8xf32, #tpu.memory_space<vmem>>, vector<1x32x8xf32>
    %143 = vector.shape_cast %142 : vector<1x32x8xf32> to vector<32x8xf32>
    %cst_58 = arith.constant dense<0.000000e+00> : vector<128x8xf32>
    %144 = tpu.matmul %141, %143, %cst_58 {dimension_numbers = #tpu.dot_dimension_numbers<[1], [0], [0], [1], [0, 0, 1, 1], [], []>} : vector<128x32xf32>, vector<32x8xf32>, vector<128x8xf32> -> vector<128x8xf32>
    %145 = arith.addf %137, %144 : vector<128x8xf32>
    %c0_59 = arith.constant 0 : index
    %c0_60 = arith.constant 0 : index
    %146 = vector.load %arg4[%c0_59, %c0_60] : memref<128x4xf32, #tpu.memory_space<vmem>>, vector<128x4xf32>
    %147 = tpu.concatenate %145, %146 in 1 : vector<128x8xf32>, vector<128x4xf32> -> vector<128x12xf32>
    %c0_61 = arith.constant 0 : index
    %c0_62 = arith.constant 0 : index
    %148 = vector.load %arg8[%c0_61, %c0_62] : memref<128x12xf32, #tpu.memory_space<vmem>>, vector<128x12xf32>
    tpu.vector_store %arg8[%c0_61, %c0_62], %147 {strides = array<i32>} : memref<128x12xf32, #tpu.memory_space<vmem>>, vector<128x12xf32>,
    return
  }
  func.func @transform_0(%arg0: i32) -> (i32, i32) {
    %c0_i32 = arith.constant 0 : i32
    %c0_i32_0 = arith.constant 0 : i32
    return %arg0, %c0_i32 : i32, i32
  }
  func.func @transform_1(%arg0: i32) -> (i32, i32) {
    %c8_i32 = arith.constant 8 : i32
    %0 = arith.muli %arg0, %c8_i32 : i32
    %c1_i32 = arith.constant 1 : i32
    %1 = arith.subi %0, %c1_i32 : i32
    %c0_i32 = arith.constant 0 : i32
    %2 = arith.maxsi %1, %c0_i32 : i32
    %c0_i32_0 = arith.constant 0 : i32
    %c0_i32_1 = arith.constant 0 : i32
    return %2, %c0_i32_0 : i32, i32
  }
  func.func @transform_2(%arg0: i32) -> (i32, i32) {
    %c8_i32 = arith.constant 8 : i32
    %0 = arith.muli %arg0, %c8_i32 : i32
    %c8_i32_0 = arith.constant 8 : i32
    %1 = arith.addi %0, %c8_i32_0 : i32
    %c31_i32 = arith.constant 31 : i32
    %2 = arith.minsi %1, %c31_i32 : i32
    %c0_i32 = arith.constant 0 : i32
    %c0_i32_1 = arith.constant 0 : i32
    return %2, %c0_i32 : i32, i32
  }
  func.func @transform_3(%arg0: i32) -> (i32, i32) {
    %c0_i32 = arith.constant 0 : i32
    %c0_i32_0 = arith.constant 0 : i32
    return %arg0, %c0_i32 : i32, i32
  }
  func.func @transform_4(%arg0: i32) -> (i32, i32) {
    %c0_i32 = arith.constant 0 : i32
    %c0_i32_0 = arith.constant 0 : i32
    %c0_i32_1 = arith.constant 0 : i32
    return %c0_i32, %c0_i32_0 : i32, i32
  }
  func.func @transform_5(%arg0: i32) -> (i32, i32) {
    %c0_i32 = arith.constant 0 : i32
    %c0_i32_0 = arith.constant 0 : i32
    %c0_i32_1 = arith.constant 0 : i32
    return %c0_i32, %c0_i32_0 : i32, i32
  }
  func.func @transform_6(%arg0: i32) -> (i32, i32, i32) {
    %c0_i32 = arith.constant 0 : i32
    %c0_i32_0 = arith.constant 0 : i32
    %c0_i32_1 = arith.constant 0 : i32
    %c0_i32_2 = arith.constant 0 : i32
    return %c0_i32, %c0_i32_0, %c0_i32_1 : i32, i32, i32
  }
  func.func @transform_7(%arg0: i32) -> (i32, i32) {
    %c0_i32 = arith.constant 0 : i32
    %c0_i32_0 = arith.constant 0 : i32
    return %arg0, %c0_i32 : i32, i32
  }
}

</mosaic_0001>

<bundles_post_ra>
// kernel: dense_bottleneck.3
= control target key start
LH: loop header
LB: loop body
LE: loop exit
PB: predicated region body
PF: predicated region fallthrough
CT: control target
= control target key end

     0   :  { %s1141_s9 = smov 0   ;;  %s1143_s10 = smov 0   ;;  %s2052_s0 = inlined_call_operand.vmem [shape: f32[512,4], index: 0, kind: input, shape index: {}]   ;;  %s2053_s1 = inlined_call_operand.vmem [shape: f32[16,4], index: 1, kind: output, shape index: {0}]   ;;  %s2054_s2 = inlined_call_operand.vmem [shape: f32[16,4], index: 2, kind: output, shape index: {1}]  }
   0x1   :  { %s1145_s11 = smov 0  }
   0x2 LB: > { %s25_s12 = sadd.s32 1, %s1119_s10  ;;  %p1068_p0 = scmp.ge.s32.totalorder %s1123_s11, 1  ;;  %s1123_s11 = sphi %s1145_s11, %s13_s11   ;;  %s1119_s10 = sphi %s1143_s10, %s2265_s10   ;;  %s1115_s9 = sphi %s1141_s9, %s2264_s9  }
   0x3   : > { %p27_p1 = scmp.ge.s32.totalorder %s25_s12, 2  ;;  %p140_p2 = scmp.lt.s32.totalorder %s1123_s11, 3 }
   0x5   : > { %s2267_s12 = smov (%p27_p1, %s25_s12), 0  ;;  %p141_p3 = pnand %p1068_p0, %p140_p2 }
   0x7   : > { %144 = sbr.rel (%p141_p3) target bundleno = 222 (0xde), region = 24 }
   0xe   : > { %p180_p4 = scmp.lt.s32.totalorder %s1115_s9, 1  ;;  %vm2055_vm0 = vcmask 31744   ;;  %v1125_v0 = vmov 0.0   ;;  %v197_v1 = vlaneseq  ;;  %s1073_s21 = sshll.u32 %s1115_s9, 9 }
   0xf   : > { %v1183_v6 = vstv %s1073_s21  ;;  %p169_p5 = scmp.lt.s32.totalorder %s1115_s9, 0 }
  0x10   : > { %s181_s13 = scalar_select %p180_p4, %s1115_s9, 1  ;;  %v1178_v2 = vshrl.u32 %v197_v1, 7  ;;  %2077 = vst [vmem:[#allocation3_spill] sm:$0xff] %v1183_v6 }
  0x11   : > { %s2269_s9 = smov (!%p169_p5, %s1115_s9), 0 }
  0x12   : > { %s1071_s14 = sshll.u32 %s181_s13, 3  ;;  %2076 = vst [vmem:[#allocation2_spill] sm:$0xff] %v1178_v2  ;;  %v231_v3 = vadd.s32 264, %v1178_v2  ;;  %v232_v4 = vadd.s32 272, %v1178_v2  ;;  %v233_v5 = vadd.s32 280, %v1178_v2  ;;  %v234_v7 = vadd.s32 288, %v1178_v2 }
  0x13   : > { %s1166_s17 = scalar_lea.vmem %s2053_s1, %s1071_s14  ;;  %s1171_s20 = scalar_lea.vmem %s2054_s2, %s1071_s14  ;;  %v235_v8 = vadd.s32 296, %v1178_v2  ;;  %v236_v9 = vadd.s32 304, %v1178_v2  ;;  %v237_v10 = vadd.s32 312, %v1178_v2  ;;  %v238_v11 = vadd.s32 320, %v1178_v2 }
  0x14   : > { %193 = vst.msk [vmem:[%s1166_s17] sm:$0xff] %vm2055_vm0, %v1125_v0  ;;  %194 = vst.msk [vmem:[%s1171_s20] sm:$0xff] %vm2055_vm0, %v1125_v0  ;;  %v239_v12 = vadd.s32 328, %v1178_v2  ;;  %v240_v13 = vadd.s32 336, %v1178_v2  ;;  %v241_v14 = vadd.s32 344, %v1178_v2  ;;  %v242_v15 = vadd.s32 352, %v1178_v2 }
  0x15   : > { %v243_v16 = vadd.s32 360, %v1178_v2  ;;  %v244_v17 = vadd.s32 368, %v1178_v2  ;;  %v245_v18 = vadd.s32 376, %v1178_v2  ;;  %v246_v19 = vadd.s32 384, %v1178_v2  ;;  %s1069_s22 = sshll.u32 %s2269_s9, 6 }
  0x16   : > { %v247_v20 = vadd.s32 392, %v1178_v2  ;;  %v248_v21 = vadd.s32 400, %v1178_v2  ;;  %v249_v22 = vadd.s32 408, %v1178_v2  ;;  %v250_v23 = vadd.s32 416, %v1178_v2  ;;  %p172_p6 = scmp.lt.s32.totalorder %s1069_s22, 63 }
  0x17   : > { %v251_v24 = vadd.s32 424, %v1178_v2  ;;  %v252_v25 = vadd.s32 432, %v1178_v2  ;;  %v253_v26 = vadd.s32 440, %v1178_v2  ;;  %v254_v27 = vadd.s32 448, %v1178_v2 }
  0x18   : > { %v255_v28 = vadd.s32 456, %v1178_v2  ;;  %v256_v29 = vadd.s32 464, %v1178_v2  ;;  %v257_v30 = vadd.s32 472, %v1178_v2  ;;  %v258_v31 = vadd.s32 480, %v1178_v2  ;;  %s2271_s22 = smov (!%p172_p6, %s1069_s22), 63 }
  0x19   : > { %v259_v32 = vadd.s32 488, %v1178_v2  ;;  %v260_v33 = vadd.s32 496, %v1178_v2  ;;  %v261_v34 = vadd.s32 504, %v1178_v2  ;;  %v1214_v35 = vadd.s32 %v1183_v6, %v231_v3  ;;  %s1070_s23 = sshll.u32 %s2271_s22, 3 }
  0x1a   : > { %v1217_v36 = vadd.s32 %v1183_v6, %v232_v4  ;;  %v1220_v37 = vadd.s32 %v1183_v6, %v233_v5  ;;  %v1223_v38 = vadd.s32 %v1183_v6, %v234_v7  ;;  %v1227_v39 = vadd.s32 %v1183_v6, %v235_v8  ;;  %s1347_s26 = scalar_lea.vmem %s2052_s0, %s1070_s23 }
  0x1b   : > { %v1230_v40 = vadd.s32 %v1183_v6, %v236_v9  ;;  %v1233_v41 = vadd.s32 %v1183_v6, %v237_v10  ;;  %v1236_v42 = vadd.s32 %v1183_v6, %v238_v11  ;;  %v1239_v43 = vadd.s32 %v1183_v6, %v239_v12 }
  0x1c   : > { %v1242_v44 = vadd.s32 %v1183_v6, %v240_v13  ;;  %v1245_v45 = vadd.s32 %v1183_v6, %v241_v14  ;;  %v1248_v46 = vadd.s32 %v1183_v6, %v242_v15  ;;  %v1251_v47 = vadd.s32 %v1183_v6, %v243_v16 }
  0x1d   : > { %v1254_v48 = vadd.s32 %v1183_v6, %v244_v17  ;;  %v1257_v49 = vadd.s32 %v1183_v6, %v245_v18  ;;  %v1260_v50 = vadd.s32 %v1183_v6, %v246_v19  ;;  %v1263_v51 = vadd.s32 %v1183_v6, %v247_v20  ;;  %v391_v18 = vld [vmem:[%s1347_s26] sm:$0xff]  ;;  %v392_v19 = vld [vmem:[%s1347_s26 + $0x8] sm:$0xff]  ;;  %v393_v20 = vld [vmem:[%s1347_s26 + $0x10] sm:$0xff] }
  0x1e   : > { %v1266_v52 = vadd.s32 %v1183_v6, %v248_v21  ;;  %v1269_v53 = vadd.s32 %v1183_v6, %v249_v22  ;;  %v1272_v54 = vadd.s32 %v1183_v6, %v250_v23  ;;  %v1278_v55 = vadd.s32 %v1183_v6, %v251_v24  ;;  %v424_v21 = vld [vmem:[%s1347_s26 + $0x108] sm:$0xff]  ;;  %v425_v22 = vld [vmem:[%s1347_s26 + $0x110] sm:$0xff]  ;;  %v426_v23 = vld [vmem:[%s1347_s26 + $0x118] sm:$0xff] }
  0x1f   : > { %v1281_v56 = vadd.s32 %v1183_v6, %v252_v25  ;;  %v1284_v57 = vadd.s32 %v1183_v6, %v253_v26  ;;  %v1287_v58 = vadd.s32 %v1183_v6, %v254_v27  ;;  %v1290_v59 = vadd.s32 %v1183_v6, %v255_v28  ;;  %v427_v24 = vld [vmem:[%s1347_s26 + $0x120] sm:$0xff]  ;;  %v428_v25 = vld [vmem:[%s1347_s26 + $0x128] sm:$0xff]  ;;  %v429_v26 = vld [vmem:[%s1347_s26 + $0x130] sm:$0xff] }
  0x20   : > { %v1293_v60 = vadd.s32 %v1183_v6, %v256_v29  ;;  %v1296_v61 = vadd.s32 %v1183_v6, %v257_v30  ;;  %v1299_v62 = vadd.s32 %v1183_v6, %v258_v31  ;;  %v1302_v63 = vadd.s32 %v1183_v6, %v259_v32  ;;  %v430_v27 = vld [vmem:[%s1347_s26 + $0x138] sm:$0xff]  ;;  %v431_v28 = vld [vmem:[%s1347_s26 + $0x140] sm:$0xff]  ;;  %v432_v29 = vld [vmem:[%s1347_s26 + $0x148] sm:$0xff] }
  0x21   : > { %v1305_v0 = vadd.s32 %v1183_v6, %v260_v33  ;;  %v1308_v1 = vadd.s32 %v1183_v6, %v261_v34  ;;  %v199_v3 = vadd.s32 8, %v1178_v2  ;;  %v200_v4 = vadd.s32 16, %v1178_v2  ;;  %v433_v30 = vld [vmem:[%s1347_s26 + $0x150] sm:$0xff]  ;;  %v434_v31 = vld [vmem:[%s1347_s26 + $0x158] sm:$0xff]  ;;  %v435_v32 = vld [vmem:[%s1347_s26 + $0x160] sm:$0xff] }
  0x22   : > { %v201_v5 = vadd.s32 24, %v1178_v2  ;;  %v202_v7 = vadd.s32 32, %v1178_v2  ;;  %v203_v8 = vadd.s32 40, %v1178_v2  ;;  %v1317_v9 = vadd.s32 %v1183_v6, %v1178_v2  ;;  %v436_v33 = vld [vmem:[%s1347_s26 + $0x168] sm:$0xff]  ;;  %v437_v34 = vld [vmem:[%s1347_s26 + $0x170] sm:$0xff] }
  0x23   : > { %v1320_v10 = vadd.s32 %v1183_v6, %v199_v3  ;;  %v1323_v11 = vadd.s32 %v1183_v6, %v200_v4  ;;  %v1326_v12 = vadd.s32 48, %v1178_v2  ;;  %v1329_v13 = vadd.s32 56, %v1178_v2  ;;  %v438_v3 = vld [vmem:[%s1347_s26 + $0x178] sm:$0xff]  ;;  %v439_v4 = vld [vmem:[%s1347_s26 + $0x180] sm:$0xff] }
  0x24   : > { %v1332_v14 = vadd.s32 64, %v1178_v2  ;;  %v1335_v15 = vadd.s32 %v1183_v6, %v201_v5  ;;  %v1338_v16 = vadd.s32 %v1183_v6, %v202_v7  ;;  %v1341_v17 = vadd.s32 %v1183_v6, %v203_v8  ;;  %v440_v5 = vld [vmem:[%s1347_s26 + $0x188] sm:$0xff]  ;;  %v441_v7 = vld [vmem:[%s1347_s26 + $0x190] sm:$0xff]  ;;  %v442_v8 = vld [vmem:[%s1347_s26 + $0x198] sm:$0xff] }
  0x25   : > { %2078 = vst [vmem:[#allocation4_spill] sm:$0xff] %v1326_v12  ;;  %2079 = vst [vmem:[#allocation5_spill] sm:$0xff] %v1329_v13  ;;  %vm327_vm1 = vcmp.lt.s32.totalorder %v1317_v9, 512  ;;  %vm328_vm2 = vcmp.lt.s32.totalorder %v1320_v10, 512  ;;  %vm329_vm3 = vcmp.lt.s32.totalorder %v1323_v11, 512  ;;  %vm360_vm4 = vcmp.lt.s32.totalorder %v1214_v35, 512 }
  0x26   : > { %2080 = vst [vmem:[#allocation6_spill] sm:$0xff] %v1332_v14  ;;  %2081 = vst [vmem:[#allocation7_spill] sm:$0xff] %v1335_v15  ;;  %vm361_vm5 = vcmp.lt.s32.totalorder %v1217_v36, 512  ;;  %vm362_vm6 = vcmp.lt.s32.totalorder %v1220_v37, 512  ;;  %vm363_vm7 = vcmp.lt.s32.totalorder %v1223_v38, 512  ;;  %vm364_vm8 = vcmp.lt.s32.totalorder %v1227_v39, 512 }
  0x27   : > { %2082 = vst [vmem:[#allocation8_spill] sm:$0xff] %v1338_v16  ;;  %2083 = vst [vmem:[#allocation9_spill] sm:$0xff] %v1341_v17  ;;  %vm366_vm10 = vcmp.lt.s32.totalorder %v1233_v41, 512  ;;  %vm371_vm15 = vcmp.lt.s32.totalorder %v1248_v46, 512  ;;  %vm330_vm11 = vcmp.lt.s32.totalorder %v1335_v15, 512  ;;  %vm386_vm12 = vcmp.lt.s32.totalorder %v1296_v61, 512 }
  0x28   : > { %vm387_vm14 = vcmp.lt.s32.totalorder %v1299_v62, 512  ;;  %vm388_vm9 = vcmp.lt.s32.totalorder %v1302_v63, 512  ;;  %vm389_vm0 = vcmp.lt.s32.totalorder %v1305_v0, 512  ;;  %vm390_vm13 = vcmp.lt.s32.totalorder %v1308_v1, 512  ;;  %v443_v14 = vld [vmem:[%s1347_s26 + $0x1a0] sm:$0xff]  ;;  %v444_v15 = vld [vmem:[%s1347_s26 + $0x1a8] sm:$0xff] }
  0x29   : > { %v1408_v17 = vsel %vm327_vm1, %v391_v18, 0.0  ;;  %v1412_v13 = vsel %vm328_vm2, %v392_v19, 0.0  ;;  %v1416_v2 = vsel %vm329_vm3, %v393_v20, 0.0  ;;  %v445_v16 = vld [vmem:[%s1347_s26 + $0x1b0] sm:$0xff]  ;;  %v446_v6 = vld [vmem:[%s1347_s26 + $0x1b8] sm:$0xff]  ;;  %v1423_v12 = vsel %vm360_vm4, %v424_v21, 0.0 }
  0x2a   : > { %v1427_v9 = vsel %vm361_vm5, %v425_v22, 0.0  ;;  %v1431_v10 = vsel %vm362_vm6, %v426_v23, 0.0  ;;  %v1435_v11 = vsel %vm363_vm7, %v427_v24, 0.0  ;;  %v447_v18 = vld [vmem:[%s1347_s26 + $0x1c0] sm:$0xff]  ;;  %v448_v19 = vld [vmem:[%s1347_s26 + $0x1c8] sm:$0xff]  ;;  %v1441_v35 = vsel %vm364_vm8, %v428_v25, 0.0 }
  0x2b   : > { %vm2084_vm1 = vcmp.lt.s32.totalorder %v1230_v40, 512  ;;  %v1449_v37 = vsel %vm366_vm10, %v430_v27, 0.0  ;;  %vm2085_vm2 = vcmp.lt.s32.totalorder %v1236_v42, 512  ;;  %v449_v20 = vld [vmem:[%s1347_s26 + $0x1d0] sm:$0xff]  ;;  %v450_v21 = vld [vmem:[%s1347_s26 + $0x1d8] sm:$0xff]  ;;  %vm2086_vm3 = vcmp.lt.s32.totalorder %v1239_v43, 512 }
  0x2c   : > { %v1445_v36 = vsel %vm2084_vm1, %v429_v26, 0.0  ;;  %v1453_v38 = vsel %vm2085_vm2, %v431_v28, 0.0  ;;  %v1459_v39 = vsel %vm2086_vm3, %v432_v29, 0.0  ;;  %vm2087_vm4 = vcmp.lt.s32.totalorder %v1242_v44, 512  ;;  %v451_v42 = vld [vmem:[%s1347_s26 + $0x1e0] sm:$0xff]  ;;  %v452_v23 = vld [vmem:[%s1347_s26 + $0x1e8] sm:$0xff] }
  0x2d   : > { %v1463_v40 = vsel %vm2087_vm4, %v433_v30, 0.0  ;;  %vm2088_vm5 = vcmp.lt.s32.totalorder %v1245_v45, 512  ;;  %v1471_v22 = vsel %vm371_vm15, %v435_v32, 0.0  ;;  %vm2089_vm6 = vcmp.lt.s32.totalorder %v1251_v47, 512  ;;  %v453_v24 = vld [vmem:[%s1347_s26 + $0x1f0] sm:$0xff]  ;;  %v454_v25 = vld [vmem:[%s1347_s26 + $0x1f8] sm:$0xff] }
  0x2e   : > { %v1467_v41 = vsel %vm2088_vm5, %v434_v31, 0.0  ;;  %v1477_v43 = vsel %vm2089_vm6, %v436_v33, 0.0  ;;  %vm2090_vm7 = vcmp.lt.s32.totalorder %v1254_v48, 512  ;;  %vm2091_vm8 = vcmp.lt.s32.totalorder %v1257_v49, 512  ;;  %v2119_v61 = vld [vmem:[#allocation4_spill] sm:$0xff]  ;;  %v2120_v62 = vld [vmem:[#allocation3_spill] sm:$0xff] }
  0x2f   : > { %v1481_v44 = vsel %vm2090_vm7, %v437_v34, 0.0  ;;  %v1485_v45 = vsel %vm2091_vm8, %v438_v3, 0.0  ;;  %vm2092_vm10 = vcmp.lt.s32.totalorder %v1260_v50, 512  ;;  %vm2093_vm15 = vcmp.lt.s32.totalorder %v1263_v51, 512  ;;  %v395_v63 = vld [vmem:[%s1347_s26 + $0x20] sm:$0xff]  ;;  %v2126_v32 = vld [vmem:[#allocation5_spill] sm:$0xff] }
  0x30   : > { %v1489_v46 = vsel %vm2092_vm10, %v439_v4, 0.0  ;;  %v1495_v26 = vsel %vm2093_vm15, %v440_v5, 0.0  ;;  %vm2095_vm1 = vcmp.lt.s32.totalorder %v1266_v52, 512  ;;  %vm2097_vm2 = vcmp.lt.s32.totalorder %v1269_v53, 512  ;;  %v2125_v30 = vld [vmem:[#allocation2_spill] sm:$0xff]  ;;  %v2127_v34 = vld [vmem:[#allocation9_spill] sm:$0xff] }
  0x31   : > { %2094 = vst [vmem:[#allocation10_spill] sm:$0xff] %v1495_v26  ;;  %v1499_v47 = vsel %vm2095_vm1, %v441_v7, 0.0  ;;  %v1503_v48 = vsel %vm2097_vm2, %v442_v8, 0.0  ;;  %vm2099_vm3 = vcmp.lt.s32.totalorder %v1272_v54, 512  ;;  %vm2101_vm4 = vcmp.lt.s32.totalorder %v1278_v55, 512  ;;  %v394_v54 = vld [vmem:[%s1347_s26 + $0x18] sm:$0xff] }
  0x32   : > { %2096 = vst [vmem:[#allocation11_spill] sm:$0xff] %v1499_v47  ;;  %2098 = vst [vmem:[#allocation12_spill] sm:$0xff] %v1503_v48  ;;  %v1507_v49 = vsel %vm2099_vm3, %v443_v14, 0.0  ;;  %v1511_v50 = vsel %vm2101_vm4, %v444_v15, 0.0  ;;  %vm2103_vm5 = vcmp.lt.s32.totalorder %v1281_v56, 512  ;;  %vm2105_vm6 = vcmp.lt.s32.totalorder %v1284_v57, 512 }
  0x33   : > { %2100 = vst [vmem:[#allocation13_spill] sm:$0xff] %v1507_v49  ;;  %2102 = vst [vmem:[#allocation14_spill] sm:$0xff] %v1511_v50  ;;  %v1515_v51 = vsel %vm2103_vm5, %v445_v16, 0.0  ;;  %v1519_v52 = vsel %vm2105_vm6, %v446_v6, 0.0  ;;  %vm2107_vm7 = vcmp.lt.s32.totalorder %v1287_v58, 512  ;;  %vm2109_vm8 = vcmp.lt.s32.totalorder %v1290_v59, 512 }
  0x34   : > { %2104 = vst [vmem:[#allocation15_spill] sm:$0xff] %v1515_v51  ;;  %2106 = vst [vmem:[#allocation16_spill] sm:$0xff] %v1519_v52  ;;  %v1523_v53 = vsel %vm2107_vm7, %v447_v18, 0.0  ;;  %v1528_v14 = vsel %vm2109_vm8, %v448_v19, 0.0  ;;  %vm2111_vm10 = vcmp.lt.s32.totalorder %v1293_v60, 512  ;;  %v1536_v56 = vsel %vm386_vm12, %v450_v21, 0.0 }
  0x35   : > { %2108 = vst [vmem:[#allocation17_spill] sm:$0xff] %v1523_v53  ;;  %2110 = vst [vmem:[#allocation18_spill] sm:$0xff] %v1528_v14  ;;  %v1532_v55 = vsel %vm2111_vm10, %v449_v20, 0.0  ;;  %v1540_v6 = vsel %vm387_vm14, %v451_v42, 0.0  ;;  %v1544_v57 = vsel %vm388_vm9, %v452_v23, 0.0  ;;  %v1548_v58 = vsel %vm389_vm0, %v453_v24, 0.0 }
  0x36   : > { %2112 = vst [vmem:[#allocation19_spill] sm:$0xff] %v1532_v55  ;;  %2113 = vst [vmem:[#allocation20_spill] sm:$0xff] %v1536_v56  ;;  %v1552_v59 = vsel %vm390_vm13, %v454_v25, 0.0  ;;  %vm2118_vm12 = vcmask 31744   ;;  %v269_v15 = vadd.s32 %v2120_v62, %v2119_v61  ;;  %v2121_v16 = vld [vmem:[#allocation8_spill] sm:$0xff]  ;;  %v1566_v1 = vsel %vm330_vm11, %v394_v54, 0.0 }
  0x37   : > { %2114 = vst [vmem:[#allocation21_spill] sm:$0xff] %v1540_v6  ;;  %2115 = vst [vmem:[#allocation22_spill] sm:$0xff] %v1544_v57  ;;  %v649_v60 = vsel %vm2118_vm12, %v1408_v17, 0.0  ;;  %vm331_vm14 = vcmp.lt.s32.totalorder %v2121_v16, 512  ;;  %v207_v31 = vadd.s32 72, %v2125_v30  ;;  %v270_v33 = vadd.s32 %v2120_v62, %v2126_v32  ;;  %v396_v3 = vld [vmem:[%s1347_s26 + $0x28] sm:$0xff] }
  0x38   : > { %2116 = vst [vmem:[#allocation23_spill] sm:$0xff] %v1548_v58  ;;  %2117 = vst [vmem:[#allocation24_spill] sm:$0xff] %v1552_v59  ;;  %vm332_vm13 = vcmp.lt.s32.totalorder %v2127_v34, 512  ;;  %v1575_v5 = vsel %vm331_vm14, %v395_v63, 0.0  ;;  %v208_v8 = vadd.s32 80, %v2125_v30  ;;  %v2129_v18 = vld [vmem:[#allocation6_spill] sm:$0xff] }
  0x39   : > { %vm2122_vm9 = vmmov %vm2118_vm12  ;;  %v271_v19 = vadd.s32 %v2120_v62, %v2129_v18  ;;  %vm333_vm11 = vcmp.lt.s32.totalorder %v269_v15, 512  ;;  %v397_v20 = vld [vmem:[%s1347_s26 + $0x30] sm:$0xff]  ;;  %v1583_v42 = vsel %vm332_vm13, %v396_v3, 0.0  ;;  %v209_v24 = vadd.s32 88, %v2125_v30  ;;  %v398_v54 = vld [vmem:[%s1347_s26 + $0x38] sm:$0xff] }
  0x3a   : > { %v650_v27 = vsel %vm2122_vm9, %v1412_v13, 0.0  ;;  %vm2123_vm0 = vmmov %vm2122_vm9  ;;  %v272_v25 = vadd.s32 %v2120_v62, %v207_v31  ;;  %vm334_vm2 = vcmp.lt.s32.totalorder %v270_v33, 512  ;;  %v1590_v61 = vsel %vm333_vm11, %v397_v20, 0.0  ;;  %v400_v33 = vld [vmem:[%s1347_s26 + $0x48] sm:$0xff]  ;;  %v401_v18 = vld [vmem:[%s1347_s26 + $0x50] sm:$0xff] }
  0x3b   : > { %v652_v0 = vsel %vm2123_vm0, %v1416_v2, 0.0  ;;  %v651_v29 = vadd.f32 %v650_v27, %v649_v60  ;;  %vm2128_vm15 = vmmov %vm2123_vm0  ;;  %v210_v16 = vadd.s32 96, %v2125_v30  ;;  %v273_v63 = vadd.s32 %v2120_v62, %v208_v8  ;;  %v399_v27 = vld [vmem:[%s1347_s26 + $0x40] sm:$0xff] }
  0x3c   : > { %v654_v4 = vsel %vm2128_vm15, %v1566_v1, 0.0  ;;  %vm2130_vm1 = vmmov %vm2123_vm0  ;;  %vm335_vm4 = vcmp.lt.s32.totalorder %v271_v19, 512  ;;  %v1597_v28 = vsel %vm334_vm2, %v398_v54, 0.0  ;;  %v211_v31 = vadd.s32 104, %v2125_v30  ;;  %v411_v50 = vld [vmem:[%s1347_s26 + $0xa0] sm:$0xff] }
  0x3d   : > { %v653_v7 = vadd.f32 %v652_v0, %v651_v29  ;;  %v656_v21 = vsel %vm2130_vm1, %v1575_v5, 0.0  ;;  %vm2131_vm3 = vmmov %vm2123_vm0  ;;  %v274_v32 = vadd.s32 %v2120_v62, %v209_v24  ;;  %vm336_vm6 = vcmp.lt.s32.totalorder %v272_v25, 512  ;;  %v402_v25 = vld [vmem:[%s1347_s26 + $0x58] sm:$0xff] }
  0x3e   : > { %v658_v60 = vsel %vm2131_vm3, %v1583_v42, 0.0  ;;  %vm2132_vm5 = vmmov %vm2123_vm0  ;;  %v1604_v3 = vsel %vm335_vm4, %v399_v27, 0.0  ;;  %v275_v8 = vadd.s32 %v2120_v62, %v210_v16  ;;  %vm337_vm8 = vcmp.lt.s32.totalorder %v273_v63, 512  ;;  %v403_v27 = vld [vmem:[%s1347_s26 + $0x60] sm:$0xff] }
  0x3f   : > { %v655_v23 = vadd.f32 %v654_v4, %v653_v7  ;;  %v660_v0 = vsel %vm2132_vm5, %v1590_v61, 0.0  ;;  %vm2133_vm7 = vmmov %vm2123_vm0  ;;  %v212_v7 = vadd.s32 112, %v2125_v30  ;;  %v1611_v20 = vsel %vm336_vm6, %v400_v33, 0.0 }
  0x40   : > { %v662_v34 = vsel %vm2133_vm7, %v1597_v28, 0.0  ;;  %vm2134_vm10 = vmmov %vm2123_vm0  ;;  %v276_v24 = vadd.s32 %v2120_v62, %v211_v31  ;;  %vm338_vm12 = vcmp.lt.s32.totalorder %v274_v32, 512  ;;  %v214_v16 = vadd.s32 128, %v2125_v30 }
  0x41   : > { %v657_v15 = vadd.f32 %v656_v21, %v655_v23  ;;  %v664_v19 = vsel %vm2134_vm10, %v1604_v3, 0.0  ;;  %v213_v23 = vadd.s32 120, %v2125_v30  ;;  %vm2135_vm14 = vmmov %vm2123_vm0  ;;  %v277_v63 = vadd.s32 %v2120_v62, %v212_v7 }
  0x42   : > { %v666_v54 = vsel %vm2135_vm14, %v1611_v20, 0.0  ;;  %vm339_vm9 = vcmp.lt.s32.totalorder %v275_v8, 512  ;;  %v215_v32 = vadd.s32 136, %v2125_v30  ;;  %vm340_vm13 = vcmp.lt.s32.totalorder %v276_v24, 512  ;;  %vm2136_vm15 = vmmov %vm2123_vm0 }
  0x43   : > { %v659_v29 = vadd.f32 %v658_v60, %v657_v15  ;;  %v1618_v60 = vsel %vm337_vm8, %v401_v18, 0.0  ;;  %v278_v33 = vadd.s32 %v2120_v62, %v213_v23  ;;  %v1632_v7 = vsel %vm339_vm9, %v403_v27, 0.0  ;;  %vm2137_vm1 = vmmov %vm2123_vm0  ;;  %v406_v27 = vld [vmem:[%s1347_s26 + $0x78] sm:$0xff] }
  0x44   : > { %v216_v18 = vadd.s32 144, %v2125_v30  ;;  %vm341_vm11 = vcmp.lt.s32.totalorder %v277_v63, 512  ;;  %vm2138_vm3 = vmmov %vm2123_vm0  ;;  %v219_v63 = vadd.s32 168, %v2125_v30  ;;  %v222_v58 = vadd.s32 192, %v2125_v30 }
  0x45   : > { %v661_v4 = vadd.f32 %v660_v0, %v659_v29  ;;  %v668_v0 = vsel %vm2123_vm0, %v1618_v60, 0.0  ;;  %v1625_v29 = vsel %vm338_vm12, %v402_v25, 0.0  ;;  %v672_v25 = vsel %vm2137_vm1, %v1632_v7, 0.0  ;;  %vm2139_vm5 = vmmov %vm2123_vm0 }
  0x46   : > { %vm342_vm2 = vcmp.lt.s32.totalorder %v278_v33, 512  ;;  %v221_v33 = vadd.s32 184, %v2125_v30  ;;  %vm2140_vm7 = vmmov %vm2123_vm0  ;;  %v1679_v53 = vadd.s32 240, %v2125_v30 }
  0x47   : > { %v663_v21 = vadd.f32 %v662_v34, %v661_v4  ;;  %v404_v34 = vld [vmem:[%s1347_s26 + $0x68] sm:$0xff]  ;;  %v670_v4 = vsel %vm2136_vm15, %v1625_v29, 0.0  ;;  %v1657_v57 = vsel %vm342_vm2, %v406_v27, 0.0  ;;  %v225_v27 = vadd.s32 216, %v2125_v30  ;;  %vm2141_vm10 = vmmov %vm2123_vm0 }
  0x48   : > { %v1639_v23 = vsel %vm340_vm13, %v404_v34, 0.0  ;;  %v220_v34 = vadd.s32 176, %v2125_v30  ;;  %vm2142_vm14 = vmmov %vm2123_vm0 }
  0x49   : > { %v665_v15 = vadd.f32 %v664_v19, %v663_v21  ;;  %v279_v19 = vadd.s32 %v2120_v62, %v214_v16  ;;  %v405_v21 = vld [vmem:[%s1347_s26 + $0x70] sm:$0xff]  ;;  %v218_v16 = vadd.s32 160, %v2125_v30  ;;  %vm2143_vm15 = vmmov %vm2123_vm0 }
  0x4a   : > { %v285_v51 = vadd.s32 %v2120_v62, %v220_v34  ;;  %v1703_v34 = vadd.s32 256, %v2125_v30  ;;  %vm2144_vm1 = vmmov %vm2123_vm0 }
  0x4b   : > { %v667_v31 = vadd.f32 %v666_v54, %v665_v15  ;;  %v217_v54 = vadd.s32 152, %v2125_v30  ;;  %v280_v15 = vadd.s32 %v2120_v62, %v215_v32  ;;  %vm343_vm4 = vcmp.lt.s32.totalorder %v279_v19, 512  ;;  %vm2145_vm2 = vmmov %vm2123_vm0 }
  0x4c   : > { %v224_v19 = vadd.s32 208, %v2125_v30  ;;  %v283_v56 = vadd.s32 %v2120_v62, %v218_v16 }
  0x4d   : > { %v669_v8 = vadd.f32 %v668_v0, %v667_v31  ;;  %v674_v0 = vsel %vm2138_vm3, %v1639_v23, 0.0  ;;  %v1648_v31 = vsel %vm341_vm11, %v405_v21, 0.0  ;;  %v223_v21 = vadd.s32 200, %v2125_v30  ;;  %vm2146_vm3 = vmmov %vm2123_vm0 }
  0x4e   : > { %v676_v32 = vsel %vm2139_vm5, %v1648_v31, 0.0  ;;  %vm344_vm6 = vcmp.lt.s32.totalorder %v280_v15, 512  ;;  %vm347_vm9 = vcmp.lt.s32.totalorder %v283_v56, 512  ;;  %v286_v56 = vadd.s32 %v2120_v62, %v221_v33 }
  0x4f   : > { %v671_v24 = vadd.f32 %v670_v4, %v669_v8  ;;  %v281_v4 = vadd.s32 %v2120_v62, %v216_v18  ;;  %v407_v8 = vld [vmem:[%s1347_s26 + $0x80] sm:$0xff]  ;;  %v678_v18 = vsel %vm2140_vm7, %v1657_v57, 0.0  ;;  %v1709_v48 = vsel %vm347_vm9, %v411_v50, 0.0  ;;  %vm2149_vm7 = vmmov %vm2123_vm0 }
  0x50   : > { %v1666_v55 = vsel %vm343_vm4, %v407_v8, 0.0  ;;  %v1684_v8 = vadd.s32 248, %v2125_v30  ;;  %vm349_vm11 = vcmp.lt.s32.totalorder %v285_v51, 512  ;;  %v688_v33 = vsel %vm2144_vm1, %v1709_v48, 0.0  ;;  %vm2147_vm4 = vmmov %vm2123_vm0 }
  0x51   : > { %v673_v59 = vadd.f32 %v672_v25, %v671_v24  ;;  %v282_v25 = vadd.s32 %v2120_v62, %v217_v54  ;;  %v408_v24 = vld [vmem:[%s1347_s26 + $0x88] sm:$0xff]  ;;  %vm345_vm8 = vcmp.lt.s32.totalorder %v281_v4, 512  ;;  %v409_v54 = vld [vmem:[%s1347_s26 + $0x90] sm:$0xff]  ;;  %v680_v15 = vsel %vm2141_vm10, %v1666_v55, 0.0  ;;  %v410_v4 = vld [vmem:[%s1347_s26 + $0x98] sm:$0xff] }
  0x52   : > { %v1681_v16 = vsel %vm344_vm6, %v408_v24, 0.0  ;;  %v1692_v49 = vsel %vm345_vm8, %v409_v54, 0.0  ;;  %vm350_vm5 = vcmp.lt.s32.totalorder %v286_v56, 512  ;;  %vm2148_vm6 = vmmov %vm2123_vm0 }
  0x53   : > { %v675_v6 = vadd.f32 %v674_v0, %v673_v59  ;;  %v1670_v59 = vadd.s32 224, %v2125_v30  ;;  %v1676_v0 = vadd.s32 232, %v2125_v30  ;;  %vm346_vm12 = vcmp.lt.s32.totalorder %v282_v25, 512  ;;  %vm2150_vm10 = vmmov %vm2123_vm0 }
  0x54   : > { %v682_v52 = vsel %vm2142_vm14, %v1681_v16, 0.0  ;;  %v781_v25 = vmul.f32 %v1416_v2, %v1416_v2  ;;  %v1706_v54 = vsel %vm346_vm12, %v410_v4, 0.0  ;;  %v287_v2 = vadd.s32 %v2120_v62, %v222_v58  ;;  %v413_v4 = vld [vmem:[%s1347_s26 + $0xb0] sm:$0xff]  ;;  %vm2151_vm12 = vmmov %vm2123_vm0 }
  0x55   : > { %v677_v14 = vadd.f32 %v676_v32, %v675_v6  ;;  %v284_v32 = vadd.s32 %v2120_v62, %v219_v63  ;;  %v780_v63 = vmul.f32 %v1412_v13, %v1412_v13  ;;  %v782_v13 = vmul.f32 %v1566_v1, %v1566_v1  ;;  %vm2152_vm9 = vmmov %vm2123_vm0 }
  0x56   : > { %v288_v1 = vadd.s32 %v2120_v62, %v223_v21  ;;  %vm351_vm8 = vcmp.lt.s32.totalorder %v287_v2, 512 }
  0x57   : > { %v679_v6 = vadd.f32 %v678_v18, %v677_v14  ;;  %v684_v14 = vsel %vm2123_vm0, %v1692_v49, 0.0  ;;  %v779_v18 = vmul.f32 %v1408_v17, %v1408_v17  ;;  %vm348_vm13 = vcmp.lt.s32.totalorder %v284_v32, 512 }
  0x58   : > { %v686_v17 = vsel %vm2143_vm15, %v1706_v54, 0.0  ;;  %v844_v32 = vsel %vm2146_vm3, %v780_v63, 0.0  ;;  %v289_v63 = vadd.s32 %v2120_v62, %v224_v19  ;;  %vm352_vm14 = vcmp.lt.s32.totalorder %v288_v1, 512  ;;  %vm2153_vm15 = vmmov %vm2123_vm0 }
  0x59   : > { %v681_v24 = vadd.f32 %v680_v15, %v679_v6  ;;  %v412_v6 = vld [vmem:[%s1347_s26 + $0xa8] sm:$0xff]  ;;  %v843_v50 = vsel %vm2145_vm2, %v779_v18, 0.0  ;;  %v848_v18 = vsel %vm2149_vm7, %v782_v13, 0.0  ;;  %v290_v13 = vadd.s32 %v2120_v62, %v225_v27  ;;  %vm2155_vm2 = vmmov %vm2123_vm0 }
  0x5a   : > { %v1725_v47 = vsel %vm348_vm13, %v412_v6, 0.0  ;;  %vm353_vm13 = vcmp.lt.s32.totalorder %v289_v63, 512  ;;  %vm2156_vm3 = vmmov %vm2123_vm0 }
  0x5b   : > { %v683_v15 = vadd.f32 %v682_v52, %v681_v24  ;;  %v783_v52 = vmul.f32 %v1575_v5, %v1575_v5  ;;  %v846_v24 = vsel %vm2147_vm4, %v781_v25, 0.0  ;;  %v690_v26 = vsel %vm2148_vm6, %v1725_v47, 0.0  ;;  %vm2158_vm6 = vmmov %vm2123_vm0 }
  0x5c   : > { %v784_v5 = vmul.f32 %v1583_v42, %v1583_v42  ;;  %v1735_v25 = vsel %vm349_vm11, %v413_v4, 0.0  ;;  %v786_v4 = vmul.f32 %v1597_v28, %v1597_v28  ;;  %vm2154_vm11 = vmmov %vm2123_vm0  ;;  %vm354_vm1 = vcmp.lt.s32.totalorder %v290_v13, 512 }
  0x5d   : > { %v685_v30 = vadd.f32 %v684_v14, %v683_v15  ;;  %v845_v14 = vadd.f32 %v844_v32, %v843_v50  ;;  %v414_v15 = vld [vmem:[%s1347_s26 + $0xb8] sm:$0xff]  ;;  %v692_v56 = vsel %vm2150_vm10, %v1735_v25, 0.0  ;;  %v850_v42 = vsel %vm2151_vm12, %v783_v52, 0.0  ;;  %vm2160_vm10 = vmmov %vm2123_vm0 }
  0x5e   : > { %v1744_v50 = vsel %vm350_vm5, %v414_v15, 0.0  ;;  %v291_v52 = vadd.s32 %v2120_v62, %v1670_v59  ;;  %vm2157_vm5 = vmmov %vm2123_vm0  ;;  %v789_v13 = vmul.f32 %v1618_v60, %v1618_v60 }
  0x5f   : > { %v687_v58 = vadd.f32 %v686_v17, %v685_v30  ;;  %v847_v6 = vadd.f32 %v846_v24, %v845_v14  ;;  %v415_v17 = vld [vmem:[%s1347_s26 + $0xc0] sm:$0xff]  ;;  %v785_v30 = vmul.f32 %v1590_v61, %v1590_v61  ;;  %v694_v2 = vsel %vm2152_vm9, %v1744_v50, 0.0  ;;  %vm2162_vm9 = vmmov %vm2123_vm0 }
  0x60   : > { %v852_v61 = vsel %vm2123_vm0, %v784_v5, 0.0  ;;  %v1754_v32 = vsel %vm351_vm8, %v415_v17, 0.0  ;;  %v292_v14 = vadd.s32 %v2120_v62, %v1676_v0  ;;  %vm355_vm4 = vcmp.lt.s32.totalorder %v291_v52, 512  ;;  %vm2159_vm8 = vmmov %vm2123_vm0 }
  0x61   : > { %v689_v21 = vadd.f32 %v688_v33, %v687_v58  ;;  %v849_v19 = vadd.f32 %v848_v18, %v847_v6  ;;  %v416_v33 = vld [vmem:[%s1347_s26 + $0xc8] sm:$0xff]  ;;  %v696_v1 = vsel %vm2153_vm15, %v1754_v32, 0.0  ;;  %v787_v58 = vmul.f32 %v1604_v3, %v1604_v3  ;;  %v418_v18 = vld [vmem:[%s1347_s26 + $0xd8] sm:$0xff]  ;;  %vm2164_vm15 = vmmov %vm2155_vm2 }
  0x62   : > { %v854_v28 = vsel %vm2154_vm11, %v785_v30, 0.0  ;;  %v1764_v15 = vsel %vm352_vm14, %v416_v33, 0.0  ;;  %v856_v3 = vsel %vm2156_vm3, %v786_v4, 0.0  ;;  %v293_v6 = vadd.s32 %v2120_v62, %v1679_v53  ;;  %v419_v30 = vld [vmem:[%s1347_s26 + $0xe0] sm:$0xff]  ;;  %vm2161_vm14 = vmmov %vm2123_vm0 }
  0x63   : > { %v691_v51 = vadd.f32 %v690_v26, %v689_v21  ;;  %v851_v24 = vadd.f32 %v850_v42, %v849_v19  ;;  %v417_v26 = vld [vmem:[%s1347_s26 + $0xd0] sm:$0xff]  ;;  %v698_v63 = vsel %vm2155_vm2, %v1764_v15, 0.0  ;;  %v788_v21 = vmul.f32 %v1611_v20, %v1611_v20 }
  0x64   : > { %v1774_v17 = vsel %vm353_vm13, %v417_v26, 0.0  ;;  %v858_v20 = vsel %vm2158_vm6, %v787_v58, 0.0  ;;  %v1784_v19 = vsel %vm354_vm1, %v418_v18, 0.0  ;;  %vm356_vm7 = vcmp.lt.s32.totalorder %v292_v14, 512  ;;  %v421_v26 = vld [vmem:[%s1347_s26 + $0xf0] sm:$0xff]  ;;  %vm2163_vm13 = vmmov %vm2155_vm2 }
  0x65   : > { %v693_v27 = vadd.f32 %v692_v56, %v691_v51  ;;  %v853_v5 = vadd.f32 %v852_v61, %v851_v24  ;;  %v700_v42 = vsel %vm2157_vm5, %v1774_v17, 0.0  ;;  %v294_v51 = vadd.s32 %v2120_v62, %v1684_v8  ;;  %vm2165_vm1 = vmmov %vm2155_vm2 }
  0x66   : > { %v702_v4 = vsel %vm2159_vm8, %v1784_v19, 0.0  ;;  %v790_v61 = vmul.f32 %v1625_v29, %v1625_v29  ;;  %v860_v60 = vsel %vm2160_vm10, %v788_v21, 0.0  ;;  %v295_v52 = vadd.s32 %v2120_v62, %v1703_v34  ;;  %v422_v62 = vld [vmem:[%s1347_s26 + $0xf8] sm:$0xff]  ;;  %vm2166_vm2 = vmmov %vm2165_vm1 }
  0x67   : > { %v695_v59 = vadd.f32 %v694_v2, %v693_v27  ;;  %v855_v56 = vadd.f32 %v854_v28, %v853_v5  ;;  %v420_v2 = vld [vmem:[%s1347_s26 + $0xe8] sm:$0xff]  ;;  %v1794_v27 = vsel %vm355_vm4, %v419_v30, 0.0  ;;  %vm357_vm12 = vcmp.lt.s32.totalorder %v293_v6, 512  ;;  %vm2167_vm3 = vmmov %vm2165_vm1 }
  0x68   : > { %v791_v58 = vmul.f32 %v1632_v7, %v1632_v7  ;;  %v862_v29 = vsel %vm2162_vm9, %v789_v13, 0.0  ;;  %v1802_v28 = vsel %vm356_vm7, %v420_v2, 0.0  ;;  %vm358_vm0 = vcmp.lt.s32.totalorder %v294_v51, 512  ;;  %vm2168_vm4 = vmmov %vm2165_vm1 }
  0x69   : > { %v697_v0 = vadd.f32 %v696_v1, %v695_v59  ;;  %v857_v33 = vadd.f32 %v856_v3, %v855_v56  ;;  %v704_v1 = vsel %vm2161_vm14, %v1794_v27, 0.0  ;;  %v706_v34 = vsel %vm2163_vm13, %v1802_v28, 0.0  ;;  %v423_v3 = vld [vmem:[%s1347_s26 + $0x100] sm:$0xff]  ;;  %vm2169_vm5 = vmmov %vm2165_vm1 }
  0x6a   : > { %v792_v5 = vmul.f32 %v1639_v23, %v1639_v23  ;;  %v864_v18 = vsel %vm2164_vm15, %v790_v61, 0.0  ;;  %vm359_vm11 = vcmp.lt.s32.totalorder %v295_v52, 512  ;;  %v866_v56 = vsel %vm2166_vm2, %v791_v58, 0.0  ;;  %vm2170_vm6 = vmmov %vm2165_vm1 }
  0x6b   : > { %v699_v53 = vadd.f32 %v698_v63, %v697_v0  ;;  %v859_v24 = vadd.f32 %v858_v20, %v857_v33  ;;  %v1810_v63 = vsel %vm357_vm12, %v421_v26, 0.0  ;;  %v793_v0 = vmul.f32 %v1648_v31, %v1648_v31  ;;  %vm2171_vm7 = vmmov %vm2165_vm1 }
  0x6c   : > { %v708_v6 = vsel %vm2165_vm1, %v1810_v63, 0.0  ;;  %v1818_v30 = vsel %vm358_vm0, %v422_v62, 0.0  ;;  %v794_v20 = vmul.f32 %v1657_v57, %v1657_v57  ;;  %v868_v51 = vsel %vm2168_vm4, %v792_v5, 0.0  ;;  %vm2172_vm8 = vmmov %vm2165_vm1 }
  0x6d   : > { %v701_v8 = vadd.f32 %v700_v42, %v699_v53  ;;  %v861_v59 = vadd.f32 %v860_v60, %v859_v24  ;;  %v710_v13 = vsel %vm2167_vm3, %v1818_v30, 0.0  ;;  %v1825_v53 = vsel %vm359_vm11, %v423_v3, 0.0  ;;  %vm2173_vm10 = vmmov %vm2165_vm1 }
  0x6e   : > { %v712_v31 = vsel %vm2169_vm5, %v1825_v53, 0.0  ;;  %v870_v61 = vsel %vm2170_vm6, %v793_v0, 0.0  ;;  %v796_v57 = vmul.f32 %v1681_v16, %v1681_v16  ;;  %v872_v24 = vsel %vm2172_vm8, %v794_v20, 0.0  ;;  %vm2174_vm12 = vmmov %vm2165_vm1 }
  0x6f   : > { %v703_v14 = vadd.f32 %v702_v4, %v701_v8  ;;  %v863_v7 = vadd.f32 %v862_v29, %v861_v59  ;;  %v795_v4 = vmul.f32 %v1666_v55, %v1666_v55  ;;  %v714_v8 = vsel %vm2171_vm7, %v1423_v12, 0.0  ;;  %vm2175_vm14 = vmmov %vm2165_vm1 }
  0x70   : > { %v716_v58 = vsel %vm2173_vm10, %v1427_v9, 0.0  ;;  %v797_v55 = vmul.f32 %v1692_v49, %v1692_v49  ;;  %v718_v62 = vsel %vm2175_vm14, %v1431_v10, 0.0  ;;  %v798_v16 = vmul.f32 %v1706_v54, %v1706_v54  ;;  %vm2176_vm9 = vmmov %vm2165_vm1 }
  0x71   : > { %v705_v21 = vadd.f32 %v704_v1, %v703_v14  ;;  %v865_v23 = vadd.f32 %v864_v18, %v863_v7  ;;  %v874_v29 = vsel %vm2174_vm12, %v795_v4, 0.0  ;;  %vm2177_vm0 = vmmov %vm2165_vm1  ;;  %v799_v49 = vmul.f32 %v1709_v48, %v1709_v48 }
  0x72   : > { %vm2178_vm13 = vmmov %vm2177_vm0  ;;  %v800_v54 = vmul.f32 %v1725_v47, %v1725_v47  ;;  %v801_v48 = vmul.f32 %v1735_v25, %v1735_v25  ;;  %v802_v47 = vmul.f32 %v1744_v50, %v1744_v50  ;;  %v803_v25 = vmul.f32 %v1754_v32, %v1754_v32 }
  0x73   : > { %v707_v42 = vadd.f32 %v706_v34, %v705_v21  ;;  %v867_v2 = vadd.f32 %v866_v56, %v865_v23  ;;  %v876_v34 = vsel %vm2176_vm9, %v796_v57, 0.0  ;;  %v720_v21 = vsel %vm2177_vm0, %v1435_v11, 0.0  ;;  %vm2179_vm15 = vmmov %vm2177_vm0 }
  0x74   : > { %v878_v7 = vsel %vm2178_vm13, %v797_v55, 0.0  ;;  %v722_v0 = vsel %vm2179_vm15, %v1441_v35, 0.0  ;;  %vm2180_vm11 = vmmov %vm2177_vm0  ;;  %v804_v50 = vmul.f32 %v1764_v15, %v1764_v15  ;;  %v805_v32 = vmul.f32 %v1774_v17, %v1774_v17 }
  0x75   : > { %v709_v33 = vadd.f32 %v708_v6, %v707_v42  ;;  %v869_v52 = vadd.f32 %v868_v51, %v867_v2  ;;  %v880_v56 = vsel %vm2180_vm11, %v798_v16, 0.0  ;;  %vm2181_vm1 = vmmov %vm2177_vm0  ;;  %v806_v15 = vmul.f32 %v1784_v19, %v1784_v19 }
  0x76   : > { %vm2182_vm2 = vmmov %vm2177_vm0  ;;  %v807_v17 = vmul.f32 %v1794_v27, %v1794_v27  ;;  %v808_v19 = vmul.f32 %v1802_v28, %v1802_v28  ;;  %v809_v27 = vmul.f32 %v1810_v63, %v1810_v63  ;;  %v810_v28 = vmul.f32 %v1818_v30, %v1818_v30 }
  0x77   : > { %v711_v60 = vadd.f32 %v710_v13, %v709_v33  ;;  %v871_v1 = vadd.f32 %v870_v61, %v869_v52  ;;  %v724_v13 = vsel %vm2181_vm1, %v1445_v36, 0.0  ;;  %v882_v20 = vsel %vm2182_vm2, %v799_v49, 0.0  ;;  %vm2183_vm3 = vmmov %vm2177_vm0 }
  0x78   : > { %v726_v2 = vsel %vm2183_vm3, %v1449_v37, 0.0  ;;  %vm2184_vm4 = vmmov %vm2177_vm0  ;;  %v811_v63 = vmul.f32 %v1825_v53, %v1825_v53  ;;  %v812_v30 = vmul.f32 %v1423_v12, %v1423_v12  ;;  %v813_v53 = vmul.f32 %v1427_v9, %v1427_v9 }
  0x79   : > { %v713_v26 = vadd.f32 %v712_v31, %v711_v60  ;;  %v873_v59 = vadd.f32 %v872_v24, %v871_v1  ;;  %v884_v31 = vsel %vm2184_vm4, %v800_v54, 0.0  ;;  %vm2185_vm5 = vmmov %vm2177_vm0  ;;  %v814_v12 = vmul.f32 %v1431_v10, %v1431_v10 }
  0x7a   : > { %v728_v60 = vsel %vm2185_vm5, %v1453_v38, 0.0  ;;  %vm2186_vm6 = vmmov %vm2177_vm0  ;;  %v815_v9 = vmul.f32 %v1435_v11, %v1435_v11  ;;  %v816_v10 = vmul.f32 %v1441_v35, %v1441_v35  ;;  %v817_v11 = vmul.f32 %v1445_v36, %v1445_v36 }
  0x7b   : > { %v715_v14 = vadd.f32 %v714_v8, %v713_v26  ;;  %v875_v18 = vadd.f32 %v874_v29, %v873_v59  ;;  %v886_v52 = vsel %vm2186_vm6, %v801_v48, 0.0  ;;  %vm2187_vm7 = vmmov %vm2177_vm0  ;;  %v818_v35 = vmul.f32 %v1449_v37, %v1449_v37 }
  0x7c   : > { %v730_v24 = vsel %vm2187_vm7, %v1459_v39, 0.0  ;;  %vm2188_vm8 = vmmov %vm2177_vm0  ;;  %v819_v36 = vmul.f32 %v1453_v38, %v1453_v38  ;;  %v820_v37 = vmul.f32 %v1459_v39, %v1459_v39  ;;  %v821_v38 = vmul.f32 %v1463_v40, %v1463_v40 }
  0x7d   : > { %v717_v5 = vadd.f32 %v716_v58, %v715_v14  ;;  %v877_v6 = vadd.f32 %v876_v34, %v875_v18  ;;  %v888_v26 = vsel %vm2188_vm8, %v802_v47, 0.0  ;;  %vm2189_vm10 = vmmov %vm2177_vm0  ;;  %v736_v18 = vsel %vm2177_vm0, %v1471_v22, 0.0 }
  0x7e   : > { %v732_v55 = vsel %vm2189_vm10, %v1463_v40, 0.0  ;;  %vm2190_vm12 = vmmov %vm2177_vm0  ;;  %v822_v39 = vmul.f32 %v1467_v41, %v1467_v41  ;;  %v823_v40 = vmul.f32 %v1471_v22, %v1471_v22  ;;  %v825_v22 = vmul.f32 %v1481_v44, %v1481_v44 }
  0x7f   : > { %v719_v3 = vadd.f32 %v718_v62, %v717_v5  ;;  %v879_v23 = vadd.f32 %v878_v7, %v877_v6  ;;  %v890_v29 = vsel %vm2190_vm12, %v803_v25, 0.0  ;;  %vm2191_vm14 = vmmov %vm2177_vm0 }
  0x80   : > { %v734_v62 = vsel %vm2191_vm14, %v1467_v41, 0.0  ;;  %vm2192_vm9 = vmmov %vm2177_vm0  ;;  %v824_v41 = vmul.f32 %v1477_v43, %v1477_v43 }
  0x81   : > { %v721_v42 = vadd.f32 %v720_v21, %v719_v3  ;;  %v881_v33 = vadd.f32 %v880_v56, %v879_v23  ;;  %v892_v16 = vsel %vm2192_vm9, %v804_v50, 0.0  ;;  %vm2193_vm13 = vmmov %vm2177_vm0 }
  0x82   : > { %v894_v21 = vsel %vm2193_vm13, %v805_v32, 0.0  ;;  %vm2194_vm15 = vmmov %vm2177_vm0 }
  0x83   : > { %v723_v51 = vadd.f32 %v722_v0, %v721_v42  ;;  %v883_v61 = vadd.f32 %v882_v20, %v881_v33  ;;  %v738_v3 = vsel %vm2194_vm15, %v1477_v43, 0.0  ;;  %vm2195_vm11 = vmmov %vm2177_vm0  ;;  %v826_v43 = vmul.f32 %v1485_v45, %v1485_v45 }
  0x84   : > { %v896_v6 = vsel %vm2195_vm11, %v806_v15, 0.0  ;;  %vm2196_vm1 = vmmov %vm2177_vm0 }
  0x85   : > { %v725_v4 = vadd.f32 %v724_v13, %v723_v51  ;;  %v885_v57 = vadd.f32 %v884_v31, %v883_v61  ;;  %v740_v56 = vsel %vm2196_vm1, %v1481_v44, 0.0  ;;  %vm2197_vm2 = vmmov %vm2177_vm0  ;;  %v2202_v61 = vld [vmem:[#allocation10_spill] sm:$0xff] }
  0x86   : > { %v898_v42 = vsel %vm2197_vm2, %v807_v17, 0.0  ;;  %vm2198_vm3 = vmmov %vm2177_vm0 }
  0x87   : > { %v727_v8 = vadd.f32 %v726_v2, %v725_v4  ;;  %v887_v58 = vadd.f32 %v886_v52, %v885_v57  ;;  %v742_v48 = vsel %vm2198_vm3, %v1485_v45, 0.0  ;;  %vm2199_vm4 = vmmov %vm2177_vm0  ;;  %v2205_v57 = vld [vmem:[#allocation11_spill] sm:$0xff] }
  0x88   : > { %v900_v20 = vsel %vm2199_vm4, %v808_v19, 0.0  ;;  %vm2200_vm5 = vmmov %vm2177_vm0  ;;  %v829_v45 = vmul.f32 %v2205_v57, %v2205_v57 }
  0x89   : > { %v729_v1 = vadd.f32 %v728_v60, %v727_v8  ;;  %v889_v59 = vadd.f32 %v888_v26, %v887_v58  ;;  %v744_v2 = vsel %vm2200_vm5, %v1489_v46, 0.0  ;;  %vm2201_vm6 = vmmov %vm2177_vm0  ;;  %v2208_v58 = vld [vmem:[#allocation12_spill] sm:$0xff] }
  0x8a   : > { %v902_v47 = vsel %vm2201_vm6, %v809_v27, 0.0  ;;  %vm2203_vm7 = vmmov %vm2177_vm0 }
  0x8b   : > { %v731_v14 = vadd.f32 %v730_v24, %v729_v1  ;;  %v891_v5 = vadd.f32 %v890_v29, %v889_v59  ;;  %v746_v60 = vsel %vm2203_vm7, %v2202_v61, 0.0  ;;  %vm2204_vm8 = vmmov %vm2177_vm0  ;;  %v2211_v59 = vld [vmem:[#allocation13_spill] sm:$0xff] }
  0x8c   : > { %v904_v25 = vsel %vm2204_vm8, %v810_v28, 0.0  ;;  %vm2206_vm10 = vmmov %vm2177_vm0 }
  0x8d   : > { %v733_v34 = vadd.f32 %v732_v55, %v731_v14  ;;  %v893_v7 = vadd.f32 %v892_v16, %v891_v5  ;;  %v748_v24 = vsel %vm2206_vm10, %v2205_v57, 0.0  ;;  %vm2207_vm12 = vmmov %vm2177_vm0  ;;  %v2213_v5 = vld [vmem:[#allocation14_spill] sm:$0xff] }
  0x8e   : > { %v906_v50 = vsel %vm2207_vm12, %v811_v63, 0.0  ;;  %vm2209_vm14 = vmmov %vm2177_vm0  ;;  %v832_v57 = vmul.f32 %v2213_v5, %v2213_v5 }
  0x8f   : > { %v735_v49 = vadd.f32 %v734_v62, %v733_v34  ;;  %v895_v54 = vadd.f32 %v894_v21, %v893_v7  ;;  %v750_v55 = vsel %vm2209_vm14, %v2208_v58, 0.0  ;;  %vm2210_vm9 = vmmov %vm2177_vm0  ;;  %v752_v62 = vsel %vm2177_vm0, %v2211_v59, 0.0  ;;  %v2216_v7 = vld [vmem:[#allocation15_spill] sm:$0xff] }
  0x90   : > { %v908_v32 = vsel %vm2210_vm9, %v812_v30, 0.0  ;;  %vm2212_vm13 = vmmov %vm2177_vm0 }
  0x91   : > { %v737_v0 = vadd.f32 %v736_v18, %v735_v49  ;;  %v897_v13 = vadd.f32 %v896_v6, %v895_v54  ;;  %v910_v15 = vsel %vm2212_vm13, %v813_v53, 0.0  ;;  %vm2214_vm15 = vmmov %vm2177_vm0  ;;  %v2219_v54 = vld [vmem:[#allocation16_spill] sm:$0xff] }
  0x92   : > { %v754_v18 = vsel %vm2214_vm15, %v2213_v5, 0.0  ;;  %vm2215_vm11 = vmmov %vm2177_vm0 }
  0x93   : > { %v739_v23 = vadd.f32 %v738_v3, %v737_v0  ;;  %v899_v33 = vadd.f32 %v898_v42, %v897_v13  ;;  %v912_v17 = vsel %vm2215_vm11, %v814_v12, 0.0  ;;  %vm2217_vm1 = vmmov %vm2177_vm0  ;;  %v2222_v13 = vld [vmem:[#allocation17_spill] sm:$0xff] }
  0x94   : > { %v756_v3 = vsel %vm2217_vm1, %v2216_v7, 0.0  ;;  %vm2218_vm2 = vmmov %vm2177_vm0 }
  0x95   : > { %v741_v51 = vadd.f32 %v740_v56, %v739_v23  ;;  %v901_v4 = vadd.f32 %v900_v20, %v899_v33  ;;  %v914_v19 = vsel %vm2218_vm2, %v815_v9, 0.0  ;;  %vm2220_vm3 = vmmov %vm2177_vm0  ;;  %v2225_v33 = vld [vmem:[#allocation18_spill] sm:$0xff] }
  0x96   : > { %v758_v56 = vsel %vm2220_vm3, %v2219_v54, 0.0  ;;  %vm2221_vm4 = vmmov %vm2177_vm0 }
  0x97   : > { %v743_v31 = vadd.f32 %v742_v48, %v741_v51  ;;  %v903_v8 = vadd.f32 %v902_v47, %v901_v4  ;;  %v916_v27 = vsel %vm2221_vm4, %v816_v10, 0.0  ;;  %vm2223_vm5 = vmmov %vm2177_vm0  ;;  %v2228_v4 = vld [vmem:[#allocation19_spill] sm:$0xff] }
  0x98   : > { %v760_v48 = vsel %vm2223_vm5, %v2222_v13, 0.0  ;;  %vm2224_vm6 = vmmov %vm2177_vm0 }
  0x99   : > { %v745_v52 = vadd.f32 %v744_v2, %v743_v31  ;;  %v905_v1 = vadd.f32 %v904_v25, %v903_v8  ;;  %v918_v28 = vsel %vm2224_vm6, %v817_v11, 0.0  ;;  %vm2226_vm7 = vmmov %vm2177_vm0  ;;  %v2231_v8 = vld [vmem:[#allocation20_spill] sm:$0xff] }
  0x9a   : > { %v762_v2 = vsel %vm2226_vm7, %v2225_v33, 0.0  ;;  %vm2227_vm8 = vmmov %vm2177_vm0 }
  0x9b   : > { %v747_v26 = vadd.f32 %v746_v60, %v745_v52  ;;  %v907_v14 = vadd.f32 %v906_v50, %v905_v1  ;;  %v920_v63 = vsel %vm2227_vm8, %v818_v35, 0.0  ;;  %vm2229_vm10 = vmmov %vm2177_vm0  ;;  %v2234_v1 = vld [vmem:[#allocation21_spill] sm:$0xff] }
  0x9c   : > { %v764_v60 = vsel %vm2229_vm10, %v2228_v4, 0.0  ;;  %vm2230_vm12 = vmmov %vm2177_vm0 }
  0x9d   : > { %v749_v29 = vadd.f32 %v748_v24, %v747_v26  ;;  %v909_v34 = vadd.f32 %v908_v32, %v907_v14  ;;  %v922_v30 = vsel %vm2230_vm12, %v819_v36, 0.0  ;;  %vm2232_vm14 = vmmov %vm2177_vm0  ;;  %v2236_v14 = vld [vmem:[#allocation22_spill] sm:$0xff] }
  0x9e   : > { %v766_v24 = vsel %vm2232_vm14, %v2231_v8, 0.0  ;;  %vm2233_vm9 = vmmov %vm2177_vm0 }
  0x9f   : > { %v751_v16 = vadd.f32 %v750_v55, %v749_v29  ;;  %v911_v49 = vadd.f32 %v910_v15, %v909_v34  ;;  %v924_v53 = vsel %vm2233_vm9, %v820_v37, 0.0  ;;  %v768_v55 = vsel %vm2177_vm0, %v2234_v1, 0.0  ;;  %vm2235_vm13 = vmmov %vm2177_vm0  ;;  %v2239_v34 = vld [vmem:[#allocation23_spill] sm:$0xff] }
  0xa0   : > { %v926_v12 = vsel %vm2235_vm13, %v821_v38, 0.0  ;;  %vm2237_vm15 = vmmov %vm2177_vm0 }
  0xa1   : > { %v753_v21 = vadd.f32 %v752_v62, %v751_v16  ;;  %v913_v0 = vadd.f32 %v912_v17, %v911_v49  ;;  %v770_v62 = vsel %vm2237_vm15, %v2236_v14, 0.0  ;;  %vm2238_vm11 = vmmov %vm2177_vm0  ;;  %v2242_v49 = vld [vmem:[#allocation24_spill] sm:$0xff] }
  0xa2   : > { %v928_v9 = vsel %vm2238_vm11, %v822_v39, 0.0  ;;  %vm2240_vm1 = vmmov %vm2177_vm0  ;;  %v836_v39 = vmul.f32 %v2225_v33, %v2225_v33 }
  0xa3   : > { %v755_v6 = vadd.f32 %v754_v18, %v753_v21  ;;  %v915_v23 = vadd.f32 %v914_v19, %v913_v0  ;;  %v772_v18 = vsel %vm2240_vm1, %v2239_v34, 0.0  ;;  %vm2241_vm2 = vmmov %vm2177_vm0  ;;  %v647_v0 = vld [vmem:[%s1166_s17] sm:$0xff] }
  0xa4   : > { %v930_v10 = vsel %vm2241_vm2, %v823_v40, 0.0  ;;  %vm2243_vm3 = vmmov %vm2177_vm0 }
  0xa5   : > { %v757_v42 = vadd.f32 %v756_v3, %v755_v6  ;;  %v917_v51 = vadd.f32 %v916_v27, %v915_v23  ;;  %v774_v3 = vsel %vm2243_vm3, %v2242_v49, 0.0  ;;  %vm2244_vm4 = vmmov %vm2177_vm0 }
  0xa6   : > { %v932_v11 = vsel %vm2244_vm4, %v824_v41, 0.0  ;;  %vm2245_vm5 = vmmov %vm2177_vm0 }
  0xa7   : > { %v759_v20 = vadd.f32 %v758_v56, %v757_v42  ;;  %v919_v31 = vadd.f32 %v918_v28, %v917_v51  ;;  %v827_v56 = vmul.f32 %v1489_v46, %v1489_v46  ;;  %v934_v44 = vsel %vm2245_vm5, %v825_v22, 0.0  ;;  %vm2246_vm6 = vmmov %vm2177_vm0 }
  0xa8   : > { %v828_v42 = vmul.f32 %v2202_v61, %v2202_v61  ;;  %v936_v23 = vsel %vm2246_vm6, %v826_v43, 0.0  ;;  %vm2247_vm7 = vmmov %vm2177_vm0  ;;  %v830_v46 = vmul.f32 %v2208_v58, %v2208_v58  ;;  %v831_v61 = vmul.f32 %v2211_v59, %v2211_v59 }
  0xa9   : > { %v761_v47 = vadd.f32 %v760_v48, %v759_v20  ;;  %v921_v52 = vadd.f32 %v920_v63, %v919_v31  ;;  %v938_v28 = vsel %vm2247_vm7, %v827_v56, 0.0  ;;  %vm2248_vm8 = vmmov %vm2177_vm0  ;;  %v948_v59 = vsel %vm2177_vm0, %v832_v57, 0.0 }
  0xaa   : > { %vm2249_vm10 = vmmov %vm2177_vm0 }
  0xab   : > { %v763_v25 = vadd.f32 %v762_v2, %v761_v47  ;;  %v923_v26 = vadd.f32 %v922_v30, %v921_v52  ;;  %v940_v51 = vsel %vm2249_vm10, %v828_v42, 0.0  ;;  %vm2250_vm12 = vmmov %vm2177_vm0  ;;  %v834_v30 = vmul.f32 %v2219_v54, %v2219_v54 }
  0xac   : > { %v942_v37 = vsel %vm2250_vm12, %v829_v45, 0.0  ;;  %vm2251_vm14 = vmmov %vm2177_vm0  ;;  %v835_v52 = vmul.f32 %v2222_v13, %v2222_v13 }
  0xad   : > { %v765_v50 = vadd.f32 %v764_v60, %v763_v25  ;;  %v925_v29 = vadd.f32 %v924_v53, %v923_v26  ;;  %v944_v47 = vsel %vm2251_vm14, %v830_v46, 0.0  ;;  %v833_v60 = vmul.f32 %v2216_v7, %v2216_v7  ;;  %vm2252_vm9 = vmmov %vm2177_vm0 }
  0xae   : > { %v946_v58 = vsel %vm2252_vm9, %v831_v61, 0.0  ;;  %vm2253_vm13 = vmmov %vm2177_vm0 }
  0xaf   : > { %v767_v32 = vadd.f32 %v766_v24, %v765_v50  ;;  %v927_v16 = vadd.f32 %v926_v12, %v925_v29  ;;  %v950_v5 = vsel %vm2253_vm13, %v833_v60, 0.0  ;;  %vm2254_vm15 = vmmov %vm2177_vm0  ;;  %v837_v50 = vmul.f32 %v2228_v4, %v2228_v4 }
  0xb0   : > { %v952_v7 = vsel %vm2254_vm15, %v834_v30, 0.0  ;;  %vm2255_vm11 = vmmov %vm2177_vm0  ;;  %v839_v12 = vmul.f32 %v2234_v1, %v2234_v1  ;;  %v840_v29 = vmul.f32 %v2236_v14, %v2236_v14  ;;  %v842_v1 = vmul.f32 %v2242_v49, %v2242_v49 }
  0xb1   : > { %v769_v15 = vadd.f32 %v768_v55, %v767_v32  ;;  %v929_v21 = vadd.f32 %v928_v9, %v927_v16  ;;  %v954_v54 = vsel %vm2255_vm11, %v835_v52, 0.0  ;;  %v838_v55 = vmul.f32 %v2231_v8, %v2231_v8  ;;  %vm2256_vm1 = vmmov %vm2177_vm0 }
  0xb2   : > { %v956_v13 = vsel %vm2256_vm1, %v836_v39, 0.0  ;;  %vm2257_vm2 = vmmov %vm2177_vm0  ;;  %v841_v8 = vmul.f32 %v2239_v34, %v2239_v34 }
  0xb3   : > { %v771_v17 = vadd.f32 %v770_v62, %v769_v15  ;;  %v931_v6 = vadd.f32 %v930_v10, %v929_v21  ;;  %v958_v33 = vsel %vm2257_vm2, %v837_v50, 0.0  ;;  %vm2258_vm3 = vmmov %vm2177_vm0 }
  0xb4   : > { %v960_v4 = vsel %vm2258_vm3, %v838_v55, 0.0  ;;  %vm2259_vm4 = vmmov %vm2177_vm0 }
  0xb5   : > { %v773_v19 = vadd.f32 %v772_v18, %v771_v17  ;;  %v933_v27 = vadd.f32 %v932_v11, %v931_v6  ;;  %v962_v41 = vsel %vm2259_vm4, %v839_v12, 0.0  ;;  %vm2260_vm5 = vmmov %vm2177_vm0  ;;  %v778_v17 = vld [vmem:[%s1171_s20] sm:$0xff] }
  0xb6   : > { %v964_v15 = vsel %vm2260_vm5, %v840_v29, 0.0  ;;  %vm2261_vm6 = vmmov %vm2177_vm0 }
  0xb7   : > { %v775_v35 = vadd.f32 %v774_v3, %v773_v19  ;;  %v935_v36 = vadd.f32 %v934_v44, %v933_v27  ;;  %v966_v18 = vsel %vm2261_vm6, %v841_v8, 0.0  ;;  %vm2262_vm7 = vmmov %vm2177_vm0 }
  0xb8   : > { %v968_v14 = vsel %vm2262_vm7, %v842_v1, 0.0 }
  0xb9   : > { %v776_v48 = vadd.f32 %v775_v35, %v647_v0  ;;  %v937_v20 = vadd.f32 %v936_v23, %v935_v36 }
  0xbb   : > { %777 = vst.msk [vmem:[%s1166_s17] sm:$0xff] %vm2248_vm8, %v776_v48  ;;  %v939_v2 = vadd.f32 %v938_v28, %v937_v20  ;;  %vm2263_vm8 = vmmov %vm2177_vm0 }
  0xbd   : > { %v941_v63 = vadd.f32 %v940_v51, %v939_v2 }
  0xbf   : > { %v943_v31 = vadd.f32 %v942_v37, %v941_v63 }
  0xc1   : > { %v945_v38 = vadd.f32 %v944_v47, %v943_v31 }
  0xc3   : > { %v947_v25 = vadd.f32 %v946_v58, %v945_v38 }
  0xc5   : > { %v949_v24 = vadd.f32 %v948_v59, %v947_v25 }
  0xc7   : > { %v951_v53 = vadd.f32 %v950_v5, %v949_v24 }
  0xc9   : > { %v953_v26 = vadd.f32 %v952_v7, %v951_v53 }
  0xcb   : > { %v955_v40 = vadd.f32 %v954_v54, %v953_v26 }
  0xcd   : > { %v957_v32 = vadd.f32 %v956_v13, %v955_v40 }
  0xcf   : > { %v959_v62 = vadd.f32 %v958_v33, %v957_v32 }
  0xd1   : > { %v961_v9 = vadd.f32 %v960_v4, %v959_v62 }
  0xd3   : > { %v963_v16 = vadd.f32 %v962_v41, %v961_v9 }
  0xd5   : > { %v965_v22 = vadd.f32 %v964_v15, %v963_v16 }
  0xd7   : > { %v967_v10 = vadd.f32 %v966_v18, %v965_v22 }
  0xd9   : > { %v969_v21 = vadd.f32 %v968_v14, %v967_v10 }
  0xdb   : > { %v970_v3 = vadd.f32 %v969_v21, %v778_v17 }
  0xdd   : > { %971 = vst.msk [vmem:[%s1171_s20] sm:$0xff] %vm2263_vm8, %v970_v3 }
  0xde PF: > { %s13_s11 = sadd.s32 1, %s1123_s11   ;;  %s2264_s9 = smov %s1119_s10 }
  0xdf   : > { %p10_p7 = scmp.ge.s32.totalorder %s13_s11, 4   ;;  %s2265_s10 = smov %s2267_s12 }
  0xe1   :  { %12 = sbr.rel (!%p10_p7) target bundleno = 2 (0x2), region = 70 }

// kernel: dense_bottleneck.4
= control target key start
LH: loop header
LB: loop body
LE: loop exit
PB: predicated region body
PF: predicated region fallthrough
CT: control target
= control target key end

     0   :  { %s2428_s21 = smov 0   ;;  %s2430_s22 = smov 0   ;;  %s3620_s0 = inlined_call_operand.vmem [shape: f32[512,4], index: 0, kind: input, shape index: {}]   ;;  %s3621_s1 = inlined_call_operand.vmem [shape: f32[1,4], index: 1, kind: input, shape index: {}]   ;;  %s3622_s2 = inlined_call_operand.vmem [shape: f32[1,4], index: 2, kind: input, shape index: {}]   ;;  %s3623_s3 = inlined_call_operand.vmem [shape: f32[4,32], index: 3, kind: input, shape index: {}]   ;;  %s3624_s4 = inlined_call_operand.vmem [shape: f32[512,32], index: 4, kind: output, shape index: {0}]   ;;  %s3625_s5 = inlined_call_operand.vmem [shape: f32[16,32], index: 5, kind: output, shape index: {1}]   ;;  %s3626_s6 = inlined_call_operand.vmem [shape: f32[16,32], index: 6, kind: output, shape index: {2}]  }
   0x1   :  { %s2432_s23 = smov 0  }
   0x2 LB: > { %s29_s24 = sadd.s32 1, %s2386_s22  ;;  %p2101_p0 = scmp.ge.s32.totalorder %s2390_s23, 1  ;;  %s2390_s23 = sphi %s2432_s23, %s17_s23   ;;  %s2386_s22 = sphi %s2430_s22, %s3628_s22   ;;  %s2382_s21 = sphi %s2428_s21, %s3627_s21  }
   0x3   : > { %p31_p1 = scmp.ge.s32.totalorder %s29_s24, 2  ;;  %p248_p2 = scmp.lt.s32.totalorder %s2390_s23, 3 }
   0x5   : > { %s3630_s24 = smov (%p31_p1, %s29_s24), 0  ;;  %p249_p3 = pnand %p2101_p0, %p248_p2 }
   0x6   : > { %v601_v0 = vld [vmem:[%s3623_s3] sm:$0xf] (!%p249_p3)  ;;  %vm795_vm0 = vcmask (!%p249_p3), 1043456   ;;  %p293_p4 = scmp.lt.s32.totalorder (!%p249_p3), %s2382_s21, 0  ;;  %vm602_vm1 = vcmask (!%p249_p3), 31744   ;;  %s2175_s13 = sshll.u32 (!%p249_p3), %s2382_s21, 9 }
   0x7   : > { %252 = sbr.rel (%p249_p3) target bundleno = 383 (0x17f), region = 36  ;;  %2243 = vmatprep.subr.msk.mxu0 (!%p249_p3), %vm795_vm0, %v601_v0  ;;  %2341 = vmatprep.subr.msk.mxu1 (!%p249_p3), %vm795_vm0, %v601_v0  ;;  %v2459_v1 = vld [vmem:[%s3621_s1] ss:$0 sm:$0xff] (!%p249_p3)  ;;  %p316_p6 = scmp.lt.s32.totalorder (!%p249_p3), %s2382_s21, 1  ;;  %vm328_vm2 = vcmask (!%p249_p3), 261120  }
   0x8   : > { %2244 = vmatpush3.msk.msra.mxu0 (!%p249_p3), %vm795_vm0, %v601_v0  ;;  %2342 = vmatpush3.msk.msra.mxu1 (!%p249_p3), %vm795_vm0, %v601_v0  ;;  %v2471_v2 = vld [vmem:[%s3622_s2] ss:$0 sm:$0xff] (!%p249_p3) }
   0xe   : > { %s294_s27 = scalar_select %p293_p4, %s2382_s21, 0 }
   0xf   : > { %s3634_s21 = smov (!%p316_p6, %s2382_s21), 1 }
  0x10   : > { %s2102_s28 = sshll.u32 %s294_s27, 6  ;;  %s2106_s14 = sshll.u32 %s3634_s21, 3 }
  0x11   : > { %p296_p5 = scmp.lt.s32.totalorder %s2102_s28, 63  ;;  %s2840_s17 = scalar_lea.vmem %s3625_s5, %s2106_s14 }
  0x12   : > { %s2858_s26 = scalar_lea.vmem %s3626_s6, %s2106_s14 }
  0x13   : > { %s3632_s28 = smov (!%p296_p5, %s2102_s28), 63 }
  0x14   : > { %s2103_s29 = sshll.u32 %s3632_s28, 3 }
  0x15   : > { %s2466_s10 = scalar_lea.vmem %s3620_s0, %s2103_s29  ;;  %s2850_s20 = scalar_lea.vmem %s3624_s4, %s2103_s29 }
  0x16   : > { %v331_v3 = vld [vmem:[%s2466_s10] sm:$0xff]  ;;  %v332_v4 = vld [vmem:[%s2466_s10 + $0x8] sm:$0xff]  ;;  %v333_v5 = vld [vmem:[%s2466_s10 + $0x10] sm:$0xff] }
  0x17   : > { %v402_v6 = vmul.f32 %v2459_v1, %v331_v3  ;;  %v403_v7 = vmul.f32 %v2459_v1, %v332_v4  ;;  %v404_v8 = vmul.f32 %v2459_v1, %v333_v5  ;;  %v334_v9 = vld [vmem:[%s2466_s10 + $0x18] sm:$0xff]  ;;  %v335_v10 = vld [vmem:[%s2466_s10 + $0x20] sm:$0xff]  ;;  %v336_v11 = vld [vmem:[%s2466_s10 + $0x28] sm:$0xff] }
  0x18   : > { %v405_v12 = vmul.f32 %v2459_v1, %v334_v9  ;;  %v406_v13 = vmul.f32 %v2459_v1, %v335_v10  ;;  %v337_v14 = vld [vmem:[%s2466_s10 + $0x30] sm:$0xff]  ;;  %v407_v19 = vmul.f32 %v2459_v1, %v336_v11  ;;  %v338_v25 = vld [vmem:[%s2466_s10 + $0x38] sm:$0xff]  ;;  %v339_v26 = vld [vmem:[%s2466_s10 + $0x40] sm:$0xff] }
  0x19   : > { %v473_v15 = vadd.f32 %v2471_v2, %v402_v6  ;;  %v474_v16 = vadd.f32 %v2471_v2, %v403_v7  ;;  %v475_v17 = vadd.f32 %v2471_v2, %v404_v8  ;;  %v408_v20 = vmul.f32 %v2459_v1, %v337_v14  ;;  %v340_v33 = vld [vmem:[%s2466_s10 + $0x48] sm:$0xff]  ;;  %v341_v34 = vld [vmem:[%s2466_s10 + $0x50] sm:$0xff]  ;;  %v342_v38 = vld [vmem:[%s2466_s10 + $0x58] sm:$0xff] }
  0x1a   : > { %v476_v18 = vadd.f32 %v2471_v2, %v405_v12  ;;  %v477_v24 = vadd.f32 %v2471_v2, %v406_v13  ;;  %v478_v28 = vadd.f32 %v2471_v2, %v407_v19  ;;  %v409_v29 = vmul.f32 %v2459_v1, %v338_v25  ;;  %v343_v39 = vld [vmem:[%s2466_s10 + $0x60] sm:$0xff]  ;;  %v344_v40 = vld [vmem:[%s2466_s10 + $0x68] sm:$0xff]  ;;  %v345_v44 = vld [vmem:[%s2466_s10 + $0x70] sm:$0xff] }
  0x1b   : > { %v537_v21 = vmax.f32 %v473_v15, 0.0  ;;  %v538_v22 = vmax.f32 %v474_v16, 0.0  ;;  %v539_v23 = vmax.f32 %v475_v17, 0.0  ;;  %v479_v31 = vadd.f32 %v2471_v2, %v408_v20  ;;  %v346_v53 = vld [vmem:[%s2466_s10 + $0x78] sm:$0xff]  ;;  %v347_v60 = vld [vmem:[%s2466_s10 + $0x80] sm:$0xff]  ;;  %v348_v62 = vld [vmem:[%s2466_s10 + $0x88] sm:$0xff] }
  0x1c   : > { %v540_v27 = vmax.f32 %v476_v18, 0.0  ;;  %v541_v30 = vmax.f32 %v477_v24, 0.0  ;;  %v410_v32 = vmul.f32 %v2459_v1, %v339_v26  ;;  %v542_v35 = vmax.f32 %v478_v28, 0.0  ;;  %v349_v63 = vld [vmem:[%s2466_s10 + $0x90] sm:$0xff]  ;;  %v350_v0 = vld [vmem:[%s2466_s10 + $0x98] sm:$0xff]  ;;  %v363_v3 = vld [vmem:[%s2466_s10 + $0x100] sm:$0xff] }
  0x1d   : > { %2245 = vmatprep.mubr.msk.f32.mxu0 %vm602_vm1, %v537_v21  ;;  %v480_v36 = vadd.f32 %v2471_v2, %v409_v29  ;;  %v411_v37 = vmul.f32 %v2459_v1, %v340_v33  ;;  %v543_v41 = vmax.f32 %v479_v31, 0.0  ;;  %v412_v43 = vmul.f32 %v2459_v1, %v341_v34  ;;  %v364_v4 = vld [vmem:[%s2466_s10 + $0x108] sm:$0xff]  ;;  %v365_v5 = vld [vmem:[%s2466_s10 + $0x110] sm:$0xff]  ;;  %v351_v9 = vld [vmem:[%s2466_s10 + $0xa0] sm:$0xff] }
  0x1e   : > { %2246 = vmatmul.mubr.msk.f32.vlgmr.msra.gmra.mrb[0].mxu0 %vm602_vm1, %v538_v22  ;;  %v481_v42 = vadd.f32 %v2471_v2, %v410_v32  ;;  %v413_v45 = vmul.f32 %v2459_v1, %v342_v38  ;;  %v414_v46 = vmul.f32 %v2459_v1, %v343_v39  ;;  %v415_v47 = vmul.f32 %v2459_v1, %v344_v40  ;;  %v366_v10 = vld [vmem:[%s2466_s10 + $0x118] sm:$0xff]  ;;  %v367_v11 = vld [vmem:[%s2466_s10 + $0x120] sm:$0xff]  ;;  %v352_v16 = vld [vmem:[%s2466_s10 + $0xa8] sm:$0xff] }
  0x1f   : > { %2248 = vmatprep.mubr.msk.f32.mxu0 %vm602_vm1, %v539_v23  ;;  %v544_v48 = vmax.f32 %v480_v36, 0.0  ;;  %v482_v49 = vadd.f32 %v2471_v2, %v411_v37  ;;  %v416_v50 = vmul.f32 %v2459_v1, %v345_v44  ;;  %v483_v52 = vadd.f32 %v2471_v2, %v412_v43  ;;  %v368_v21 = vld [vmem:[%s2466_s10 + $0x128] sm:$0xff]  ;;  %v369_v22 = vld [vmem:[%s2466_s10 + $0x130] sm:$0xff]  ;;  %v354_v33 = vld [vmem:[%s2466_s10 + $0xb8] sm:$0xff] }
  0x20   : > { %v545_v51 = vmax.f32 %v481_v42, 0.0  ;;  %v484_v54 = vadd.f32 %v2471_v2, %v413_v45  ;;  %v485_v55 = vadd.f32 %v2471_v2, %v414_v46  ;;  %v2525_v56 = vadd.f32 %v2471_v2, %v415_v47  ;;  %v353_v28 = vld [vmem:[%s2466_s10 + $0xb0] sm:$0xff]  ;;  %v371_v45 = vld [vmem:[%s2466_s10 + $0x140] sm:$0xff] }
  0x21   : > { %v546_v57 = vmax.f32 %v482_v49, 0.0  ;;  %v2529_v58 = vadd.f32 %v2471_v2, %v416_v50  ;;  %v417_v59 = vmul.f32 %v2459_v1, %v346_v53  ;;  %v547_v61 = vmax.f32 %v483_v52, 0.0 }
  0x22   : > { %2249 = vmatmul.mubr.msk.f32.gmra.mrb[2].mxu0 %vm602_vm1, %v540_v27  ;;  %v548_v6 = vmax.f32 %v484_v54, 0.0  ;;  %v549_v7 = vmax.f32 %v485_v55, 0.0  ;;  %v550_v8 = vmax.f32 %v2525_v56, 0.0  ;;  %v418_v14 = vmul.f32 %v2459_v1, %v347_v60  ;;  %v356_v56 = vld [vmem:[%s2466_s10 + $0xc8] sm:$0xff] }
  0x23   : > { %2251 = vmatprep.mubr.msk.f32.mxu0 %vm602_vm1, %v541_v30  ;;  %v551_v12 = vmax.f32 %v2529_v58, 0.0  ;;  %v2547_v13 = vadd.f32 %v2471_v2, %v417_v59  ;;  %v419_v15 = vmul.f32 %v2459_v1, %v348_v62  ;;  %v420_v17 = vmul.f32 %v2459_v1, %v349_v63  ;;  %v372_v60 = vld [vmem:[%s2466_s10 + $0x148] sm:$0xff] }
  0x24   : > { %v434_v18 = vmul.f32 %v2459_v1, %v363_v3  ;;  %v435_v19 = vmul.f32 %v2459_v1, %v364_v4  ;;  %v436_v20 = vmul.f32 %v2459_v1, %v365_v5  ;;  %v421_v23 = vmul.f32 %v2459_v1, %v350_v0  ;;  %v373_v0 = vld [vmem:[%s2466_s10 + $0x150] sm:$0xff] }
  0x25   : > { %v422_v24 = vmul.f32 %v2459_v1, %v351_v9  ;;  %v437_v25 = vmul.f32 %v2459_v1, %v366_v10  ;;  %v438_v26 = vmul.f32 %v2459_v1, %v367_v11  ;;  %v423_v27 = vmul.f32 %v2459_v1, %v352_v16  ;;  %v375_v9 = vld [vmem:[%s2466_s10 + $0x160] sm:$0xff]  ;;  %v358_v11 = vld [vmem:[%s2466_s10 + $0xd8] sm:$0xff]  ;;  %v384_v16 = vld [vmem:[%s2466_s10 + $0x1a8] sm:$0xff] }
  0x26   : > { %2252 = vmatmul.mubr.msk.f32.gmra.mrb[4].mxu0 %vm602_vm1, %v542_v35  ;;  %v505_v29 = vadd.f32 %v2471_v2, %v434_v18  ;;  %v506_v30 = vadd.f32 %v2471_v2, %v435_v19  ;;  %v507_v31 = vadd.f32 %v2471_v2, %v436_v20  ;;  %v489_v32 = vadd.f32 %v2471_v2, %v418_v14 }
  0x27   : > { %2254 = vmatprep.mubr.msk.f32.mxu0 %vm602_vm1, %v543_v41  ;;  %v508_v34 = vadd.f32 %v2471_v2, %v437_v25  ;;  %v439_v35 = vmul.f32 %v2459_v1, %v368_v21  ;;  %v440_v36 = vmul.f32 %v2459_v1, %v369_v22  ;;  %v509_v40 = vadd.f32 %v2471_v2, %v438_v26  ;;  %v370_v41 = vld [vmem:[%s2466_s10 + $0x138] sm:$0xff]  ;;  %v385_v25 = vld [vmem:[%s2466_s10 + $0x1b0] sm:$0xff] }
  0x28   : > { %v569_v37 = vmax.f32 %v505_v29, 0.0  ;;  %v570_v38 = vmax.f32 %v506_v30, 0.0  ;;  %v571_v39 = vmax.f32 %v507_v31, 0.0  ;;  %v490_v42 = vadd.f32 %v2471_v2, %v419_v15  ;;  %v376_v29 = vld [vmem:[%s2466_s10 + $0x168] sm:$0xff]  ;;  %v386_v31 = vld [vmem:[%s2466_s10 + $0x1b8] sm:$0xff] }
  0x29   : > { %v2579_v43 = vadd.f32 %v2471_v2, %v420_v17  ;;  %v424_v44 = vmul.f32 %v2459_v1, %v353_v28  ;;  %v552_v46 = vmax.f32 %v2547_v13, 0.0  ;;  %v2585_v47 = vadd.f32 %v2471_v2, %v421_v23 }
  0x2a   : > { %2255 = vmatmul.mubr.msk.f32.gmra.mrb[6].mxu0 %vm602_vm1, %v544_v48  ;;  %v2588_v48 = vadd.f32 %v2471_v2, %v422_v24  ;;  %v425_v49 = vmul.f32 %v2459_v1, %v354_v33  ;;  %2293 = vmatprep.mubr.msk.f32.mxu1 %vm602_vm1, %v569_v37  ;;  %v2594_v50 = vadd.f32 %v2471_v2, %v423_v27  ;;  %v572_v52 = vmax.f32 %v508_v34, 0.0  ;;  %v387_v37 = vld [vmem:[%s2466_s10 + $0x1c0] sm:$0xff] }
  0x2b   : > { %2257 = vmatprep.mubr.msk.f32.mxu0 %vm602_vm1, %v545_v51  ;;  %v355_v51 = vld [vmem:[%s2466_s10 + $0xc0] sm:$0xff]  ;;  %2294 = vmatmul.mubr.msk.f32.vlgmr.msra.gmra.mrb[0].mxu1 %vm602_vm1, %v570_v38  ;;  %v510_v53 = vadd.f32 %v2471_v2, %v439_v35  ;;  %v441_v54 = vmul.f32 %v2459_v1, %v370_v41  ;;  %v553_v55 = vmax.f32 %v489_v32, 0.0  ;;  %v511_v58 = vadd.f32 %v2471_v2, %v440_v36  ;;  %v377_v36 = vld [vmem:[%s2466_s10 + $0x170] sm:$0xff]  ;;  %v388_v38 = vld [vmem:[%s2466_s10 + $0x1c8] sm:$0xff] }
  0x2c   : > { %2296 = vmatprep.mubr.msk.f32.mxu1 %vm602_vm1, %v571_v39  ;;  %v442_v59 = vmul.f32 %v2459_v1, %v371_v45  ;;  %v555_v62 = vmax.f32 %v2579_v43, 0.0  ;;  %v2608_v63 = vadd.f32 %v2471_v2, %v424_v44  ;;  %v556_v3 = vmax.f32 %v2585_v47, 0.0  ;;  %v389_v43 = vld [vmem:[%s2466_s10 + $0x1d0] sm:$0xff]  ;;  %v390_v44 = vld [vmem:[%s2466_s10 + $0x1d8] sm:$0xff] }
  0x2d   : > { %v557_v4 = vmax.f32 %v2588_v48, 0.0  ;;  %v2614_v5 = vadd.f32 %v2471_v2, %v425_v49  ;;  %v427_v10 = vmul.f32 %v2459_v1, %v356_v56  ;;  %v574_v13 = vmax.f32 %v510_v53, 0.0  ;;  %v392_v56 = vld [vmem:[%s2466_s10 + $0x1e8] sm:$0xff]  ;;  %v379_v48 = vld [vmem:[%s2466_s10 + $0x180] sm:$0xff] }
  0x2e   : > { %2258 = vmatmul.mubr.msk.f32.gmra.mrb[8].mxu0 %vm602_vm1, %v546_v57  ;;  %v573_v57 = vmax.f32 %v509_v40, 0.0  ;;  %v512_v14 = vadd.f32 %v2471_v2, %v441_v54  ;;  %v443_v15 = vmul.f32 %v2459_v1, %v372_v60  ;;  %v558_v17 = vmax.f32 %v2594_v50, 0.0 }
  0x2f   : > { %2260 = vmatprep.mubr.msk.f32.mxu0 %vm602_vm1, %v547_v61  ;;  %v554_v61 = vmax.f32 %v490_v42, 0.0  ;;  %2297 = vmatmul.mubr.msk.f32.gmra.mrb[2].mxu1 %vm602_vm1, %v572_v52  ;;  %v575_v18 = vmax.f32 %v511_v58, 0.0  ;;  %v513_v19 = vadd.f32 %v2471_v2, %v442_v59  ;;  %v444_v20 = vmul.f32 %v2459_v1, %v373_v0  ;;  %v378_v0 = vld [vmem:[%s2466_s10 + $0x178] sm:$0xff] }
  0x30   : > { %2299 = vmatprep.mubr.msk.f32.mxu1 %vm602_vm1, %v573_v57  ;;  %v559_v21 = vmax.f32 %v2608_v63, 0.0  ;;  %v446_v24 = vmul.f32 %v2459_v1, %v375_v9  ;;  %v560_v26 = vmax.f32 %v2614_v5, 0.0  ;;  %v2640_v27 = vmul.f32 %v2459_v1, %v358_v11 }
  0x31   : > { %v455_v30 = vmul.f32 %v2459_v1, %v384_v16  ;;  %v2653_v33 = vadd.f32 %v2471_v2, %v427_v10  ;;  %v576_v34 = vmax.f32 %v512_v14, 0.0  ;;  %v514_v35 = vadd.f32 %v2471_v2, %v443_v15  ;;  %v360_v16 = vld [vmem:[%s2466_s10 + $0xe8] sm:$0xff] }
  0x32   : > { %2261 = vmatmul.mubr.msk.f32.gmra.mrb[10].mxu0 %vm602_vm1, %v548_v6  ;;  %v426_v6 = vmul.f32 %v2459_v1, %v355_v51  ;;  %v577_v39 = vmax.f32 %v513_v19, 0.0  ;;  %v515_v40 = vadd.f32 %v2471_v2, %v444_v20  ;;  %v456_v42 = vmul.f32 %v2459_v1, %v385_v25  ;;  %v391_v51 = vld [vmem:[%s2466_s10 + $0x1e0] sm:$0xff]  ;;  %v380_v25 = vld [vmem:[%s2466_s10 + $0x188] sm:$0xff] }
  0x33   : > { %2263 = vmatprep.mubr.msk.f32.mxu0 %vm602_vm1, %v549_v7  ;;  %v357_v7 = vld [vmem:[%s2466_s10 + $0xd0] sm:$0xff]  ;;  %2300 = vmatmul.mubr.msk.f32.gmra.mrb[4].mxu1 %vm602_vm1, %v574_v13  ;;  %v2664_v41 = vadd.f32 %v2471_v2, %v455_v30  ;;  %v447_v47 = vmul.f32 %v2459_v1, %v376_v29  ;;  %v457_v49 = vmul.f32 %v2459_v1, %v386_v31  ;;  %v578_v57 = vmax.f32 %v514_v35, 0.0 }
  0x34   : > { %v428_v22 = vmul.f32 %v2459_v1, %v357_v7  ;;  %v2650_v32 = vadd.f32 %v2471_v2, %v426_v6  ;;  %2302 = vmatprep.mubr.msk.f32.mxu1 %vm602_vm1, %v575_v18  ;;  %v448_v52 = vmul.f32 %v2459_v1, %v377_v36  ;;  %v2678_v53 = vadd.f32 %v2471_v2, %v456_v42  ;;  %v361_v18 = vld [vmem:[%s2466_s10 + $0xf0] sm:$0xff]  ;;  %v362_v36 = vld [vmem:[%s2466_s10 + $0xf8] sm:$0xff] }
  0x35   : > { %v458_v54 = vmul.f32 %v2459_v1, %v387_v37  ;;  %v2686_v58 = vadd.f32 %v2471_v2, %v457_v49  ;;  %v460_v59 = vmul.f32 %v2459_v1, %v389_v43  ;;  %v461_v60 = vmul.f32 %v2459_v1, %v390_v44  ;;  %v381_v30 = vld [vmem:[%s2466_s10 + $0x190] sm:$0xff] }
  0x36   : > { %2264 = vmatmul.mubr.msk.f32.gmra.mrb[12].mxu0 %vm602_vm1, %v550_v8  ;;  %v374_v8 = vld [vmem:[%s2466_s10 + $0x158] sm:$0xff]  ;;  %v462_v7 = vmul.f32 %v2459_v1, %v391_v51  ;;  %v499_v9 = vadd.f32 %v2471_v2, %v428_v22  ;;  %v463_v11 = vmul.f32 %v2459_v1, %v392_v56  ;;  %v518_v13 = vadd.f32 %v2471_v2, %v447_v47 }
  0x37   : > { %2266 = vmatprep.mubr.msk.f32.mxu0 %vm602_vm1, %v551_v12  ;;  %v359_v12 = vld [vmem:[%s2466_s10 + $0xe0] sm:$0xff]  ;;  %v445_v23 = vmul.f32 %v2459_v1, %v374_v8  ;;  %2303 = vmatmul.mubr.msk.f32.gmra.mrb[6].mxu1 %vm602_vm1, %v576_v34  ;;  %v394_v8 = vld [vmem:[%s2466_s10 + $0x1f8] sm:$0xff]  ;;  %v2710_v10 = vadd.f32 %v2471_v2, %v461_v60  ;;  %v449_v20 = vmul.f32 %v2459_v1, %v378_v0  ;;  %v562_v35 = vmax.f32 %v2653_v33, 0.0 }
  0x38   : > { %v2643_v28 = vmul.f32 %v2459_v1, %v359_v12  ;;  %2305 = vmatprep.mubr.msk.f32.mxu1 %vm602_vm1, %v577_v39  ;;  %v561_v12 = vmax.f32 %v2650_v32, 0.0  ;;  %v2716_v14 = vadd.f32 %v2471_v2, %v462_v7  ;;  %v2727_v22 = vadd.f32 %v2471_v2, %v463_v11  ;;  %v383_v33 = vld [vmem:[%s2466_s10 + $0x1a0] sm:$0xff] }
  0x39   : > { %v516_v45 = vadd.f32 %v2471_v2, %v445_v23  ;;  %v465_v23 = vmul.f32 %v2459_v1, %v394_v8  ;;  %v500_v63 = vadd.f32 %v2471_v2, %v2640_v27  ;;  %v431_v32 = vmul.f32 %v2459_v1, %v360_v16 }
  0x3a   : > { %2267 = vmatmul.mubr.msk.f32.gmra.mrb[14].mxu0 %vm602_vm1, %v552_v46  ;;  %v2671_v46 = vadd.f32 %v2471_v2, %v446_v24  ;;  %v450_v24 = vmul.f32 %v2459_v1, %v379_v48  ;;  %v432_v34 = vmul.f32 %v2459_v1, %v361_v18  ;;  %v582_v37 = vmax.f32 %v518_v13, 0.0 }
  0x3b   : > { %2269 = vmatprep.mubr.msk.f32.mxu0 %vm602_vm1, %v553_v55  ;;  %v459_v55 = vmul.f32 %v2459_v1, %v388_v38  ;;  %2306 = vmatmul.mubr.msk.f32.gmra.mrb[8].mxu1 %vm602_vm1, %v578_v57  ;;  %v580_v19 = vmax.f32 %v516_v45, 0.0  ;;  %v2743_v31 = vadd.f32 %v2471_v2, %v465_v23  ;;  %v520_v27 = vadd.f32 %v2471_v2, %v449_v20 }
  0x3c   : > { %v581_v50 = vmax.f32 %v2671_v46, 0.0  ;;  %v563_v38 = vmax.f32 %v499_v9, 0.0  ;;  %v521_v5 = vadd.f32 %v2471_v2, %v450_v24  ;;  %v502_v42 = vadd.f32 %v2471_v2, %v431_v32 }
  0x3d   : > { %v2700_v6 = vadd.f32 %v2471_v2, %v459_v55  ;;  %v503_v43 = vadd.f32 %v2471_v2, %v432_v34  ;;  %v433_v44 = vmul.f32 %v2459_v1, %v362_v36  ;;  %v564_v45 = vmax.f32 %v500_v63, 0.0 }
  0x3e   : > { %2270 = vmatmul.mubr.msk.f32.gmra.mrb[16].mxu0 %vm602_vm1, %v554_v61  ;;  %v393_v61 = vld [vmem:[%s2466_s10 + $0x1f0] sm:$0xff]  ;;  %v584_v46 = vmax.f32 %v520_v27, 0.0  ;;  %v454_v55 = vmul.f32 %v2459_v1, %v383_v33  ;;  %v566_v56 = vmax.f32 %v502_v42, 0.0  ;;  %v590_v9 = vmax.f32 %v2664_v41, 0.0 }
  0x3f   : > { %2272 = vmatprep.mubr.msk.f32.mxu0 %vm602_vm1, %v555_v62  ;;  %v579_v62 = vmax.f32 %v515_v40, 0.0  ;;  %v464_v15 = vmul.f32 %v2459_v1, %v393_v61  ;;  %v382_v40 = vld [vmem:[%s2466_s10 + $0x198] sm:$0xff]  ;;  %v504_v57 = vadd.f32 %v2471_v2, %v433_v44  ;;  %v567_v61 = vmax.f32 %v503_v43, 0.0 }
  0x40   : > { %v453_v49 = vmul.f32 %v2459_v1, %v382_v40  ;;  %v525_v0 = vadd.f32 %v2471_v2, %v454_v55  ;;  %v592_v48 = vmax.f32 %v2686_v58, 0.0  ;;  %v597_v58 = vmax.f32 %v2716_v14, 0.0 }
  0x41   : > { %2308 = vmatprep.mubr.msk.f32.mxu1 %vm602_vm1, %v579_v62  ;;  %v2739_v29 = vadd.f32 %v2471_v2, %v464_v15  ;;  %v2816_v15 = vstv %s2175_s13  ;;  %v2392_v63 = vmov 0.0  }
  0x42   : > { %2273 = vmatmul.mubr.msk.f32.gmra.mrb[18].mxu0 %vm602_vm1, %v556_v3  ;;  %v2697_v3 = vadd.f32 %v2471_v2, %v458_v54  ;;  %2309 = vmatmul.mubr.msk.f32.gmra.mrb[10].mxu1 %vm602_vm1, %v580_v19  ;;  %v524_v60 = vadd.f32 %v2471_v2, %v453_v49  ;;  %v589_v8 = vmax.f32 %v525_v0, 0.0  ;;  %329 = vst.msk [vmem:[%s2840_s17] sm:$0xff] %vm328_vm2, %v2392_v63  ;;  %330 = vst.msk [vmem:[%s2858_s26] sm:$0xff] %vm328_vm2, %v2392_v63 }
  0x43   : > { %2275 = vmatprep.mubr.msk.f32.mxu0 %vm602_vm1, %v557_v4  ;;  %v2707_v4 = vadd.f32 %v2471_v2, %v460_v59  ;;  %2311 = vmatprep.mubr.msk.f32.mxu1 %vm602_vm1, %v581_v50 }
  0x44   : > { %v588_v7 = vmax.f32 %v524_v60, 0.0  ;;  %v593_v11 = vmax.f32 %v2697_v3, 0.0  ;;  %v598_v3 = vmax.f32 %v2727_v22, 0.0 }
  0x45   : > { %v595_v41 = vmax.f32 %v2707_v4, 0.0  ;;  %v600_v4 = vmax.f32 %v2743_v31, 0.0 }
  0x46   : > { %2276 = vmatmul.mubr.msk.f32.gmra.mrb[20].mxu0 %vm602_vm1, %v558_v17  ;;  %v519_v17 = vadd.f32 %v2471_v2, %v448_v52  ;;  %2312 = vmatmul.mubr.msk.f32.gmra.mrb[12].mxu1 %vm602_vm1, %v582_v37  ;;  %v585_v52 = vmax.f32 %v521_v5, 0.0 }
  0x47   : > { %2278 = vmatprep.mubr.msk.f32.mxu0 %vm602_vm1, %v559_v21  ;;  %v501_v21 = vadd.f32 %v2471_v2, %v2643_v28  ;;  %v451_v28 = vmul.f32 %v2459_v1, %v380_v25 }
  0x48   : > { %v583_v39 = vmax.f32 %v519_v17, 0.0 }
  0x49   : > { %v522_v47 = vadd.f32 %v2471_v2, %v451_v28  ;;  %v565_v51 = vmax.f32 %v501_v21, 0.0 }
  0x4a   : > { %2279 = vmatmul.mubr.msk.f32.gmra.mrb[22].mxu0 %vm602_vm1, %v560_v26  ;;  %v452_v26 = vmul.f32 %v2459_v1, %v381_v30  ;;  %2314 = vmatprep.mubr.msk.f32.mxu1 %vm602_vm1, %v583_v39  ;;  %v568_v1 = vmax.f32 %v504_v57, 0.0 }
  0x4b   : > { %2281 = vmatprep.mubr.msk.f32.mxu0 %vm602_vm1, %v561_v12  ;;  %2315 = vmatmul.mubr.msk.f32.gmra.mrb[14].mxu1 %vm602_vm1, %v584_v46  ;;  %v586_v59 = vmax.f32 %v522_v47, 0.0  ;;  %v594_v12 = vmax.f32 %v2700_v6, 0.0  ;;  %v599_v6 = vmax.f32 %v2739_v29, 0.0 }
  0x4c   : > { %v523_v54 = vadd.f32 %v2471_v2, %v452_v26  ;;  %2317 = vmatprep.mubr.msk.f32.mxu1 %vm602_vm1, %v585_v52  ;;  %v591_v2 = vmax.f32 %v2678_v53, 0.0  ;;  %v596_v53 = vmax.f32 %v2710_v10, 0.0  ;;  %v1251_v10 = vlaneseq }
  0x4e   : > { %2282 = vmatmul.mubr.msk.f32.gmra.mrb[24].mxu0 %vm602_vm1, %v562_v35  ;;  %v587_v62 = vmax.f32 %v523_v54, 0.0  ;;  %v2812_v13 = vshrl.u32 %v1251_v10, 7 }
  0x4f   : > { %2284 = vmatprep.mubr.msk.f32.mxu0 %vm602_vm1, %v563_v38  ;;  %2318 = vmatmul.mubr.msk.f32.gmra.mrb[16].mxu1 %vm602_vm1, %v586_v59 }
  0x50   : > { %2320 = vmatprep.mubr.msk.f32.mxu1 %vm602_vm1, %v587_v62  ;;  %v1253_v14 = vadd.s32 8, %v2812_v13  ;;  %v1255_v16 = vadd.s32 24, %v2812_v13  ;;  %v1254_v18 = vadd.s32 16, %v2812_v13  ;;  %v1257_v19 = vadd.s32 40, %v2812_v13 }
  0x51   : > { %v1256_v20 = vadd.s32 32, %v2812_v13  ;;  %v1259_v23 = vadd.s32 56, %v2812_v13  ;;  %v1317_v50 = vadd.s32 %v2816_v15, %v2812_v13  ;;  %v1258_v24 = vadd.s32 48, %v2812_v13 }
  0x52   : > { %2285 = vmatmul.mubr.msk.f32.gmra.mrb[26].mxu0 %vm602_vm1, %v564_v45  ;;  %v1318_v22 = vadd.s32 %v2816_v15, %v1253_v14  ;;  %v1320_v17 = vadd.s32 %v2816_v15, %v1255_v16  ;;  %v1319_v25 = vadd.s32 %v2816_v15, %v1254_v18  ;;  %v2832_v29 = vadd.s32 %v2816_v15, %v1257_v19 }
  0x53   : > { %2287 = vmatprep.mubr.msk.f32.mxu0 %vm602_vm1, %v565_v51  ;;  %2321 = vmatmul.mubr.msk.f32.gmra.mrb[18].mxu1 %vm602_vm1, %v588_v7  ;;  %v2835_v30 = vadd.s32 %v2816_v15, %v1256_v20  ;;  %v1261_v31 = vadd.s32 72, %v2812_v13  ;;  %v2853_v21 = vadd.s32 %v2816_v15, %v1259_v23  ;;  %vm1381_vm4 = vcmp.lt.s32.totalorder %v1317_v50, 512 }
  0x54   : > { %2323 = vmatprep.mubr.msk.f32.mxu1 %vm602_vm1, %v589_v8  ;;  %vm1382_vm3 = vcmp.lt.s32.totalorder %v1318_v22, 512  ;;  %v2861_v32 = vadd.s32 %v2816_v15, %v1258_v24  ;;  %v1260_v34 = vadd.s32 64, %v2812_v13  ;;  %vm1384_vm5 = vcmp.lt.s32.totalorder %v1320_v17, 512 }
  0x55   : > { %vm1383_vm6 = vcmp.lt.s32.totalorder %v1319_v25, 512  ;;  %vm1386_vm7 = vcmp.lt.s32.totalorder %v2832_v29, 512  ;;  %vm1385_vm8 = vcmp.lt.s32.totalorder %v2835_v30, 512  ;;  %v2871_v27 = vadd.s32 %v2816_v15, %v1261_v31 }
  0x56   : > { %2288 = vmatmul.mubr.msk.f32.gmra.mrb[28].mxu0 %vm602_vm1, %v566_v56  ;;  %v1263_v28 = vadd.s32 88, %v2812_v13  ;;  %v1262_v38 = vadd.s32 80, %v2812_v13  ;;  %vm1388_vm9 = vcmp.lt.s32.totalorder %v2853_v21, 512  ;;  %v1265_v40 = vadd.s32 104, %v2812_v13 }
  0x57   : > { %2290 = vmatprep.mubr.msk.f32.mxu0 %vm602_vm1, %v567_v61  ;;  %2324 = vmatmul.mubr.msk.f32.gmra.mrb[20].mxu1 %vm602_vm1, %v590_v9  ;;  %vm1387_vm10 = vcmp.lt.s32.totalorder %v2861_v32, 512  ;;  %v2884_v43 = vadd.s32 %v2816_v15, %v1260_v34  ;;  %v1264_v44 = vadd.s32 96, %v2812_v13  ;;  %v1267_v49 = vadd.s32 120, %v2812_v13 }
  0x58   : > { %2326 = vmatprep.mubr.msk.f32.mxu1 %vm602_vm1, %v591_v2  ;;  %v1266_v51 = vadd.s32 112, %v2812_v13  ;;  %v2895_v56 = vadd.s32 %v2816_v15, %v1263_v28  ;;  %v1269_v57 = vadd.s32 136, %v2812_v13  ;;  %vm1390_vm11 = vcmp.lt.s32.totalorder %v2871_v27, 512 }
  0x59   : > { %v2903_v61 = vadd.s32 %v2816_v15, %v1262_v38  ;;  %v2906_v62 = vadd.s32 %v2816_v15, %v1265_v40  ;;  %vm1389_vm12 = vcmp.lt.s32.totalorder %v2884_v43, 512  ;;  %v2911_v8 = vadd.s32 %v2816_v15, %v1264_v44 }
  0x5a   : > { %2291 = vmatmul.mubr.msk.f32.gmra.mrb[30].mxu0 %vm602_vm1, %v568_v1  ;;  %vm1392_vm13 = vcmp.lt.s32.totalorder %v2895_v56, 512  ;;  %v1270_v24 = vadd.s32 144, %v2812_v13  ;;  %v1273_v25 = vadd.s32 168, %v2812_v13  ;;  %v1272_v32 = vadd.s32 160, %v2812_v13 }
  0x5b   : > { %2327 = vmatmul.mubr.msk.f32.gmra.mrb[22].mxu1 %vm602_vm1, %v592_v48  ;;  %v2914_v48 = vadd.s32 %v2816_v15, %v1267_v49  ;;  %vm1391_vm14 = vcmp.lt.s32.totalorder %v2903_v61, 512  ;;  %vm1394_vm15 = vcmp.lt.s32.totalorder %v2906_v62, 512  ;;  %vm1393_vm0 = vcmp.lt.s32.totalorder %v2911_v8, 512 }
  0x5c   : > { %2329 = vmatprep.mubr.msk.f32.mxu1 %vm602_vm1, %v593_v11  ;;  %v2917_v11 = vadd.s32 %v2816_v15, %v1266_v51  ;;  %v1275_v49 = vadd.s32 184, %v2812_v13  ;;  %v1277_v43 = vadd.s32 200, %v2812_v13 }
  0x5e   : > { %v3008_v61 = vadd.s32 %v2816_v15, %v1277_v43 }
  0x5f   : > { %2330 = vmatmul.mubr.msk.f32.gmra.mrb[24].mxu1 %vm602_vm1, %v594_v12  ;;  %v1268_v12 = vadd.s32 128, %v2812_v13 }
  0x60   : > { %2332 = vmatprep.mubr.msk.f32.mxu1 %vm602_vm1, %v595_v41 }
  0x61   : > { %v2939_v17 = vadd.s32 %v2816_v15, %v1268_v12 }
  0x63   : > { %2333 = vmatmul.mubr.msk.f32.gmra.mrb[26].mxu1 %vm602_vm1, %v596_v53 }
  0x64   : > { %2335 = vmatprep.mubr.msk.f32.mxu1 %vm602_vm1, %v597_v58 }
  0x67   : > { %2336 = vmatmul.mubr.msk.f32.gmra.mrb[28].mxu1 %vm602_vm1, %v598_v3  ;;  %v2926_v3 = vadd.s32 %v2816_v15, %v1269_v57 }
  0x68   : > { %2338 = vmatprep.mubr.msk.f32.mxu1 %vm602_vm1, %v599_v6  ;;  %v1271_v6 = vadd.s32 152, %v2812_v13 }
  0x6a   : > { %v2949_v34 = vadd.s32 %v2816_v15, %v1271_v6 }
  0x6b   : > { %2339 = vmatmul.mubr.msk.f32.gmra.mrb[30].mxu1 %vm602_vm1, %v600_v4  ;;  %vm1396_vm1 = vcmp.lt.s32.totalorder %v2914_v48, 512 }
  0xf1   : > { %v2247_v35 = vpop.f32.mrb[0].mxu0 }
  0xf2   : > { %1186 = vst.msk [vmem:[%s2850_s20 + $0x8] sm:$0xff] %vm328_vm2, %v2247_v35  ;;  %v1574_v36 = vsel %vm1382_vm3, %v2247_v35, 0.0  ;;  %v865_v37 = vpop.f32.mrb[1].mxu0  ;;  %vm1395_vm3 = vcmp.lt.s32.totalorder %v2917_v11, 512 }
  0xf3   : > { %v1639_v39 = vsel %vm328_vm2, %v1574_v36, 0.0  ;;  %v1769_v5 = vmul.f32 %v1574_v36, %v1574_v36  ;;  %1185 = vst.msk [vmem:[%s2850_s20] sm:$0xff] %vm328_vm2, %v865_v37  ;;  %v1573_v26 = vsel %vm1381_vm4, %v865_v37, 0.0  ;;  %vm1398_vm4 = vcmp.lt.s32.totalorder %v2926_v3, 512 }
  0xf4   : > { %v1638_v33 = vsel %vm328_vm2, %v1573_v26, 0.0  ;;  %v1768_v42 = vmul.f32 %v1573_v26, %v1573_v26 }
  0xf5   : > { %v1833_v45 = vsel %vm328_vm2, %v1769_v5, 0.0  ;;  %v1640_v46 = vadd.f32 %v1639_v39, %v1638_v33  ;;  %v2250_v47 = vpop.f32.mrb[2].mxu0  ;;  %v2961_v33 = vadd.s32 %v2816_v15, %v1270_v24 }
  0xf6   : > { %v1832_v52 = vsel %vm328_vm2, %v1768_v42, 0.0  ;;  %1188 = vst.msk [vmem:[%s2850_s20 + $0x18] sm:$0xff] %vm328_vm2, %v2250_v47  ;;  %v1576_v54 = vsel %vm1384_vm5, %v2250_v47, 0.0  ;;  %v875_v55 = vpop.f32.mrb[3].mxu0  ;;  %v2964_v42 = vadd.s32 %v2816_v15, %v1273_v25  ;;  %vm1397_vm5 = vcmp.lt.s32.totalorder %v2939_v17, 512 }
  0xf7   : > { %v1834_v59 = vadd.f32 %v1833_v45, %v1832_v52  ;;  %1187 = vst.msk [vmem:[%s2850_s20 + $0x10] sm:$0xff] %vm328_vm2, %v875_v55  ;;  %v1575_v60 = vsel %vm1383_vm6, %v875_v55, 0.0  ;;  %v1771_v0 = vmul.f32 %v1576_v54, %v1576_v54  ;;  %v1643_v4 = vsel %vm328_vm2, %v1576_v54, 0.0 }
  0xf8   : > { %v1641_v1 = vsel %vm328_vm2, %v1575_v60, 0.0  ;;  %v1770_v7 = vmul.f32 %v1575_v60, %v1575_v60  ;;  %vm1400_vm6 = vcmp.lt.s32.totalorder %v2949_v34, 512 }
  0xf9   : > { %v1642_v9 = vadd.f32 %v1641_v1, %v1640_v46  ;;  %v2253_v2 = vpop.f32.mrb[4].mxu0  ;;  %v1837_v18 = vsel %vm328_vm2, %v1771_v0, 0.0 }
  0xfa   : > { %v1835_v41 = vsel %vm328_vm2, %v1770_v7, 0.0  ;;  %1190 = vst.msk [vmem:[%s2850_s20 + $0x28] sm:$0xff] %vm328_vm2, %v2253_v2  ;;  %v1578_v53 = vsel %vm1386_vm7, %v2253_v2, 0.0  ;;  %v885_v58 = vpop.f32.mrb[5].mxu0  ;;  %v2983_v7 = vadd.s32 %v2816_v15, %v1272_v32  ;;  %vm1399_vm7 = vcmp.lt.s32.totalorder %v2961_v33, 512 }
  0xfb   : > { %v1836_v10 = vadd.f32 %v1835_v41, %v1834_v59  ;;  %v1773_v14 = vmul.f32 %v1578_v53, %v1578_v53  ;;  %1189 = vst.msk [vmem:[%s2850_s20 + $0x20] sm:$0xff] %vm328_vm2, %v885_v58  ;;  %v1577_v16 = vsel %vm1385_vm8, %v885_v58, 0.0  ;;  %v1644_v19 = vadd.f32 %v1643_v4, %v1642_v9 }
  0xfc   : > { %v1645_v20 = vsel %vm328_vm2, %v1577_v16, 0.0  ;;  %v1772_v22 = vmul.f32 %v1577_v16, %v1577_v16  ;;  %v1647_v35 = vsel %vm328_vm2, %v1578_v53, 0.0  ;;  %v1274_v9 = vadd.s32 176, %v2812_v13 }
  0xfd   : > { %v1838_v23 = vadd.f32 %v1837_v18, %v1836_v10  ;;  %v2256_v50 = vpop.f32.mrb[6].mxu0  ;;  %v1646_v29 = vadd.f32 %v1645_v20, %v1644_v19  ;;  %v1841_v36 = vsel %vm328_vm2, %v1773_v14, 0.0  ;;  %v2993_v58 = vadd.s32 %v2816_v15, %v1275_v49 }
  0xfe   : > { %v1839_v30 = vsel %vm328_vm2, %v1772_v22, 0.0  ;;  %1192 = vst.msk [vmem:[%s2850_s20 + $0x38] sm:$0xff] %vm328_vm2, %v2256_v50  ;;  %v1580_v31 = vsel %vm1388_vm9, %v2256_v50, 0.0  ;;  %v895_v63 = vpop.f32.mrb[7].mxu0  ;;  %v1276_v50 = vadd.s32 192, %v2812_v13  ;;  %v3011_v24 = vpop.f32.mrb[0].mxu1 }
  0xff   : > { %v1840_v37 = vadd.f32 %v1839_v30, %v1838_v23  ;;  %1191 = vst.msk [vmem:[%s2850_s20 + $0x30] sm:$0xff] %vm328_vm2, %v895_v63  ;;  %v1579_v28 = vsel %vm1387_vm10, %v895_v63, 0.0  ;;  %v1775_v38 = vmul.f32 %v1580_v31, %v1580_v31  ;;  %v1648_v21 = vadd.f32 %v1647_v35, %v1646_v29  ;;  %1218 = vst.msk [vmem:[%s2850_s20 + $0x108] sm:$0xff] %vm328_vm2, %v3011_v24  ;;  %v3022_v35 = vpop.f32.mrb[1].mxu1 }
 0x100   : > { %v1649_v39 = vsel %vm328_vm2, %v1579_v28, 0.0  ;;  %v1774_v5 = vmul.f32 %v1579_v28, %v1579_v28  ;;  %v1651_v51 = vsel %vm328_vm2, %v1580_v31, 0.0  ;;  %v3005_v23 = vadd.s32 %v2816_v15, %v1274_v9  ;;  %1217 = vst.msk [vmem:[%s2850_s20 + $0x100] sm:$0xff] %vm328_vm2, %v3022_v35 }
 0x101   : > { %v1842_v26 = vadd.f32 %v1841_v36, %v1840_v37  ;;  %v2259_v40 = vpop.f32.mrb[8].mxu0  ;;  %v1650_v44 = vadd.f32 %v1649_v39, %v1648_v21  ;;  %v1845_v57 = vsel %vm328_vm2, %v1775_v38, 0.0  ;;  %v1279_v63 = vadd.s32 216, %v2812_v13 }
 0x102   : > { %v1843_v45 = vsel %vm328_vm2, %v1774_v5, 0.0  ;;  %1194 = vst.msk [vmem:[%s2850_s20 + $0x48] sm:$0xff] %vm328_vm2, %v2259_v40  ;;  %v1582_v46 = vsel %vm1390_vm11, %v2259_v40, 0.0  ;;  %v905_v47 = vpop.f32.mrb[9].mxu0  ;;  %v3037_v8 = vadd.s32 %v2816_v15, %v1276_v50  ;;  %v1278_v32 = vadd.s32 208, %v2812_v13 }
 0x103   : > { %v1844_v52 = vadd.f32 %v1843_v45, %v1842_v26  ;;  %v1777_v54 = vmul.f32 %v1582_v46, %v1582_v46  ;;  %1193 = vst.msk [vmem:[%s2850_s20 + $0x40] sm:$0xff] %vm328_vm2, %v905_v47  ;;  %v1581_v55 = vsel %vm1389_vm12, %v905_v47, 0.0  ;;  %v1652_v59 = vadd.f32 %v1651_v51, %v1650_v44  ;;  %v3041_v45 = vpop.f32.mrb[2].mxu1 }
 0x104   : > { %v1653_v27 = vsel %vm328_vm2, %v1581_v55, 0.0  ;;  %v1776_v60 = vmul.f32 %v1581_v55, %v1581_v55  ;;  %v1655_v6 = vsel %vm328_vm2, %v1582_v46, 0.0  ;;  %v1281_v44 = vadd.s32 232, %v2812_v13  ;;  %1220 = vst.msk [vmem:[%s2850_s20 + $0x118] sm:$0xff] %vm328_vm2, %v3041_v45 }
 0x105   : > { %v1846_v0 = vadd.f32 %v1845_v57, %v1844_v52  ;;  %v2262_v1 = vpop.f32.mrb[10].mxu0  ;;  %v1654_v2 = vadd.f32 %v1653_v27, %v1652_v59  ;;  %v1849_v4 = vsel %vm328_vm2, %v1777_v54, 0.0  ;;  %v3049_v52 = vadd.s32 %v2816_v15, %v1279_v63  ;;  %v3054_v54 = vpop.f32.mrb[3].mxu1 }
 0x106   : > { %v1847_v12 = vsel %vm328_vm2, %v1776_v60, 0.0  ;;  %1196 = vst.msk [vmem:[%s2850_s20 + $0x58] sm:$0xff] %vm328_vm2, %v2262_v1  ;;  %v1584_v41 = vsel %vm1392_vm13, %v2262_v1, 0.0  ;;  %v915_v53 = vpop.f32.mrb[11].mxu0  ;;  %vm1402_vm8 = vcmp.lt.s32.totalorder %v2964_v42, 512  ;;  %1219 = vst.msk [vmem:[%s2850_s20 + $0x110] sm:$0xff] %vm328_vm2, %v3054_v54  ;;  %v3069_v11 = vadd.s32 %v2816_v15, %v1278_v32 }
 0x107   : > { %v1848_v10 = vadd.f32 %v1847_v12, %v1846_v0  ;;  %1195 = vst.msk [vmem:[%s2850_s20 + $0x50] sm:$0xff] %vm328_vm2, %v915_v53  ;;  %v1583_v14 = vsel %vm1391_vm14, %v915_v53, 0.0  ;;  %v1779_v16 = vmul.f32 %v1584_v41, %v1584_v41  ;;  %v1656_v56 = vadd.f32 %v1655_v6, %v1654_v2 }
 0x108   : > { %v1657_v18 = vsel %vm328_vm2, %v1583_v14, 0.0  ;;  %v1778_v19 = vmul.f32 %v1583_v14, %v1583_v14  ;;  %v1659_v36 = vsel %vm328_vm2, %v1584_v41, 0.0  ;;  %vm1401_vm9 = vcmp.lt.s32.totalorder %v2983_v7, 512  ;;  %v3075_v41 = vpop.f32.mrb[4].mxu1 }
 0x109   : > { %v1850_v20 = vadd.f32 %v1849_v4, %v1848_v10  ;;  %v2265_v22 = vpop.f32.mrb[12].mxu0  ;;  %v1658_v25 = vadd.f32 %v1657_v18, %v1656_v56  ;;  %v1853_v62 = vsel %vm328_vm2, %v1779_v16, 0.0  ;;  %v3072_v2 = vadd.s32 %v2816_v15, %v1281_v44  ;;  %1222 = vst.msk [vmem:[%s2850_s20 + $0x128] sm:$0xff] %vm328_vm2, %v3075_v41  ;;  %v3086_v16 = vpop.f32.mrb[5].mxu1 }
 0x10a   : > { %v1851_v29 = vsel %vm328_vm2, %v1778_v19, 0.0  ;;  %1198 = vst.msk [vmem:[%s2850_s20 + $0x68] sm:$0xff] %vm328_vm2, %v2265_v22  ;;  %v1586_v30 = vsel %vm1394_vm15, %v2265_v22, 0.0  ;;  %v925_v31 = vpop.f32.mrb[13].mxu0  ;;  %v1280_v12 = vadd.s32 224, %v2812_v13  ;;  %v1283_v14 = vadd.s32 248, %v2812_v13 }
 0x10b   : > { %v1852_v37 = vadd.f32 %v1851_v29, %v1850_v20  ;;  %v1781_v28 = vmul.f32 %v1586_v30, %v1586_v30  ;;  %1197 = vst.msk [vmem:[%s2850_s20 + $0x60] sm:$0xff] %vm328_vm2, %v925_v31  ;;  %v1585_v38 = vsel %vm1393_vm0, %v925_v31, 0.0  ;;  %v1660_v21 = vadd.f32 %v1659_v36, %v1658_v25  ;;  %1221 = vst.msk [vmem:[%s2850_s20 + $0x120] sm:$0xff] %vm328_vm2, %v3086_v16  ;;  %v3105_v36 = vpop.f32.mrb[6].mxu1 }
 0x10c   : > { %v1661_v39 = vsel %vm328_vm2, %v1585_v38, 0.0  ;;  %v1780_v5 = vmul.f32 %v1585_v38, %v1585_v38  ;;  %v1663_v55 = vsel %vm328_vm2, %v1586_v30, 0.0  ;;  %vm1404_vm10 = vcmp.lt.s32.totalorder %v2993_v58, 512  ;;  %1224 = vst.msk [vmem:[%s2850_s20 + $0x138] sm:$0xff] %vm328_vm2, %v3105_v36 }
 0x10d   : > { %v1854_v26 = vadd.f32 %v1853_v62, %v1852_v37  ;;  %v2268_v40 = vpop.f32.mrb[14].mxu0  ;;  %v1662_v46 = vadd.f32 %v1661_v39, %v1660_v21  ;;  %v1857_v57 = vsel %vm328_vm2, %v1781_v28, 0.0  ;;  %vm1403_vm11 = vcmp.lt.s32.totalorder %v3005_v23, 512  ;;  %v3118_v39 = vpop.f32.mrb[7].mxu1 }
 0x10e   : > { %v1855_v47 = vsel %vm328_vm2, %v1780_v5, 0.0  ;;  %1200 = vst.msk [vmem:[%s2850_s20 + $0x78] sm:$0xff] %vm328_vm2, %v2268_v40  ;;  %v1588_v49 = vsel %vm1396_vm1, %v2268_v40, 0.0  ;;  %v935_v51 = vpop.f32.mrb[15].mxu0  ;;  %v3101_v17 = vadd.s32 %v2816_v15, %v1280_v12  ;;  %v1282_v31 = vadd.s32 240, %v2812_v13  ;;  %1223 = vst.msk [vmem:[%s2850_s20 + $0x130] sm:$0xff] %vm328_vm2, %v3118_v39 }
 0x10f   : > { %v1856_v59 = vadd.f32 %v1855_v47, %v1854_v26  ;;  %1199 = vst.msk [vmem:[%s2850_s20 + $0x70] sm:$0xff] %vm328_vm2, %v935_v51  ;;  %v1587_v48 = vsel %vm1395_vm3, %v935_v51, 0.0  ;;  %v1783_v27 = vmul.f32 %v1588_v49, %v1588_v49  ;;  %v1664_v60 = vadd.f32 %v1663_v55, %v1662_v46 }
 0x110   : > { %v1665_v0 = vsel %vm328_vm2, %v1587_v48, 0.0  ;;  %v1782_v1 = vmul.f32 %v1587_v48, %v1587_v48  ;;  %v1667_v56 = vsel %vm328_vm2, %v1588_v49, 0.0  ;;  %v1284_v63 = vadd.s32 256, %v2812_v13 }
 0x111   : > { %v1858_v9 = vadd.f32 %v1857_v57, %v1856_v59  ;;  %v2271_v43 = vpop.f32.mrb[16].mxu0  ;;  %v1666_v53 = vadd.f32 %v1665_v0, %v1664_v60  ;;  %v1861_v3 = vsel %vm328_vm2, %v1783_v27, 0.0  ;;  %v3113_v21 = vadd.s32 %v2816_v15, %v1283_v14  ;;  %v3139_v59 = vpop.f32.mrb[8].mxu1 }
 0x112   : > { %v1859_v6 = vsel %vm328_vm2, %v1782_v1, 0.0  ;;  %1202 = vst.msk [vmem:[%s2850_s20 + $0x88] sm:$0xff] %vm328_vm2, %v2271_v43  ;;  %v1590_v4 = vsel %vm1398_vm4, %v2271_v43, 0.0  ;;  %v945_v10 = vpop.f32.mrb[17].mxu0  ;;  %vm1406_vm12 = vcmp.lt.s32.totalorder %v3008_v61, 512  ;;  %vm1405_vm13 = vcmp.lt.s32.totalorder %v3037_v8, 512 }
 0x113   : > { %v1860_v18 = vadd.f32 %v1859_v6, %v1858_v9  ;;  %v1785_v19 = vmul.f32 %v1590_v4, %v1590_v4  ;;  %1201 = vst.msk [vmem:[%s2850_s20 + $0x80] sm:$0xff] %vm328_vm2, %v945_v10  ;;  %v1589_v20 = vsel %vm1397_vm5, %v945_v10, 0.0  ;;  %v1668_v22 = vadd.f32 %v1667_v56, %v1666_v53  ;;  %1226 = vst.msk [vmem:[%s2850_s20 + $0x148] sm:$0xff] %vm328_vm2, %v3139_v59  ;;  %v3150_v9 = vpop.f32.mrb[9].mxu1 }
 0x114   : > { %v1669_v50 = vsel %vm328_vm2, %v1589_v20, 0.0  ;;  %v1784_v25 = vmul.f32 %v1589_v20, %v1589_v20  ;;  %v1671_v5 = vsel %vm328_vm2, %v1590_v4, 0.0  ;;  %v3133_v33 = vadd.s32 %v2816_v15, %v1282_v31  ;;  %1225 = vst.msk [vmem:[%s2850_s20 + $0x140] sm:$0xff] %vm328_vm2, %v3150_v9 }
 0x115   : > { %v1862_v29 = vadd.f32 %v1861_v3, %v1860_v18  ;;  %v2274_v30 = vpop.f32.mrb[18].mxu0  ;;  %v1670_v37 = vadd.f32 %v1669_v50, %v1668_v22  ;;  %v1865_v26 = vsel %vm328_vm2, %v1785_v19, 0.0  ;;  %v1285_v55 = vadd.s32 264, %v2812_v13  ;;  %v3169_v3 = vpop.f32.mrb[10].mxu1 }
 0x116   : > { %v1863_v28 = vsel %vm328_vm2, %v1784_v25, 0.0  ;;  %1204 = vst.msk [vmem:[%s2850_s20 + $0x98] sm:$0xff] %vm328_vm2, %v2274_v30  ;;  %v1592_v38 = vsel %vm1400_vm6, %v2274_v30, 0.0  ;;  %v955_v62 = vpop.f32.mrb[19].mxu0  ;;  %v3137_v57 = vadd.s32 %v2816_v15, %v1284_v63  ;;  %v1287_v1 = vadd.s32 280, %v2812_v13  ;;  %1228 = vst.msk [vmem:[%s2850_s20 + $0x158] sm:$0xff] %vm328_vm2, %v3169_v3 }
 0x117   : > { %v1864_v40 = vadd.f32 %v1863_v28, %v1862_v29  ;;  %1203 = vst.msk [vmem:[%s2850_s20 + $0x90] sm:$0xff] %vm328_vm2, %v955_v62  ;;  %v1591_v34 = vsel %vm1399_vm7, %v955_v62, 0.0  ;;  %v1787_v32 = vmul.f32 %v1592_v38, %v1592_v38  ;;  %v1672_v44 = vadd.f32 %v1671_v5, %v1670_v37  ;;  %v3182_v31 = vpop.f32.mrb[11].mxu1 }
 0x118   : > { %v1673_v46 = vsel %vm328_vm2, %v1591_v34, 0.0  ;;  %v1786_v47 = vmul.f32 %v1591_v34, %v1591_v34  ;;  %v1675_v43 = vsel %vm328_vm2, %v1592_v38, 0.0  ;;  %vm1408_vm14 = vcmp.lt.s32.totalorder %v3049_v52, 512  ;;  %1227 = vst.msk [vmem:[%s2850_s20 + $0x150] sm:$0xff] %vm328_vm2, %v3182_v31 }
 0x119   : > { %v1866_v49 = vadd.f32 %v1865_v26, %v1864_v40  ;;  %v2277_v51 = vpop.f32.mrb[20].mxu0  ;;  %v1674_v48 = vadd.f32 %v1673_v46, %v1672_v44  ;;  %v1869_v42 = vsel %vm328_vm2, %v1787_v32, 0.0  ;;  %vm1407_vm15 = vcmp.lt.s32.totalorder %v3069_v11, 512  ;;  %v3204_v46 = vpop.f32.mrb[12].mxu1 }
 0x11a   : > { %v1867_v27 = vsel %vm328_vm2, %v1786_v47, 0.0  ;;  %1206 = vst.msk [vmem:[%s2850_s20 + $0xa8] sm:$0xff] %vm328_vm2, %v2277_v51  ;;  %v1594_v60 = vsel %vm1402_vm8, %v2277_v51, 0.0  ;;  %v965_v0 = vpop.f32.mrb[21].mxu0  ;;  %v3165_v7 = vadd.s32 %v2816_v15, %v1285_v55  ;;  %v1286_v19 = vadd.s32 272, %v2812_v13  ;;  %1230 = vst.msk [vmem:[%s2850_s20 + $0x168] sm:$0xff] %vm328_vm2, %v3204_v46 }
 0x11b   : > { %v1868_v12 = vadd.f32 %v1867_v27, %v1866_v49  ;;  %v1789_v53 = vmul.f32 %v1594_v60, %v1594_v60  ;;  %1205 = vst.msk [vmem:[%s2850_s20 + $0xa0] sm:$0xff] %vm328_vm2, %v965_v0  ;;  %v1593_v6 = vsel %vm1401_vm9, %v965_v0, 0.0  ;;  %v1676_v4 = vadd.f32 %v1675_v43, %v1674_v48  ;;  %v3216_v27 = vpop.f32.mrb[13].mxu1 }
 0x11c   : > { %v1677_v10 = vsel %vm328_vm2, %v1593_v6, 0.0  ;;  %v1788_v14 = vmul.f32 %v1593_v6, %v1593_v6  ;;  %v1289_v20 = vadd.s32 296, %v2812_v13  ;;  %v3177_v30 = vadd.s32 %v2816_v15, %v1287_v1  ;;  %1229 = vst.msk [vmem:[%s2850_s20 + $0x160] sm:$0xff] %vm328_vm2, %v3216_v27 }
 0x11d   : > { %v1870_v56 = vadd.f32 %v1869_v42, %v1868_v12  ;;  %v2280_v18 = vpop.f32.mrb[22].mxu0  ;;  %v1678_v22 = vadd.f32 %v1677_v10, %v1676_v4  ;;  %v1679_v63 = vsel %vm328_vm2, %v1594_v60, 0.0  ;;  %v1873_v37 = vsel %vm328_vm2, %v1789_v53, 0.0 }
 0x11e   : > { %v1871_v50 = vsel %vm328_vm2, %v1788_v14, 0.0  ;;  %1208 = vst.msk [vmem:[%s2850_s20 + $0xb8] sm:$0xff] %vm328_vm2, %v2280_v18  ;;  %v1596_v25 = vsel %vm1404_vm10, %v2280_v18, 0.0  ;;  %v975_v29 = vpop.f32.mrb[23].mxu0  ;;  %vm1410_vm0 = vcmp.lt.s32.totalorder %v3072_v2, 512  ;;  %vm1413_vm1 = vcmp.lt.s32.totalorder %v3137_v57, 512 }
 0x11f   : > { %v1872_v28 = vadd.f32 %v1871_v50, %v1870_v56  ;;  %1207 = vst.msk [vmem:[%s2850_s20 + $0xb0] sm:$0xff] %vm328_vm2, %v975_v29  ;;  %v1595_v58 = vsel %vm1403_vm11, %v975_v29, 0.0  ;;  %v1791_v38 = vmul.f32 %v1596_v25, %v1596_v25  ;;  %v1680_v62 = vadd.f32 %v1679_v63, %v1678_v22  ;;  %v3235_v56 = vpop.f32.mrb[14].mxu1 }
 0x120   : > { %v1681_v5 = vsel %vm328_vm2, %v1595_v58, 0.0  ;;  %v1790_v26 = vmul.f32 %v1595_v58, %v1595_v58  ;;  %vm1409_vm3 = vcmp.lt.s32.totalorder %v3101_v17, 512  ;;  %v3198_v23 = vadd.s32 %v2816_v15, %v1286_v19  ;;  %1232 = vst.msk [vmem:[%s2850_s20 + $0x178] sm:$0xff] %vm328_vm2, %v3235_v56 }
 0x121   : > { %v1874_v40 = vadd.f32 %v1873_v37, %v1872_v28  ;;  %v2283_v34 = vpop.f32.mrb[24].mxu0  ;;  %v3201_v32 = vadd.s32 %v2816_v15, %v1289_v20  ;;  %v1288_v44 = vadd.s32 288, %v2812_v13  ;;  %v1682_v47 = vadd.f32 %v1681_v5, %v1680_v62 }
 0x122   : > { %v1875_v49 = vsel %vm328_vm2, %v1790_v26, 0.0  ;;  %1210 = vst.msk [vmem:[%s2850_s20 + $0xc8] sm:$0xff] %vm328_vm2, %v2283_v34  ;;  %v1598_v51 = vsel %vm1406_vm12, %v2283_v34, 0.0  ;;  %v985_v55 = vpop.f32.mrb[25].mxu0  ;;  %vm1414_vm4 = vcmp.lt.s32.totalorder %v3165_v7, 512  ;;  %v1291_v48 = vadd.s32 312, %v2812_v13 }
 0x123   : > { %v1683_v60 = vsel %vm328_vm2, %v1596_v25, 0.0  ;;  %v1876_v0 = vadd.f32 %v1875_v49, %v1874_v40  ;;  %v1793_v1 = vmul.f32 %v1598_v51, %v1598_v51  ;;  %1209 = vst.msk [vmem:[%s2850_s20 + $0xc0] sm:$0xff] %vm328_vm2, %v985_v55  ;;  %v1597_v61 = vsel %vm1405_vm13, %v985_v55, 0.0  ;;  %v3249_v25 = vpop.f32.mrb[15].mxu1 }
 0x124   : > { %vm1412_vm5 = vcmp.lt.s32.totalorder %v3113_v21, 512  ;;  %v1877_v43 = vsel %vm328_vm2, %v1791_v38, 0.0  ;;  %v1684_v12 = vadd.f32 %v1683_v60, %v1682_v47  ;;  %v1685_v53 = vsel %vm328_vm2, %v1597_v61, 0.0  ;;  %1231 = vst.msk [vmem:[%s2850_s20 + $0x170] sm:$0xff] %vm328_vm2, %v3249_v25 }
 0x125   : > { %v1792_v6 = vmul.f32 %v1597_v61, %v1597_v61  ;;  %vm1411_vm6 = vcmp.lt.s32.totalorder %v3133_v33, 512  ;;  %v1878_v42 = vadd.f32 %v1877_v43, %v1876_v0  ;;  %v2286_v4 = vpop.f32.mrb[26].mxu0  ;;  %v3231_v8 = vadd.s32 %v2816_v15, %v1288_v44  ;;  %v3269_v44 = vpop.f32.mrb[16].mxu1 }
 0x126   : > { %v1290_v10 = vadd.s32 304, %v2812_v13  ;;  %v1293_v14 = vadd.s32 328, %v2812_v13  ;;  %v1686_v18 = vadd.f32 %v1685_v53, %v1684_v12  ;;  %1212 = vst.msk [vmem:[%s2850_s20 + $0xd8] sm:$0xff] %vm328_vm2, %v2286_v4  ;;  %v1600_v20 = vsel %vm1408_vm14, %v2286_v4, 0.0  ;;  %v995_v22 = vpop.f32.mrb[27].mxu0  ;;  %1234 = vst.msk [vmem:[%s2850_s20 + $0x188] sm:$0xff] %vm328_vm2, %v3269_v44 }
 0x127   : > { %v1879_v19 = vsel %vm328_vm2, %v1792_v6, 0.0  ;;  %vm1415_vm7 = vcmp.lt.s32.totalorder %v3198_v23, 512  ;;  %v3244_v50 = vadd.s32 %v2816_v15, %v1291_v48  ;;  %v1687_v29 = vsel %vm328_vm2, %v1598_v51, 0.0  ;;  %1211 = vst.msk [vmem:[%s2850_s20 + $0xd0] sm:$0xff] %vm328_vm2, %v995_v22  ;;  %v3283_v60 = vpop.f32.mrb[17].mxu1 }
 0x128   : > { %v1881_v63 = vsel %vm328_vm2, %v1793_v1, 0.0  ;;  %v1880_v37 = vadd.f32 %v1879_v19, %v1878_v42  ;;  %v1599_v52 = vsel %vm1407_vm15, %v995_v22, 0.0  ;;  %v1795_v28 = vmul.f32 %v1600_v20, %v1600_v20  ;;  %1233 = vst.msk [vmem:[%s2850_s20 + $0x180] sm:$0xff] %vm328_vm2, %v3283_v60 }
 0x129   : > { %v1688_v58 = vadd.f32 %v1687_v29, %v1686_v18  ;;  %v1689_v38 = vsel %vm328_vm2, %v1599_v52, 0.0  ;;  %v1794_v62 = vmul.f32 %v1599_v52, %v1599_v52  ;;  %vm1416_vm8 = vcmp.lt.s32.totalorder %v3177_v30, 512  ;;  %v2289_v26 = vpop.f32.mrb[28].mxu0 }
 0x12a   : > { %v1882_v5 = vadd.f32 %v1881_v63, %v1880_v37  ;;  %v3263_v40 = vadd.s32 %v2816_v15, %v1290_v10  ;;  %v3266_v11 = vadd.s32 %v2816_v15, %v1293_v14  ;;  %v1292_v34 = vadd.s32 320, %v2812_v13  ;;  %1214 = vst.msk [vmem:[%s2850_s20 + $0xe8] sm:$0xff] %vm328_vm2, %v2289_v26  ;;  %v1005_v55 = vpop.f32.mrb[29].mxu0  ;;  %v3303_v10 = vpop.f32.mrb[18].mxu1 }
 0x12b   : > { %v1690_v47 = vadd.f32 %v1689_v38, %v1688_v58  ;;  %v1883_v49 = vsel %vm328_vm2, %v1794_v62, 0.0  ;;  %v1602_v51 = vsel %vm1410_vm0, %v2289_v26, 0.0  ;;  %v1605_v48 = vsel %vm1413_vm1, %v3022_v35, 0.0  ;;  %1213 = vst.msk [vmem:[%s2850_s20 + $0xe0] sm:$0xff] %vm328_vm2, %v1005_v55  ;;  %1236 = vst.msk [vmem:[%s2850_s20 + $0x198] sm:$0xff] %vm328_vm2, %v3303_v10 }
 0x12c   : > { %vm1417_vm9 = vcmp.lt.s32.totalorder %v3231_v8, 512  ;;  %v1691_v0 = vsel %vm328_vm2, %v1600_v20, 0.0  ;;  %v1884_v1 = vadd.f32 %v1883_v49, %v1882_v5  ;;  %v1797_v61 = vmul.f32 %v1602_v51, %v1602_v51  ;;  %v3314_v20 = vpop.f32.mrb[19].mxu1 }
 0x12d   : > { %v1601_v2 = vsel %vm1409_vm3, %v1005_v55, 0.0  ;;  %v1885_v35 = vsel %vm328_vm2, %v1795_v28, 0.0  ;;  %v1692_v57 = vadd.f32 %v1691_v0, %v1690_v47  ;;  %v2292_v6 = vpop.f32.mrb[30].mxu0  ;;  %v1606_v42 = vsel %vm1414_vm4, %v3011_v24, 0.0  ;;  %1235 = vst.msk [vmem:[%s2850_s20 + $0x190] sm:$0xff] %vm328_vm2, %v3314_v20  ;;  %v3334_v26 = vpop.f32.mrb[20].mxu1 }
 0x12e   : > { %v1693_v43 = vsel %vm328_vm2, %v1601_v2, 0.0  ;;  %v1796_v12 = vmul.f32 %v1601_v2, %v1601_v2  ;;  %v1886_v53 = vadd.f32 %v1885_v35, %v1884_v1  ;;  %vm1418_vm10 = vcmp.lt.s32.totalorder %v3201_v32, 512  ;;  %1216 = vst.msk [vmem:[%s2850_s20 + $0xf8] sm:$0xff] %vm328_vm2, %v2292_v6  ;;  %v1015_v24 = vpop.f32.mrb[31].mxu0  ;;  %1238 = vst.msk [vmem:[%s2850_s20 + $0x1a8] sm:$0xff] %vm328_vm2, %v3334_v26 }
 0x12f   : > { %v3300_v17 = vadd.s32 %v2816_v15, %v1292_v34  ;;  %v1294_v4 = vadd.s32 336, %v2812_v13  ;;  %v1694_v14 = vadd.f32 %v1693_v43, %v1692_v57  ;;  %v1604_v7 = vsel %vm1412_vm5, %v2292_v6, 0.0  ;;  %1215 = vst.msk [vmem:[%s2850_s20 + $0xf0] sm:$0xff] %vm328_vm2, %v1015_v24 }
 0x130   : > { %v1887_v18 = vsel %vm328_vm2, %v1796_v12, 0.0  ;;  %v1800_v19 = vmul.f32 %v1605_v48, %v1605_v48  ;;  %vm1419_vm11 = vcmp.lt.s32.totalorder %v3263_v40, 512  ;;  %v1695_v22 = vsel %vm328_vm2, %v1602_v51, 0.0 }
 0x131   : > { %v1889_v29 = vsel %vm328_vm2, %v1797_v61, 0.0  ;;  %v1888_v63 = vadd.f32 %v1887_v18, %v1886_v53  ;;  %v1603_v21 = vsel %vm1411_vm6, %v1015_v24, 0.0  ;;  %v1799_v37 = vmul.f32 %v1604_v7, %v1604_v7 }
 0x132   : > { %v1696_v52 = vadd.f32 %v1695_v22, %v1694_v14  ;;  %v1697_v28 = vsel %vm328_vm2, %v1603_v21, 0.0  ;;  %v1798_v58 = vmul.f32 %v1603_v21, %v1603_v21  ;;  %v1607_v62 = vsel %vm1415_vm7, %v3054_v54, 0.0  ;;  %v3342_v54 = vpop.f32.mrb[21].mxu1 }
 0x133   : > { %v1890_v38 = vadd.f32 %v1889_v29, %v1888_v63  ;;  %vm1420_vm12 = vcmp.lt.s32.totalorder %v3244_v50, 512  ;;  %v1295_v33 = vadd.s32 344, %v2812_v13  ;;  %v3332_v5 = vadd.s32 %v2816_v15, %v1294_v4  ;;  %1237 = vst.msk [vmem:[%s2850_s20 + $0x1a0] sm:$0xff] %vm328_vm2, %v3342_v54 }
 0x134   : > { %v1698_v34 = vadd.f32 %v1697_v28, %v1696_v52  ;;  %v1891_v47 = vsel %vm328_vm2, %v1798_v58, 0.0  ;;  %v1801_v49 = vmul.f32 %v1606_v42, %v1606_v42  ;;  %vm1421_vm13 = vcmp.lt.s32.totalorder %v3300_v17, 512 }
 0x135   : > { %v1296_v51 = vadd.s32 352, %v2812_v13  ;;  %v1699_v23 = vsel %vm328_vm2, %v1604_v7, 0.0  ;;  %v1892_v55 = vadd.f32 %v1891_v47, %v1890_v38  ;;  %v1701_v0 = vsel %vm328_vm2, %v1605_v48, 0.0  ;;  %v3362_v48 = vpop.f32.mrb[22].mxu1 }
 0x136   : > { %v1608_v1 = vsel %vm1416_vm8, %v3041_v45, 0.0  ;;  %v1893_v61 = vsel %vm328_vm2, %v1799_v37, 0.0  ;;  %v1700_v2 = vadd.f32 %v1699_v23, %v1698_v34  ;;  %v1895_v35 = vsel %vm328_vm2, %v1800_v19, 0.0  ;;  %1240 = vst.msk [vmem:[%s2850_s20 + $0x1b8] sm:$0xff] %vm328_vm2, %v3362_v48  ;;  %v3373_v8 = vpop.f32.mrb[23].mxu1 }
 0x137   : > { %v1802_v57 = vmul.f32 %v1607_v62, %v1607_v62  ;;  %v1894_v43 = vadd.f32 %v1893_v61, %v1892_v55  ;;  %v1609_v12 = vsel %vm1417_vm9, %v3086_v16, 0.0  ;;  %vm1422_vm14 = vcmp.lt.s32.totalorder %v3266_v11, 512  ;;  %1239 = vst.msk [vmem:[%s2850_s20 + $0x1b0] sm:$0xff] %vm328_vm2, %v3373_v8  ;;  %v3392_v28 = vpop.f32.mrb[24].mxu1 }
 0x138   : > { %v3359_v45 = vadd.s32 %v2816_v15, %v1295_v33  ;;  %v1297_v30 = vadd.s32 360, %v2812_v13  ;;  %v1703_v53 = vsel %vm328_vm2, %v1606_v42, 0.0  ;;  %v1702_v6 = vadd.f32 %v1701_v0, %v1700_v2  ;;  %1242 = vst.msk [vmem:[%s2850_s20 + $0x1c8] sm:$0xff] %vm328_vm2, %v3392_v28  ;;  %v3403_v40 = vpop.f32.mrb[25].mxu1 }
 0x139   : > { %vm1423_vm15 = vcmp.lt.s32.totalorder %v3332_v5, 512  ;;  %v3367_v4 = vadd.s32 %v2816_v15, %v1296_v51  ;;  %v1298_v16 = vadd.s32 368, %v2812_v13  ;;  %v1897_v14 = vsel %vm328_vm2, %v1801_v49, 0.0  ;;  %1241 = vst.msk [vmem:[%s2850_s20 + $0x1c0] sm:$0xff] %vm328_vm2, %v3403_v40  ;;  %v3422_v2 = vpop.f32.mrb[26].mxu1 }
 0x13a   : > { %v1896_v18 = vadd.f32 %v1895_v35, %v1894_v43  ;;  %v1803_v7 = vmul.f32 %v1608_v1, %v1608_v1  ;;  %v1705_v24 = vsel %vm328_vm2, %v1607_v62, 0.0  ;;  %v1704_v42 = vadd.f32 %v1703_v53, %v1702_v6  ;;  %1244 = vst.msk [vmem:[%s2850_s20 + $0x1d8] sm:$0xff] %vm328_vm2, %v3422_v2  ;;  %v3433_v17 = vpop.f32.mrb[27].mxu1 }
 0x13b   : > { %v1899_v19 = vsel %vm328_vm2, %v1802_v57, 0.0  ;;  %v1610_v22 = vsel %vm1418_vm10, %v3075_v41, 0.0  ;;  %v1804_v29 = vmul.f32 %v1609_v12, %v1609_v12  ;;  %v1611_v21 = vsel %vm1419_vm11, %v3118_v39, 0.0  ;;  %1243 = vst.msk [vmem:[%s2850_s20 + $0x1d0] sm:$0xff] %vm328_vm2, %v3433_v17 }
 0x13c   : > { %v1898_v63 = vadd.f32 %v1897_v14, %v1896_v18  ;;  %vm1424_vm0 = vcmp.lt.s32.totalorder %v3359_v45, 512  ;;  %v3389_v37 = vadd.s32 %v2816_v15, %v1297_v30  ;;  %v1299_v52 = vadd.s32 376, %v2812_v13 }
 0x13d   : > { %v1707_v58 = vsel %vm328_vm2, %v1608_v1, 0.0  ;;  %v1706_v32 = vadd.f32 %v1705_v24, %v1704_v42  ;;  %vm1425_vm1 = vcmp.lt.s32.totalorder %v3367_v4, 512  ;;  %v3397_v41 = vadd.s32 %v2816_v15, %v1298_v16 }
 0x13e   : > { %v1300_v39 = vadd.s32 384, %v2812_v13  ;;  %v1901_v38 = vsel %vm328_vm2, %v1803_v7, 0.0  ;;  %v1900_v62 = vadd.f32 %v1899_v19, %v1898_v63  ;;  %v1805_v33 = vmul.f32 %v1610_v22, %v1610_v22  ;;  %v3452_v19 = vpop.f32.mrb[28].mxu1 }
 0x13f   : > { %v1709_v34 = vsel %vm328_vm2, %v1609_v12, 0.0  ;;  %v1708_v47 = vadd.f32 %v1707_v58, %v1706_v32  ;;  %v1903_v49 = vsel %vm328_vm2, %v1804_v29, 0.0  ;;  %v1612_v51 = vsel %vm1420_vm12, %v3105_v36, 0.0  ;;  %1246 = vst.msk [vmem:[%s2850_s20 + $0x1e8] sm:$0xff] %vm328_vm2, %v3452_v19 }
 0x140   : > { %v1806_v23 = vmul.f32 %v1611_v21, %v1611_v21  ;;  %v1902_v55 = vadd.f32 %v1901_v38, %v1900_v62  ;;  %v1613_v0 = vsel %vm1421_vm13, %v3150_v9, 0.0  ;;  %vm1426_vm3 = vcmp.lt.s32.totalorder %v3389_v37, 512 }
 0x141   : > { %v3419_v1 = vadd.s32 %v2816_v15, %v1299_v52  ;;  %v1301_v61 = vadd.s32 392, %v2812_v13  ;;  %v1711_v35 = vsel %vm328_vm2, %v1610_v22, 0.0  ;;  %v1710_v50 = vadd.f32 %v1709_v34, %v1708_v47 }
 0x142   : > { %vm1427_vm4 = vcmp.lt.s32.totalorder %v3397_v41, 512  ;;  %v3427_v36 = vadd.s32 %v2816_v15, %v1300_v39  ;;  %v1302_v9 = vadd.s32 400, %v2812_v13  ;;  %v1905_v57 = vsel %vm328_vm2, %v1805_v33, 0.0 }
 0x143   : > { %v1904_v43 = vadd.f32 %v1903_v49, %v1902_v55  ;;  %v1807_v12 = vmul.f32 %v1612_v51, %v1612_v51  ;;  %v1713_v30 = vsel %vm328_vm2, %v1611_v21, 0.0  ;;  %v1712_v53 = vadd.f32 %v1711_v35, %v1710_v50 }
 0x144   : > { %v1907_v6 = vsel %vm328_vm2, %v1806_v23, 0.0  ;;  %v1614_v16 = vsel %vm1422_vm14, %v3139_v59, 0.0  ;;  %v1808_v14 = vmul.f32 %v1613_v0, %v1613_v0  ;;  %v1615_v7 = vsel %vm1423_vm15, %v3182_v31, 0.0  ;;  %v3462_v31 = vpop.f32.mrb[29].mxu1 }
 0x145   : > { %v1906_v18 = vadd.f32 %v1905_v57, %v1904_v43  ;;  %vm1428_vm5 = vcmp.lt.s32.totalorder %v3419_v1, 512  ;;  %v3449_v24 = vadd.s32 %v2816_v15, %v1301_v61  ;;  %v1303_v42 = vadd.s32 408, %v2812_v13  ;;  %1245 = vst.msk [vmem:[%s2850_s20 + $0x1e0] sm:$0xff] %vm328_vm2, %v3462_v31  ;;  %v3481_v47 = vpop.f32.mrb[30].mxu1 }
 0x146   : > { %v1715_v22 = vsel %vm328_vm2, %v1612_v51, 0.0  ;;  %v1714_v11 = vadd.f32 %v1713_v30, %v1712_v53  ;;  %vm1429_vm6 = vcmp.lt.s32.totalorder %v3427_v36, 512  ;;  %v3457_v59 = vadd.s32 %v2816_v15, %v1302_v9  ;;  %1248 = vst.msk [vmem:[%s2850_s20 + $0x1f8] sm:$0xff] %vm328_vm2, %v3481_v47 }
 0x147   : > { %v1909_v5 = vsel %vm328_vm2, %v1807_v12, 0.0  ;;  %v1908_v29 = vadd.f32 %v1907_v6, %v1906_v18  ;;  %v1809_v63 = vmul.f32 %v1614_v16, %v1614_v16  ;;  %v1717_v21 = vsel %vm328_vm2, %v1613_v0, 0.0 }
 0x148   : > { %v1716_v52 = vadd.f32 %v1715_v22, %v1714_v11  ;;  %v1911_v58 = vsel %vm328_vm2, %v1808_v14, 0.0  ;;  %v1616_v32 = vsel %vm1424_vm0, %v3169_v3, 0.0  ;;  %v1810_v39 = vmul.f32 %v1615_v7, %v1615_v7 }
 0x149   : > { %v1910_v38 = vadd.f32 %v1909_v5, %v1908_v29  ;;  %v1617_v62 = vsel %vm1425_vm1, %v3216_v27, 0.0  ;;  %vm1430_vm7 = vcmp.lt.s32.totalorder %v3449_v24, 512  ;;  %v3478_v33 = vadd.s32 %v2816_v15, %v1303_v42  ;;  %v3489_v27 = vpop.f32.mrb[31].mxu1 }
 0x14a   : > { %v1305_v34 = vadd.s32 424, %v2812_v13  ;;  %v1719_v49 = vsel %vm328_vm2, %v1614_v16, 0.0  ;;  %v1718_v45 = vadd.f32 %v1717_v21, %v1716_v52  ;;  %vm1431_vm8 = vcmp.lt.s32.totalorder %v3457_v59, 512  ;;  %1247 = vst.msk [vmem:[%s2850_s20 + $0x1f0] sm:$0xff] %vm328_vm2, %v3489_v27 }
 0x14b   : > { %v1304_v3 = vadd.s32 416, %v2812_v13  ;;  %v1913_v4 = vsel %vm328_vm2, %v1809_v63, 0.0  ;;  %v1912_v51 = vadd.f32 %v1911_v58, %v1910_v38  ;;  %v1811_v23 = vmul.f32 %v1616_v32, %v1616_v32 }
 0x14c   : > { %v1721_v55 = vsel %vm328_vm2, %v1615_v7, 0.0  ;;  %v1720_v0 = vadd.f32 %v1719_v49, %v1718_v45  ;;  %v1915_v61 = vsel %vm328_vm2, %v1810_v39, 0.0  ;;  %v1618_v35 = vsel %vm1426_vm3, %v3204_v46, 0.0 }
 0x14d   : > { %v1812_v50 = vmul.f32 %v1617_v62, %v1617_v62  ;;  %v1914_v9 = vadd.f32 %v1913_v4, %v1912_v51  ;;  %v1619_v57 = vsel %vm1427_vm4, %v3249_v25, 0.0  ;;  %vm1432_vm9 = vcmp.lt.s32.totalorder %v3478_v33, 512 }
 0x14e   : > { %v3505_v43 = vadd.s32 %v2816_v15, %v1305_v34  ;;  %v1307_v12 = vadd.s32 440, %v2812_v13  ;;  %v1723_v30 = vsel %vm328_vm2, %v1616_v32, 0.0  ;;  %v1722_v53 = vadd.f32 %v1721_v55, %v1720_v0 }
 0x14f   : > { %v1369_v6 = vadd.s32 %v2816_v15, %v1304_v3  ;;  %v1306_v46 = vadd.s32 432, %v2812_v13  ;;  %v1917_v37 = vsel %vm328_vm2, %v1811_v23, 0.0  ;;  %v1916_v16 = vadd.f32 %v1915_v61, %v1914_v9 }
 0x150   : > { %v1813_v14 = vmul.f32 %v1618_v35, %v1618_v35  ;;  %v1725_v25 = vsel %vm328_vm2, %v1617_v62, 0.0  ;;  %v1724_v41 = vadd.f32 %v1723_v30, %v1722_v53  ;;  %v1919_v18 = vsel %vm328_vm2, %v1812_v50, 0.0 }
 0x151   : > { %v1620_v7 = vsel %vm1428_vm5, %v3235_v56, 0.0  ;;  %v1814_v42 = vmul.f32 %v1619_v57, %v1619_v57  ;;  %v1918_v22 = vadd.f32 %v1917_v37, %v1916_v16  ;;  %v1621_v11 = vsel %vm1429_vm6, %v3283_v60, 0.0 }
 0x152   : > { %vm1434_vm10 = vcmp.lt.s32.totalorder %v3505_v43, 512  ;;  %v1372_v5 = vadd.s32 %v2816_v15, %v1307_v12  ;;  %v1309_v29 = vadd.s32 456, %v2812_v13  ;;  %v1727_v63 = vsel %vm328_vm2, %v1618_v35, 0.0 }
 0x153   : > { %v1726_v21 = vadd.f32 %v1725_v25, %v1724_v41  ;;  %vm1433_vm11 = vcmp.lt.s32.totalorder %v1369_v6, 512  ;;  %v1371_v52 = vadd.s32 %v2816_v15, %v1306_v46  ;;  %v1921_v56 = vsel %vm328_vm2, %v1813_v14, 0.0 }
 0x154   : > { %v1920_v1 = vadd.f32 %v1919_v18, %v1918_v22  ;;  %v1815_v58 = vmul.f32 %v1620_v7, %v1620_v7  ;;  %v1729_v32 = vsel %vm328_vm2, %v1619_v57, 0.0  ;;  %v1923_v60 = vsel %vm328_vm2, %v1814_v42, 0.0 }
 0x155   : > { %v1728_v36 = vadd.f32 %v1727_v63, %v1726_v21  ;;  %v1622_v39 = vsel %vm1430_vm7, %v3269_v44, 0.0  ;;  %v1816_v38 = vmul.f32 %v1621_v11, %v1621_v11  ;;  %v1623_v34 = vsel %vm1431_vm8, %v3314_v20, 0.0 }
 0x156   : > { %v1922_v62 = vadd.f32 %v1921_v56, %v1920_v1  ;;  %vm1436_vm12 = vcmp.lt.s32.totalorder %v1372_v5, 512  ;;  %v1374_v49 = vadd.s32 %v2816_v15, %v1309_v29  ;;  %v1308_v45 = vadd.s32 448, %v2812_v13 }
 0x157   : > { %v1731_v3 = vsel %vm328_vm2, %v1620_v7, 0.0  ;;  %v1730_v4 = vadd.f32 %v1729_v32, %v1728_v36  ;;  %vm1435_vm13 = vcmp.lt.s32.totalorder %v1371_v52, 512  ;;  %v1311_v51 = vadd.s32 472, %v2812_v13 }
 0x158   : > { %v1925_v24 = vsel %vm328_vm2, %v1815_v58, 0.0  ;;  %v1924_v44 = vadd.f32 %v1923_v60, %v1922_v62  ;;  %v1817_v23 = vmul.f32 %v1622_v39, %v1622_v39  ;;  %v1733_v55 = vsel %vm328_vm2, %v1621_v11, 0.0 }
 0x159   : > { %v1732_v0 = vadd.f32 %v1731_v3, %v1730_v4  ;;  %v1927_v20 = vsel %vm328_vm2, %v1816_v38, 0.0  ;;  %v1624_v59 = vsel %vm1432_vm9, %v3303_v10, 0.0  ;;  %v1818_v61 = vmul.f32 %v1623_v34, %v1623_v34 }
 0x15a   : > { %v1926_v35 = vadd.f32 %v1925_v24, %v1924_v44  ;;  %v1625_v50 = vsel %vm1433_vm11, %v3342_v54, 0.0  ;;  %vm1438_vm14 = vcmp.lt.s32.totalorder %v1374_v49, 512  ;;  %v1373_v9 = vadd.s32 %v2816_v15, %v1308_v45 }
 0x15b   : > { %v1735_v57 = vsel %vm328_vm2, %v1622_v39, 0.0  ;;  %v1734_v12 = vadd.f32 %v1733_v55, %v1732_v0  ;;  %v1376_v30 = vadd.s32 %v2816_v15, %v1311_v51  ;;  %v1310_v53 = vadd.s32 464, %v2812_v13 }
 0x15c   : > { %v1929_v46 = vsel %vm328_vm2, %v1817_v23, 0.0  ;;  %v1928_v37 = vadd.f32 %v1927_v20, %v1926_v35  ;;  %v1819_v33 = vmul.f32 %v1624_v59, %v1624_v59  ;;  %v1737_v10 = vsel %vm328_vm2, %v1623_v34, 0.0 }
 0x15d   : > { %v1736_v16 = vadd.f32 %v1735_v57, %v1734_v12  ;;  %v1931_v6 = vsel %vm328_vm2, %v1818_v61, 0.0  ;;  %v1626_v54 = vsel %vm1434_vm10, %v3334_v26, 0.0  ;;  %v1820_v14 = vmul.f32 %v1625_v50, %v1625_v50 }
 0x15e   : > { %v1930_v25 = vadd.f32 %v1929_v46, %v1928_v37  ;;  %v1627_v41 = vsel %vm1435_vm13, %v3373_v8, 0.0  ;;  %vm1437_vm15 = vcmp.lt.s32.totalorder %v1373_v9, 512  ;;  %v1312_v18 = vadd.s32 480, %v2812_v13 }
 0x15f   : > { %v1739_v7 = vsel %vm328_vm2, %v1624_v59, 0.0  ;;  %v1738_v42 = vadd.f32 %v1737_v10, %v1736_v16  ;;  %vm1440_vm0 = vcmp.lt.s32.totalorder %v1376_v30, 512  ;;  %v1375_v22 = vadd.s32 %v2816_v15, %v1310_v53 }
 0x160   : > { %v1933_v11 = vsel %vm328_vm2, %v1819_v33, 0.0  ;;  %v1932_v29 = vadd.f32 %v1931_v6, %v1930_v25  ;;  %v1821_v63 = vmul.f32 %v1626_v54, %v1626_v54  ;;  %v1741_v26 = vsel %vm328_vm2, %v1625_v50, 0.0 }
 0x161   : > { %v1740_v43 = vadd.f32 %v1739_v7, %v1738_v42  ;;  %v1935_v21 = vsel %vm328_vm2, %v1820_v14, 0.0  ;;  %v1628_v8 = vsel %vm1436_vm12, %v3362_v48, 0.0  ;;  %v1822_v52 = vmul.f32 %v1627_v41, %v1627_v41 }
 0x162   : > { %v1934_v56 = vadd.f32 %v1933_v11, %v1932_v29  ;;  %v1629_v1 = vsel %vm1437_vm15, %v3403_v40, 0.0  ;;  %v1313_v58 = vadd.s32 488, %v2812_v13  ;;  %v1377_v32 = vadd.s32 %v2816_v15, %v1312_v18 }
 0x163   : > { %v1743_v36 = vsel %vm328_vm2, %v1626_v54, 0.0  ;;  %v1742_v60 = vadd.f32 %v1741_v26, %v1740_v43  ;;  %vm1439_vm1 = vcmp.lt.s32.totalorder %v1375_v22, 512  ;;  %v1314_v39 = vadd.s32 496, %v2812_v13 }
 0x164   : > { %v1937_v38 = vsel %vm328_vm2, %v1821_v63, 0.0  ;;  %v1936_v62 = vadd.f32 %v1935_v21, %v1934_v56  ;;  %v1823_v34 = vmul.f32 %v1628_v8, %v1628_v8  ;;  %v1745_v48 = vsel %vm328_vm2, %v1627_v41, 0.0 }
 0x165   : > { %v1744_v5 = vadd.f32 %v1743_v36, %v1742_v60  ;;  %v1939_v45 = vsel %vm328_vm2, %v1822_v52, 0.0  ;;  %v1630_v40 = vsel %vm1438_vm14, %v3392_v28, 0.0  ;;  %v1824_v3 = vmul.f32 %v1629_v1, %v1629_v1 }
 0x166   : > { %v1938_v4 = vadd.f32 %v1937_v38, %v1936_v62  ;;  %v1631_v51 = vsel %vm1439_vm1, %v3433_v17, 0.0  ;;  %v1378_v24 = vadd.s32 %v2816_v15, %v1313_v58  ;;  %vm1441_vm3 = vcmp.lt.s32.totalorder %v1377_v32, 512  ;;  %v1767_v38 = vld [vmem:[%s2858_s26] sm:$0xff] }
 0x167   : > { %v1747_v44 = vsel %vm328_vm2, %v1628_v8, 0.0  ;;  %v1746_v23 = vadd.f32 %v1745_v48, %v1744_v5  ;;  %v1315_v55 = vadd.s32 504, %v2812_v13  ;;  %v1379_v0 = vadd.s32 %v2816_v15, %v1314_v39 }
 0x168   : > { %v1941_v20 = vsel %vm328_vm2, %v1823_v34, 0.0  ;;  %v1940_v59 = vadd.f32 %v1939_v45, %v1938_v4  ;;  %v1825_v61 = vmul.f32 %v1630_v40, %v1630_v40  ;;  %v1749_v28 = vsel %vm328_vm2, %v1629_v1, 0.0 }
 0x169   : > { %v1748_v49 = vadd.f32 %v1747_v44, %v1746_v23  ;;  %v1943_v35 = vsel %vm328_vm2, %v1824_v3, 0.0  ;;  %v1632_v17 = vsel %vm1440_vm0, %v3422_v2, 0.0  ;;  %v1826_v50 = vmul.f32 %v1631_v51, %v1631_v51 }
 0x16a   : > { %v1942_v9 = vadd.f32 %v1941_v20, %v1940_v59  ;;  %v1633_v57 = vsel %vm1441_vm3, %v3462_v31, 0.0  ;;  %vm1442_vm4 = vcmp.lt.s32.totalorder %v1378_v24, 512  ;;  %v1380_v13 = vadd.s32 %v2816_v15, %v1315_v55 }
 0x16b   : > { %v1750_v12 = vadd.f32 %v1749_v28, %v1748_v49  ;;  %vm1443_vm5 = vcmp.lt.s32.totalorder %v1379_v0, 512  ;;  %v1751_v53 = vsel %vm328_vm2, %v1630_v40, 0.0  ;;  %v1827_v37 = vmul.f32 %v1632_v17, %v1632_v17 }
 0x16c   : > { %v1944_v46 = vadd.f32 %v1943_v35, %v1942_v9  ;;  %v1753_v33 = vsel %vm328_vm2, %v1631_v51, 0.0  ;;  %v1945_v10 = vsel %vm328_vm2, %v1825_v61, 0.0  ;;  %v1947_v2 = vsel %vm328_vm2, %v1826_v50, 0.0 }
 0x16d   : > { %v1752_v16 = vadd.f32 %v1751_v53, %v1750_v12  ;;  %v1828_v30 = vmul.f32 %v1633_v57, %v1633_v57  ;;  %v1634_v31 = vsel %vm1442_vm4, %v3452_v19, 0.0  ;;  %v1635_v54 = vsel %vm1443_vm5, %v3489_v27, 0.0 }
 0x16e   : > { %v1946_v6 = vadd.f32 %v1945_v10, %v1944_v46  ;;  %vm1444_vm6 = vcmp.lt.s32.totalorder %v1380_v13, 512  ;;  %v1755_v15 = vsel %vm328_vm2, %v1632_v17, 0.0  ;;  %v1949_v25 = vsel %vm328_vm2, %v1827_v37, 0.0 }
 0x16f   : > { %v1754_v14 = vadd.f32 %v1753_v33, %v1752_v16  ;;  %v1757_v18 = vsel %vm328_vm2, %v1633_v57, 0.0  ;;  %v1829_v7 = vmul.f32 %v1634_v31, %v1634_v31  ;;  %v1951_v22 = vsel %vm328_vm2, %v1828_v30, 0.0 }
 0x170   : > { %v1948_v41 = vadd.f32 %v1947_v2, %v1946_v6  ;;  %v1830_v11 = vmul.f32 %v1635_v54, %v1635_v54  ;;  %v1636_v19 = vsel %vm1444_vm6, %v3481_v47, 0.0  ;;  %v1759_v63 = vsel %vm328_vm2, %v1634_v31, 0.0  ;;  %v1637_v47 = vld [vmem:[%s2840_s17] sm:$0xff] }
 0x171   : > { %v1756_v42 = vadd.f32 %v1755_v15, %v1754_v14  ;;  %v1761_v43 = vsel %vm328_vm2, %v1635_v54, 0.0  ;;  %v1953_v21 = vsel %vm328_vm2, %v1829_v7, 0.0  ;;  %v1831_v8 = vmul.f32 %v1636_v19, %v1636_v19 }
 0x172   : > { %v1950_v29 = vadd.f32 %v1949_v25, %v1948_v41  ;;  %v1955_v56 = vsel %vm328_vm2, %v1830_v11, 0.0  ;;  %v1763_v32 = vsel %vm328_vm2, %v1636_v19, 0.0 }
 0x173   : > { %v1758_v27 = vadd.f32 %v1757_v18, %v1756_v42  ;;  %v1957_v60 = vsel %vm328_vm2, %v1831_v8, 0.0 }
 0x174   : > { %v1952_v26 = vadd.f32 %v1951_v22, %v1950_v29 }
 0x175   : > { %v1760_v52 = vadd.f32 %v1759_v63, %v1758_v27 }
 0x176   : > { %v1954_v1 = vadd.f32 %v1953_v21, %v1952_v26 }
 0x177   : > { %v1762_v58 = vadd.f32 %v1761_v43, %v1760_v52 }
 0x178   : > { %v1956_v36 = vadd.f32 %v1955_v56, %v1954_v1 }
 0x179   : > { %v1764_v39 = vadd.f32 %v1763_v32, %v1762_v58 }
 0x17a   : > { %v1958_v62 = vadd.f32 %v1957_v60, %v1956_v36 }
 0x17b   : > { %v1765_v34 = vadd.f32 %v1764_v39, %v1637_v47 }
 0x17c   : > { %v1959_v48 = vadd.f32 %v1958_v62, %v1767_v38 }
 0x17d   : > { %1766 = vst.msk [vmem:[%s2840_s17] sm:$0xff] %vm328_vm2, %v1765_v34 }
 0x17e   : > { %1960 = vst.msk [vmem:[%s2858_s26] sm:$0xff] %vm328_vm2, %v1959_v48 }
 0x17f PF: > { %s17_s23 = sadd.s32 1, %s2390_s23   ;;  %s3627_s21 = smov %s2386_s22 }
 0x180   : > { %p14_p7 = scmp.ge.s32.totalorder %s17_s23, 4   ;;  %s3628_s22 = smov %s3630_s24 }
 0x182   :  { %16 = sbr.rel (!%p14_p7) target bundleno = 2 (0x2), region = 94 }

// kernel: dense_bottleneck.5
= control target key start
LH: loop header
LB: loop body
LE: loop exit
PB: predicated region body
PF: predicated region fallthrough
CT: control target
= control target key end

     0   :  { %s3996_s24 = smov 0   ;;  %s5244_s0 = inlined_call_operand.vmem [shape: f32[512,32], index: 0, kind: input, shape index: {}, may-alias: {0,1,2}]   ;;  %s5245_s1 = inlined_call_operand.vmem [shape: f32[512,32], index: 1, kind: input, shape index: {}, may-alias: {0,1,2}]   ;;  %s5246_s2 = inlined_call_operand.vmem [shape: f32[512,32], index: 2, kind: input, shape index: {}, may-alias: {0,1,2}]   ;;  %s5247_s3 = inlined_call_operand.vmem [shape: f32[512,4], index: 3, kind: input, shape index: {}]   ;;  %s5248_s4 = inlined_call_operand.vmem [shape: f32[1,32], index: 4, kind: input, shape index: {}]   ;;  %s5249_s5 = inlined_call_operand.vmem [shape: f32[1,32], index: 5, kind: input, shape index: {}]   ;;  %s5250_s6 = inlined_call_operand.vmem [shape: f32[9,32,8], index: 6, kind: input, shape index: {}]   ;;  %s5251_s7 = inlined_call_operand.vmem [shape: f32[512,12], index: 7, kind: output, shape index: {}]  }
   0x1 LB: > { %s4002_s25 = sadd.s32 4294967295, %s3952_s24   ;;  %p3044_p0 = scmp.ge.s32.totalorder %s3952_s24, 1  ;;  %s3952_s24 = sphi %s3996_s24, %s17_s24  }
   0x2   : > { %p303_p1 = scmp.lt.s32.totalorder %s3952_s24, 5 }
   0x4   : > { %p304_p2 = pnand %p3044_p0, %p303_p1 }
   0x6   : > { %307 = sbr.rel (%p304_p2) target bundleno = 398 (0x18e), region = 48 }
   0xd   : > { %v3158_v0 = vld [vmem:[%s5250_s6 + $0x80] sm:$0xff]  ;;  %v3159_v1 = vld [vmem:[%s5250_s6 + $0x88] sm:$0xff]  ;;  %v3160_v2 = vld [vmem:[%s5250_s6 + $0x90] sm:$0xff]  ;;  %s3045_s9 = sshll.u32 %s4002_s25, 4  ;;  %s3047_s10 = sshll.u32 %s4002_s25, 3  ;;  %v535_v3 = vlaneseq  ;;  %vm899_vm0 = vcmask 261120  }
   0xe   : > { %v4017_v4 = vpack.c.bf16 %v3159_v1, %v3158_v0  ;;  %v3161_v5 = vld [vmem:[%s5250_s6 + $0x98] sm:$0xff]  ;;  %v3082_v6 = vld [vmem:[%s5250_s6 + $0x20] sm:$0xff]  ;;  %v3083_v7 = vld [vmem:[%s5250_s6 + $0x28] sm:$0xff]  ;;  %p359_p3 = scmp.lt.s32.totalorder %s3045_s9, 63  ;;  %s3048_s17 = sadd.s32 4294967295, %s3047_s10 }
   0xf   : > { %v4028_v8 = vpack.c.bf16 %v3161_v5, %v3160_v2  ;;  %v3732_v9 = vpack.c.bf16 %v3083_v7, %v3082_v6  ;;  %v3084_v10 = vld [vmem:[%s5250_s6 + $0x30] sm:$0xff]  ;;  %p366_p4 = scmp.gt.s32.totalorder %s3048_s17, 0  ;;  %v3085_v11 = vld [vmem:[%s5250_s6 + $0x38] sm:$0xff]  ;;  %v890_v12 = vld [vmem:[%s5250_s6] sm:$0xff]  ;;  %v4043_v14 = vshrl.u32 %v535_v3, 7  ;;  %s4062_s14 = sadd.s32 8, %s3047_s10 }
  0x10   : > { %5290 = vst [vmem:[#allocation2_spill] sm:$0xff] %v4017_v4  ;;  %3765 = vmatprep.subr.bf16.mxu0 %v4017_v4  ;;  %s5386_s9 = smov (!%p359_p3, %s3045_s9), 63  ;;  %v891_v13 = vld [vmem:[%s5250_s6 + $0x8] sm:$0xff]  ;;  %v3736_v15 = vpack.c.bf16 %v3085_v11, %v3084_v10  ;;  %v3178_v16 = vld [vmem:[%s5250_s6 + $0xa0] sm:$0xff]  ;;  %p380_p6 = scmp.lt.s32.totalorder %s4062_s14, 31  ;;  %v3180_v38 = vld [vmem:[%s5250_s6 + $0xb0] sm:$0xff] }
  0x11   : > { %5291 = vst [vmem:[#allocation3_spill] sm:$0xff] %v4028_v8  ;;  %3767 = vmatpush3.bf16.msra.mxu0 %v4017_v4  ;;  %3733 = vmatprep.subr.bf16.mxu1 %v3732_v9  ;;  %s5388_s17 = smov (!%p366_p4, %s3048_s17), 0  ;;  %v3179_v17 = vld [vmem:[%s5250_s6 + $0xa8] sm:$0xff]  ;;  %s4055_s11 = sshll.u32 %s5386_s9, 3  ;;  %v4060_v18 = vld [vmem:[%s5248_s4] ss:$0 sm:$0xff]  ;;  %v4078_v21 = vpack.c.bf16 %v891_v13, %v890_v12 }
  0x12   : > { %3769 = vmatprep.subr.bf16.mxu0 %v4028_v8  ;;  %3735 = vmatpush3.bf16.msra.mxu1 %v3732_v9  ;;  %v4064_v19 = vpack.c.bf16 %v3179_v17, %v3178_v16  ;;  %s4070_s18 = scalar_lea.vmem %s5244_s0, %s4055_s11  ;;  %v4075_v20 = vld [vmem:[%s5249_s5] ss:$0 sm:$0xff]  ;;  %s3049_s10 = sshll.u32 %s5388_s17, 1  ;;  %v537_v25 = vadd.s32 8, %v4043_v14  ;;  %v3181_v39 = vld [vmem:[%s5250_s6 + $0xb8] sm:$0xff]  ;;  %v4150_v54 = vadd.s32 24, %v4043_v14 }
  0x13   : > { %3737 = vmatprep.subr.bf16.mxu1 %v3736_v15  ;;  %v460_v22 = vld [vmem:[%s4070_s18] sm:$0xff]  ;;  %v461_v23 = vld [vmem:[%s4070_s18 + $0x8] sm:$0xff]  ;;  %v462_v24 = vld [vmem:[%s4070_s18 + $0x10] sm:$0xff]  ;;  %p4083_p5 = scmp.lt.s32.totalorder %s3049_s10, 63  ;;  %p406_p7 = scmp.lt.s32.totalorder %s4002_s25, 0  ;;  %v3776_v49 = vpack.c.bf16 %v3181_v39, %v3180_v38  ;;  %vm1303_vm2 = vcmp.lt.s32.totalorder %v4043_v14, 7 }
  0x14   : > { %v476_v26 = vmul.f32 %v4060_v18, %v460_v22  ;;  %v477_v27 = vmul.f32 %v4060_v18, %v461_v23  ;;  %v478_v28 = vmul.f32 %v4060_v18, %v462_v24  ;;  %v463_v29 = vld [vmem:[%s4070_s18 + $0x18] sm:$0xff]  ;;  %s407_s17 = ssub.s32 0, %s4002_s25  ;;  %v464_v30 = vld [vmem:[%s4070_s18 + $0x20] sm:$0xff]  ;;  %v465_v31 = vld [vmem:[%s4070_s18 + $0x28] sm:$0xff]  ;;  %s5392_s14 = smov (!%p380_p6, %s4062_s14), 31  ;;  %v563_v43 = vand.u32 15, %v537_v25 }
  0x15   : > { %3771 = vmatpush3.bf16.msra.mxu0 %v4028_v8  ;;  %v479_v32 = vmul.f32 %v4060_v18, %v463_v29  ;;  %s5390_s10 = smov (!%p4083_p5, %s3049_s10), 63  ;;  %v480_v33 = vmul.f32 %v4060_v18, %v464_v30  ;;  %v466_v34 = vld [vmem:[%s4070_s18 + $0x30] sm:$0xff]  ;;  %s4121_s28 = smin.u32 %s4002_s25, %s407_s17  ;;  %v481_v42 = vmul.f32 %v4060_v18, %v465_v31  ;;  %v467_v48 = vld [vmem:[%s4070_s18 + $0x38] sm:$0xff]  ;;  %v3198_v50 = vld [vmem:[%s5250_s6 + $0xc0] sm:$0xff]  ;;  %v577_v2 = vand.u32 15, %v4150_v54 }
  0x16   : > { %3739 = vmatpush3.bf16.msra.mxu1 %v3736_v15  ;;  %3773 = vmatprep.subr.bf16.mxu0 %v4064_v19  ;;  %v492_v35 = vadd.f32 %v4075_v20, %v476_v26  ;;  %v493_v36 = vadd.f32 %v4075_v20, %v477_v27  ;;  %v494_v37 = vadd.f32 %v4075_v20, %v478_v28  ;;  %s3050_s27 = sshll.u32 %s5390_s10, 3  ;;  %s3052_s12 = sshll.u32 %s5392_s14, 1  ;;  %v3199_v55 = vld [vmem:[%s5250_s6 + $0xc8] sm:$0xff]  ;;  %vm4170_vm1 = vcmp.le.s32.totalorder %v563_v43, 14  ;;  %v468_v5 = vld [vmem:[%s4070_s18 + $0x40] sm:$0xff]  ;;  %v470_v12 = vld [vmem:[%s4070_s18 + $0x50] sm:$0xff] }
  0x17   : > { %3741 = vmatprep.subr.bf16.mxu1 %v4078_v21  ;;  %v495_v40 = vadd.f32 %v4075_v20, %v479_v32  ;;  %v496_v41 = vadd.f32 %v4075_v20, %v480_v33  ;;  %s372_s8 = scalar_lea.vmem %s5245_s1, %s3050_s27  ;;  %v482_v47 = vmul.f32 %v4060_v18, %v466_v34  ;;  %p4137_p8 = scmp.lt.s32.totalorder %s3052_s12, 63  ;;  %v497_v57 = vadd.f32 %v4075_v20, %v481_v42  ;;  %v469_v6 = vld [vmem:[%s4070_s18 + $0x48] sm:$0xff]  ;;  %v892_v22 = vld [vmem:[%s5250_s6 + $0x10] sm:$0xff]  ;;  %v893_v23 = vld [vmem:[%s5250_s6 + $0x18] sm:$0xff] }
  0x18   : > { %v4125_v44 = vmax.f32 %v492_v35, 0.0  ;;  %v4127_v45 = vmax.f32 %v493_v36, 0.0  ;;  %v4129_v46 = vmax.f32 %v494_v37, 0.0  ;;  %s409_s15 = sand.u32 1, %s4121_s28   ;;  %v437_v52 = vld [vmem:[%s372_s8] sm:$0xff]  ;;  %v438_v53 = vld [vmem:[%s372_s8 + $0x8] sm:$0xff]  ;;  %v483_v58 = vmul.f32 %v4060_v18, %v467_v48  ;;  %s5191_s10 = scalar_lea.vmem %s5251_s7, %s4055_s11 }
  0x19   : > { %v4147_v51 = vmax.f32 %v495_v40, 0.0  ;;  %s410_s14 = ssub.s32 0, %s409_s15  ;;  %v4157_v56 = vmax.f32 %v496_v41, 0.0  ;;  %s4162_s20 = sadd.s32 1, %s4002_s25  ;;  %v498_v59 = vadd.f32 %v4075_v20, %v482_v47  ;;  %v445_v62 = vmul.f32 %v4060_v18, %v437_v52  ;;  %v471_v35 = vld [vmem:[%s4070_s18 + $0x58] sm:$0xff]  ;;  %v472_v36 = vld [vmem:[%s4070_s18 + $0x60] sm:$0xff] }
  0x1a   : > { %5293 = vst [vmem:[#allocation4_spill] sm:$0xff] %v4129_v46  ;;  %3580 = vmatprep.mubr.msk.f32.mxu0 %vm899_vm0, %v4125_v44  ;;  %s5394_s14 = smov (!%p406_p7, %s410_s14), %s409_s15  ;;  %s5396_s12 = smov (!%p4137_p8, %s3052_s12), 63  ;;  %v446_v63 = vmul.f32 %v4060_v18, %v438_v53  ;;  %v4182_v1 = vpack.c.bf16 %v3199_v55, %v3198_v50  ;;  %v4187_v3 = vadd.s32 40, %v4043_v14  ;;  %v4193_v7 = vmax.f32 %v497_v57, 0.0 }
  0x1b   : > { %5295 = vst [vmem:[#allocation5_spill] sm:$0xff] %v4147_v51  ;;  %3581 = vmatmul.mubr.msk.f32.vlgmr.msra.gmra.mrb[0].mxu0 %vm899_vm0, %v4127_v45  ;;  %5296 = vst [vmem:[#allocation6_spill] sm:$0xff] %v4157_v56  ;;  %v1291_v61 = vrot.slane %v4147_v51, 1  ;;  %v1292_v0 = vrot.slane %v4157_v56, 1  ;;  %p3060_p9 = scmp.lt.s32.totalorder %s5394_s14, 0  ;;  %s416_s25 = sadd.s32 2, %s5394_s14  ;;  %v499_v9 = vadd.f32 %v4075_v20, %v483_v58  ;;  %v453_v24 = vadd.f32 %v4075_v20, %v445_v62 }
  0x1c   : > { %3583 = vmatprep.mubr.msk.f32.mxu0 %vm899_vm0, %v4129_v46  ;;  %3775 = vmatpush3.bf16.msra.mxu0 %v4064_v19  ;;  %5299 = vst [vmem:[#allocation7_spill] sm:$0xff] %v4193_v7  ;;  %v5252_v10 = vrot.slane %v4125_v44, 1  ;;  %v1289_v11 = vrot.slane %v4127_v45, 1  ;;  %s423_s17 = ssub.s32 0, %s4162_s20  ;;  %v4205_v13 = vmax.f32 %v498_v59, 0.0  ;;  %v5253_v15 = vmov 0.0  }
  0x1d   : > { %3777 = vmatprep.subr.bf16.mxu0 %v3776_v49  ;;  %s5398_s25 = smov (!%p3060_p9, %s416_s25), %s5394_s14  ;;  %v4210_v16 = vsel %vm4170_vm1, 1.0, %v5253_v15  ;;  %v1290_v17 = vrot.slane %v4129_v46, 1  ;;  %v4219_v19 = vsel %vm1303_vm2, %v1291_v61, %v1292_v0  ;;  %v454_v25 = vadd.f32 %v4075_v20, %v446_v63  ;;  %p422_p10 = scmp.lt.s32.totalorder %s4162_s20, 0  ;;  %v473_v62 = vld [vmem:[%s4070_s18 + $0x68] sm:$0xff] }
  0x1e   : > { %5300 = vst [vmem:[#allocation8_spill] sm:$0xff] %v4205_v13  ;;  %v4231_v26 = vmul.f32 %v4210_v16, %v4219_v19  ;;  %v484_v27 = vmul.f32 %v4060_v18, %v468_v5  ;;  %s3061_s27 = smin.u32 %s423_s17, %s4162_s20  ;;  %p418_p11 = scmp.ne.s32.totalorder %s5398_s25, 0  ;;  %v485_v28 = vmul.f32 %v4060_v18, %v469_v6  ;;  %v543_v29 = vadd.s32 56, %v4043_v14 }
  0x1f   : > { %3584 = vmatmul.mubr.msk.f32.gmra.mrb[2].mxu0 %vm899_vm0, %v4147_v51  ;;  %v486_v30 = vmul.f32 %v4060_v18, %v470_v12  ;;  %s425_s28 = sand.u32 1, %s3061_s27   ;;  %s3053_s29 = sshll.u32 %s5396_s12, 3  ;;  %v4244_v31 = vmax.f32 %v499_v9, 0.0  ;;  %v4250_v32 = vsel %vm1303_vm2, %v5252_v10, %v1289_v11  ;;  %v4252_v33 = vpack.c.bf16 %v893_v23, %v892_v22 }
  0x20   : > { %3586 = vmatprep.mubr.msk.f32.mxu0 %vm899_vm0, %v4157_v56  ;;  %3779 = vmatpush3.bf16.msra.mxu0 %v3776_v49  ;;  %5301 = vst [vmem:[#allocation9_spill] sm:$0xff] %v4231_v26  ;;  %5303 = vst [vmem:[#allocation11_spill] sm:$0xff] %v4250_v32  ;;  %v500_v34 = vadd.f32 %v4075_v20, %v484_v27  ;;  %s426_s30 = ssub.s32 0, %s425_s28  ;;  %v4263_v37 = vsel %vm1303_vm2, %v1289_v11, %v1290_v17  ;;  %vm4265_vm3 = vcmp.le.s32.totalorder %v577_v2, 14  ;;  %s4278_s15 = scalar_lea.vmem %s5246_s2, %s3053_s29  ;;  %v3118_v27 = vld [vmem:[%s5250_s6 + $0x40] sm:$0xff] }
  0x21   : > { %3781 = vmatprep.subr.bf16.mxu0 %v4182_v1  ;;  %5302 = vst [vmem:[#allocation10_spill] sm:$0xff] %v4244_v31  ;;  %s419_s8 = scalar_select %p418_p11, 1, 0  ;;  %v1293_v39 = vrot.slane %v4193_v7, 1  ;;  %v591_v40 = vand.u32 15, %v4187_v3  ;;  %v455_v41 = vmax.f32 %v453_v24, 0.0  ;;  %v501_v43 = vadd.f32 %v4075_v20, %v485_v28 }
  0x22   : > { %v456_v42 = vmax.f32 %v454_v25, 0.0  ;;  %v502_v47 = vadd.f32 %v4075_v20, %v486_v30  ;;  %s5400_s30 = smov (!%p422_p10, %s426_s30), %s425_s28  ;;  %v4280_v48 = vmax.f32 %v500_v34, 0.0  ;;  %v605_v49 = vand.u32 15, %v543_v29  ;;  %v525_v6 = vld [vmem:[%s4278_s15 + $0x8] sm:$0xff]  ;;  %s4488_s28 = scalar_lea.vmem %s5247_s3, %s4055_s11 }
  0x23   : > { %3587 = vmatmul.mubr.msk.f32.gmra.mrb[4].mxu0 %vm899_vm0, %v4193_v7  ;;  %s420_s16 = scvt.s32.f32 %s419_s8  ;;  %v487_v50 = vmul.f32 %v4060_v18, %v471_v35  ;;  %v488_v52 = vmul.f32 %v4060_v18, %v472_v36  ;;  %v1961_v53 = vmul.f32 %v4210_v16, %v4263_v37  ;;  %v4292_v54 = vsel %vm1303_vm2, %v1290_v17, %v1291_v61  ;;  %p3063_p12 = scmp.lt.s32.totalorder %s5400_s30, 0  ;;  %v3119_v28 = vld [vmem:[%s5250_s6 + $0x48] sm:$0xff]  ;;  %v524_v35 = vld [vmem:[%s4278_s15] sm:$0xff] }
  0x24   : > { %3589 = vmatprep.mubr.msk.f32.mxu0 %vm899_vm0, %v4205_v13  ;;  %5306 = vst [vmem:[#allocation12_spill] sm:$0xff] %v4280_v48  ;;  %5307 = vst [vmem:[#allocation13_spill] sm:$0xff] %v4292_v54  ;;  %v4297_v55 = vsel %vm4265_vm3, 1.0, %v5253_v15  ;;  %v545_v57 = vadd.s32 72, %v4043_v14  ;;  %s432_s19 = sadd.s32 2, %s5400_s30  ;;  %vm4302_vm4 = vcmp.le.s32.totalorder %v591_v40, 14  ;;  %v489_v24 = vmul.f32 %v4060_v18, %v473_v62 }
  0x25   : > { %v457_v58 = vstv %s420_s16  ;;  %v1294_v60 = vrot.slane %v4205_v13, 1  ;;  %v1295_v61 = vrot.slane %v4244_v31, 1  ;;  %v4313_v3 = vmax.f32 %v501_v43, 0.0  ;;  %s5402_s19 = smov (!%p3063_p12, %s432_s19), %s5400_s30  ;;  %v3200_v40 = vld [vmem:[%s5250_s6 + $0xd0] sm:$0xff]  ;;  %v475_v62 = vld [vmem:[%s4070_s18 + $0x78] sm:$0xff]  ;;  %s3955_s29 = smov 8  }
  0x26   : > { %v4309_v63 = vmul.f32 %v457_v58, %v455_v41  ;;  %v4311_v2 = vmul.f32 %v457_v58, %v456_v42  ;;  %v4315_v5 = vmax.f32 %v502_v47, 0.0  ;;  %vm4320_vm5 = vcmp.le.s32.totalorder %v605_v49, 14  ;;  %p434_p13 = scmp.ne.s32.totalorder %s5402_s19, 0  ;;  %v474_v49 = vld [vmem:[%s4070_s18 + $0x70] sm:$0xff] }
  0x27   : > { %3590 = vmatmul.mubr.msk.f32.gmra.mrb[6].mxu0 %vm899_vm0, %v4244_v31  ;;  %5310 = vst [vmem:[#allocation14_spill] sm:$0xff] %v4313_v3  ;;  %v1296_v11 = vrot.slane %v4280_v48, 1  ;;  %v503_v12 = vadd.f32 %v4075_v20, %v487_v50  ;;  %v504_v17 = vadd.f32 %v4075_v20, %v488_v52  ;;  %v1963_v22 = vmul.f32 %v4297_v55, %v4219_v19 }
  0x28   : > { %3612 = vmatprep.mubr.msk.f32.mxu0 %vm899_vm0, %v4250_v32  ;;  %3452 = vmatprep.mubr.msk.f32.mxu1 %vm899_vm0, %v4309_v63  ;;  %v619_v23 = vand.u32 15, %v545_v57  ;;  %v547_v25 = vadd.s32 88, %v4043_v14  ;;  %v4349_v29 = vsel %vm1303_vm2, %v1292_v0, %v1293_v39  ;;  %v4354_v30 = vsel %vm4302_vm4, 1.0, %v5253_v15  ;;  %s4403_s23 = scalar_select %p434_p13, 1, 0 }
  0x29   : > { %3453 = vmatmul.mubr.msk.f32.vlgmr.msra.gmra.mrb[0].mxu1 %vm899_vm0, %v4311_v2  ;;  %5313 = vst [vmem:[#allocation15_spill] sm:$0xff] %v4349_v29  ;;  %v4358_v34 = vsel %vm1303_vm2, %v1293_v39, %v1294_v60  ;;  %v527_v36 = vmul.f32 %v4060_v18, %v525_v6  ;;  %v4368_v0 = vsel %vm4320_vm5, 1.0, %v5253_v15  ;;  %v1297_v38 = vrot.slane %v4313_v3, 1 }
  0x2a   : > { %3743 = vmatpush3.bf16.msra.mxu1 %v4078_v21  ;;  %3455 = vmatprep.mubr.msk.f32.mxu1 %vm899_vm0, %v4125_v44  ;;  %v1298_v39 = vrot.slane %v4315_v5, 1  ;;  %v3201_v21 = vld [vmem:[%s5250_s6 + $0xd8] sm:$0xff]  ;;  %v4384_v41 = vsel %vm1303_vm2, %v1295_v61, %v1296_v11  ;;  %v4386_v42 = vmax.f32 %v503_v12, 0.0  ;;  %v4388_v43 = vmax.f32 %v504_v17, 0.0  ;;  %s436_s18 = scvt.s32.f32 %s4403_s23 }
  0x2b   : > { %3613 = vmatmul.mubr.msk.f32.vlgmr.msra.gmra.mrb[0].mxu0 %vm899_vm0, %v1961_v53  ;;  %3745 = vmatprep.subr.bf16.mxu1 %v4252_v33  ;;  %v4390_v47 = vpack.c.bf16 %v3119_v28, %v3118_v27  ;;  %v1965_v50 = vmul.f32 %v4354_v30, %v4358_v34  ;;  %vm4396_vm6 = vcmp.le.s32.totalorder %v619_v23, 14  ;;  %v505_v52 = vadd.f32 %v4075_v20, %v489_v24 }
  0x2c   : > { %3615 = vmatprep.mubr.msk.f32.mxu0 %vm899_vm0, %v4292_v54  ;;  %3783 = vmatpush3.bf16.msra.mxu0 %v4182_v1  ;;  %v633_v53 = vand.u32 15, %v547_v25  ;;  %v526_v57 = vmul.f32 %v4060_v18, %v524_v35  ;;  %v4412_v58 = vsel %vm1303_vm2, %v1294_v60, %v1295_v61  ;;  %v3784_v59 = vpack.c.bf16 %v3201_v21, %v3200_v40 }
  0x2d   : > { %3456 = vmatmul.mubr.msk.f32.gmra.mrb[2].mxu1 %vm899_vm0, %v4127_v45  ;;  %5316 = vst [vmem:[#allocation16_spill] sm:$0xff] %v4412_v58  ;;  %v1967_v6 = vmul.f32 %v4368_v0, %v4384_v41  ;;  %v4424_v9 = vsel %vm1303_vm2, %v1297_v38, %v1298_v39  ;;  %v490_v60 = vmul.f32 %v4060_v18, %v474_v49  ;;  %v549_v61 = vadd.s32 104, %v4043_v14 }
  0x2e   : > { %3458 = vmatprep.mubr.msk.f32.mxu1 %vm899_vm0, %v4129_v46  ;;  %3747 = vmatpush3.bf16.msra.mxu1 %v4252_v33  ;;  %v4431_v12 = vsel %vm4396_vm6, 1.0, %v5253_v15  ;;  %v1299_v33 = vrot.slane %v4386_v42, 1  ;;  %v1300_v17 = vrot.slane %v4388_v43, 1  ;;  %v4438_v23 = vmax.f32 %v505_v52, 0.0 }
  0x2f   : > { %3616 = vmatmul.mubr.msk.f32.gmra.mrb[2].mxu0 %vm899_vm0, %v1963_v22  ;;  %v529_v22 = vadd.f32 %v4075_v20, %v527_v36  ;;  %3749 = vmatprep.subr.bf16.mxu1 %v4390_v47  ;;  %vm803_vm7 = vcmp.le.s32.totalorder %v633_v53, 14  ;;  %v506_v24 = vadd.f32 %v4075_v20, %v490_v60  ;;  %v491_v25 = vmul.f32 %v4060_v18, %v475_v62 }
  0x30   : > { %3618 = vmatprep.mubr.msk.f32.mxu0 %vm899_vm0, %v4349_v29  ;;  %3785 = vmatprep.subr.bf16.mxu0 %v3784_v59  ;;  %v4451_v27 = vsel %vm1303_vm2, %v1296_v11, %v1297_v38  ;;  %v528_v28 = vadd.f32 %v4075_v20, %v526_v57  ;;  %v1969_v18 = vmul.f32 %v4431_v12, %v4424_v9  ;;  %v647_v36 = vand.u32 15, %v549_v61 }
  0x31   : > { %3459 = vmatmul.mubr.msk.f32.gmra.mrb[4].mxu1 %vm899_vm0, %v4147_v51  ;;  %5317 = vst [vmem:[#allocation17_spill] sm:$0xff] %v4451_v27  ;;  %v4458_v35 = vmax.f32 %v506_v24, 0.0  ;;  %3787 = vmatpush3.bf16.msra.mxu0 %v3784_v59  ;;  %v507_v40 = vadd.f32 %v4075_v20, %v491_v25  ;;  %v4462_v21 = vsel %vm803_vm7, 1.0, %v5253_v15  ;;  %v531_v11 = vmax.f32 %v529_v22, 0.0  ;;  %v2828_v24 = vld [vmem:[%s4488_s28] sm:$0xff]  ;;  %v2830_v25 = vld [vmem:[%s4488_s28 + $0x10] sm:$0xff] }
  0x32   : > { %3461 = vmatprep.mubr.msk.f32.mxu1 %vm899_vm0, %v4157_v56  ;;  %v556_v38 = vand.u32 15, %v4043_v14  ;;  %v530_v49 = vmax.f32 %v528_v28, 0.0  ;;  %v532_v1 = vstv %s436_s18  ;;  %v1301_v52 = vrot.slane %v4438_v23, 1  ;;  %2860 = vrot.lane.b32.xlu0 %v2828_v24, %s3955_s29 }
  0x33   : > { %3619 = vmatmul.mubr.msk.f32.gmra.mrb[4].mxu0 %vm899_vm0, %v1965_v50  ;;  %v4470_v50 = vsel %vm1303_vm2, %v1299_v33, %v1300_v17  ;;  %v538_v20 = vadd.s32 16, %v4043_v14  ;;  %v1302_v53 = vrot.slane %v4458_v35, 1  ;;  %v4479_v57 = vmax.f32 %v507_v40, 0.0  ;;  %2864 = vrot.lane.b32.xlu1 %v2830_v25, %s3955_s29 }
  0x34   : > { %3621 = vmatprep.mubr.msk.f32.mxu0 %vm899_vm0, %v4412_v58  ;;  %v4481_v59 = vmul.f32 %v532_v1, %v530_v49  ;;  %v551_v62 = vadd.s32 120, %v4043_v14  ;;  %v4498_v61 = vsel %vm1303_vm2, %v1298_v39, %v1299_v33  ;;  %vm4500_vm8 = vcmp.le.s32.totalorder %v647_v36, 14 }
  0x35   : > { %3462 = vmatmul.mubr.msk.f32.gmra.mrb[6].mxu1 %vm899_vm0, %v4193_v7  ;;  %5318 = vst [vmem:[#allocation18_spill] sm:$0xff] %v4479_v57  ;;  %5319 = vst [vmem:[#allocation19_spill] sm:$0xff] %v4498_v61  ;;  %v4506_v28 = vmul.f32 %v532_v1, %v531_v11  ;;  %vm857_vm9 = vcmp.lt.s32.totalorder %v4043_v14, 1  ;;  %v540_v49 = vadd.s32 32, %v4043_v14  ;;  %v1971_v39 = vmul.f32 %v4462_v21, %v4470_v50  ;;  %v2829_v1 = vld [vmem:[%s4488_s28 + $0x8] sm:$0xff] }
  0x36   : > { %3464 = vmatprep.mubr.msk.f32.mxu1 %vm899_vm0, %v4205_v13  ;;  %v661_v40 = vand.u32 15, %v551_v62  ;;  %vm4515_vm10 = vcmp.ge.s32.totalorder %v556_v38, 1  ;;  %v570_v36 = vand.u32 15, %v538_v20  ;;  %v542_v11 = vadd.s32 48, %v4043_v14  ;;  %v2831_v62 = vld [vmem:[%s4488_s28 + $0x18] sm:$0xff]  ;;  %2862 = vrot.lane.b32.xlu0 %v2829_v1, %s3955_s29 }
  0x37   : > { %3622 = vmatmul.mubr.msk.f32.gmra.mrb[6].mxu0 %vm899_vm0, %v1967_v6  ;;  %v4533_v38 = vsel %vm1303_vm2, %v1301_v52, %v1302_v53  ;;  %v1956_v20 = vrot.slane %v4479_v57, 1  ;;  %v4543_v25 = vsel %vm1303_vm2, %v1300_v17, %v1301_v52  ;;  %v843_v22 = vrot.slane %v4127_v45, 7  ;;  %v3218_v17 = vld [vmem:[%s5250_s6 + $0xe0] sm:$0xff]  ;;  %v3219_v45 = vld [vmem:[%s5250_s6 + $0xe8] sm:$0xff]  ;;  %2866 = vrot.lane.b32.xlu1 %v2831_v62, %s3955_s29 }
  0x38   : > { %3624 = vmatprep.mubr.msk.f32.mxu0 %vm899_vm0, %v4451_v27  ;;  %5324 = vst [vmem:[#allocation20_spill] sm:$0xff] %v4543_v25  ;;  %vm4546_vm11 = vcmp.le.s32.totalorder %v661_v40, 14  ;;  %v844_v60 = vrot.slane %v4129_v46, 7  ;;  %v842_v24 = vrot.slane %v4125_v44, 7  ;;  %v544_v8 = vadd.s32 64, %v4043_v14  ;;  %v2832_v27 = vld [vmem:[%s4488_s28 + $0x20] sm:$0xff] }
  0x39   : > { %3465 = vmatmul.mubr.msk.f32.gmra.mrb[8].mxu1 %vm899_vm0, %v4244_v31  ;;  %v5327_v52 = vmov 0.0   ;;  %vm4570_vm12 = vcmp.ge.s32.totalorder %v570_v36, 1  ;;  %v598_v26 = vand.u32 15, %v542_v11  ;;  %v5331_v33 = vrot.slane %v4481_v59, 1 }
  0x3a   : > { %3467 = vmatprep.mubr.msk.f32.mxu1 %vm899_vm0, %v4280_v48  ;;  %v4566_v40 = vsel %vm4515_vm10, 1.0, %v5327_v52  ;;  %v845_v11 = vrot.slane %v4147_v51, 7  ;;  %v846_v1 = vrot.slane %v4157_v56, 7  ;;  %v4597_v62 = vsel %vm1303_vm2, %v1302_v53, %v1956_v20  ;;  %2868 = vrot.lane.b32.xlu0 %v2832_v27, %s3955_s29 }
  0x3b   : > { %3625 = vmatmul.mubr.msk.f32.gmra.mrb[8].mxu0 %vm899_vm0, %v1969_v18  ;;  %v4529_v18 = vsel %vm4500_vm8, 1.0, %v5253_v15  ;;  %v584_v15 = vand.u32 15, %v540_v49  ;;  %5328 = vst [vmem:[#allocation21_spill] sm:$0xff] %v4566_v40  ;;  %v4589_v36 = vsel %vm1303_vm2, %v1956_v20, %v5331_v33  ;;  %5332 = vst [vmem:[#allocation22_spill] sm:$0xff] %v4597_v62  ;;  %v4601_v10 = vsel %vm857_vm9, %v843_v22, %v844_v60 }
  0x3c   : > { %3627 = vmatprep.mubr.msk.f32.mxu0 %vm899_vm0, %v4498_v61  ;;  %v1973_v49 = vmul.f32 %v4529_v18, %v4533_v38  ;;  %v2833_v61 = vld [vmem:[%s4488_s28 + $0x28] sm:$0xff]  ;;  %v4603_v33 = vpack.c.bf16 %v3219_v45, %v3218_v17  ;;  %v5333_v58 = vrot.slane %v4309_v63, 7  ;;  %v5334_v29 = vrot.slane %v4506_v28, 7  ;;  %v2835_v17 = vld [vmem:[%s4488_s28 + $0x38] sm:$0xff]  ;;  %v2834_v45 = vld [vmem:[%s4488_s28 + $0x30] sm:$0xff] }
  0x3d   : > { %3468 = vmatmul.mubr.msk.f32.gmra.mrb[10].mxu1 %vm899_vm0, %v4313_v3  ;;  %v4614_v53 = vsel %vm4570_vm12, 1.0, %v5327_v52  ;;  %v5335_v20 = vrot.slane %v4311_v2, 7  ;;  %vm4622_vm13 = vcmp.ge.s32.totalorder %v584_v15, 1  ;;  %2870 = vrot.lane.b32.xlu1 %v2833_v61, %s3955_s29  ;;  %vm4631_vm14 = vcmp.ge.s32.totalorder %v598_v26, 1 }
  0x3e   : > { %3470 = vmatprep.mubr.msk.f32.mxu1 %vm899_vm0, %v4315_v5  ;;  %v873_v4 = vsel %vm857_vm9, %v5334_v29, %v5333_v58  ;;  %v847_v6 = vrot.slane %v4193_v7, 7  ;;  %v848_v15 = vrot.slane %v4205_v13, 7  ;;  %3789 = vmatprep.subr.bf16.mxu0 %v4603_v33  ;;  %v5342_v61 = vrot.slane %v4309_v63, 7 }
  0x3f   : > { %3628 = vmatmul.mubr.msk.f32.gmra.mrb[10].mxu0 %vm899_vm0, %v1971_v39  ;;  %v4583_v39 = vsel %vm4546_vm11, 1.0, %v5327_v52  ;;  %v4620_v54 = vsel %vm857_vm9, %v5335_v20, %v842_v24  ;;  %v5341_v27 = vmov %v5335_v20  ;;  %v4654_v20 = vsel %vm857_vm9, %v845_v11, %v846_v1  ;;  %2872 = vrot.lane.b32.xlu0 %v2834_v45, %s3955_s29 }
  0x40   : > { %3630 = vmatprep.mubr.msk.f32.mxu0 %vm899_vm0, %v4543_v25  ;;  %v612_v25 = vand.u32 15, %v544_v8  ;;  %5336 = vst [vmem:[#allocation23_spill] sm:$0xff] %v4620_v54  ;;  %v1975_v29 = vmul.f32 %v4583_v39, %v4589_v36  ;;  %v872_v26 = vsel %vm857_vm9, %v5342_v61, %v5341_v27  ;;  %v546_v13 = vadd.s32 80, %v4043_v14 }
  0x41   : > { %3471 = vmatmul.mubr.msk.f32.gmra.mrb[12].mxu1 %vm899_vm0, %v4386_v42  ;;  %v874_v7 = vmul.f32 %v4566_v40, %v873_v4  ;;  %v4662_v27 = vsel %vm857_vm9, %v842_v24, %v843_v22  ;;  %v876_v32 = vmul.f32 %v4614_v53, %v4620_v54  ;;  %v4674_v56 = vsel %vm4622_vm13, 1.0, %v5327_v52  ;;  %v3121_v22 = vld [vmem:[%s5250_s6 + $0x58] sm:$0xff]  ;;  %2874 = vrot.lane.b32.xlu1 %v2835_v17, %s3955_s29  ;;  %v2836_v54 = vld [vmem:[%s4488_s28 + $0x40] sm:$0xff] }
  0x42   : > { %3473 = vmatprep.mubr.msk.f32.mxu1 %vm899_vm0, %v4388_v43  ;;  %vm4664_vm15 = vcmp.ge.s32.totalorder %v612_v25, 1  ;;  %v4678_v4 = vsel %vm857_vm9, %v844_v60, %v845_v11  ;;  %v4683_v24 = vsel %vm4631_vm14, 1.0, %v5327_v52  ;;  %v3120_v25 = vld [vmem:[%s5250_s6 + $0x50] sm:$0xff]  ;;  %v2195_v60 = vmul.f32 %v4614_v53, %v4654_v20 }
  0x43   : > { %3631 = vmatmul.mubr.msk.f32.gmra.mrb[12].mxu0 %vm899_vm0, %v1973_v49  ;;  %v2193_v49 = vmul.f32 %v4566_v40, %v4601_v10  ;;  %v4698_v11 = vsel %vm857_vm9, %v847_v6, %v848_v15  ;;  %v849_v8 = vrot.slane %v4244_v31, 7  ;;  %v850_v58 = vrot.slane %v4280_v48, 7  ;;  %v2837_v40 = vld [vmem:[%s4488_s28 + $0x48] sm:$0xff]  ;;  %v3220_v48 = vld [vmem:[%s5250_s6 + $0xf0] sm:$0xff]  ;;  %v3221_v31 = vld [vmem:[%s5250_s6 + $0xf8] sm:$0xff]  ;;  %2876 = vrot.lane.b32.xlu0 %v2836_v54, %s3955_s29 }
  0x44   : > { %3633 = vmatprep.mubr.msk.f32.mxu0 %vm899_vm0, %v4597_v62  ;;  %v548_v62 = vadd.s32 96, %v4043_v14  ;;  %v626_v17 = vand.u32 15, %v546_v13  ;;  %v851_v45 = vrot.slane %v4313_v3, 7  ;;  %v3752_v61 = vpack.c.bf16 %v3121_v22, %v3120_v25  ;;  %v3139_v54 = vld [vmem:[%s5250_s6 + $0x68] sm:$0xff] }
  0x45   : > { %3474 = vmatmul.mubr.msk.f32.gmra.mrb[14].mxu1 %vm899_vm0, %v4438_v23  ;;  %v550_v13 = vadd.s32 112, %v4043_v14  ;;  %v4726_v51 = vmul.f32 %v4683_v24, %v4654_v20  ;;  %v4730_v3 = vsel %vm857_vm9, %v846_v1, %v847_v6  ;;  %v2197_v57 = vmul.f32 %v4674_v56, %v4698_v11  ;;  %2878 = vrot.lane.b32.xlu1 %v2837_v40, %s3955_s29  ;;  %v3138_v40 = vld [vmem:[%s5250_s6 + $0x60] sm:$0xff]  ;;  %v3240_v14 = vld [vmem:[%s5250_s6 + $0x110] sm:$0xff] }
  0x46   : > { %3484 = vmatprep.mubr.msk.f32.mxu1 %vm899_vm0, %v874_v7  ;;  %v640_v46 = vand.u32 15, %v548_v62  ;;  %v4745_v1 = vsel %vm857_vm9, %v848_v15, %v849_v8  ;;  %v4749_v6 = vsel %vm857_vm9, %v849_v8, %v850_v58  ;;  %v3792_v25 = vpack.c.bf16 %v3221_v31, %v3220_v48 }
  0x47   : > { %3634 = vmatmul.mubr.msk.f32.gmra.mrb[14].mxu0 %vm899_vm0, %v1975_v29  ;;  %v4710_v29 = vsel %vm4664_vm15, 1.0, %v5327_v52  ;;  %vm4759_vm1 = vcmp.ge.s32.totalorder %v626_v17, 1  ;;  %v5348_v22 = vrot.slane %v4315_v5, 7  ;;  %v853_v7 = vrot.slane %v4386_v42, 7 }
  0x48   : > { %3644 = vmatprep.mubr.msk.f32.mxu0 %vm899_vm0, %v2193_v49  ;;  %v878_v49 = vmul.f32 %v4674_v56, %v4601_v10  ;;  %v4741_v62 = vmul.f32 %v4710_v29, %v4698_v11  ;;  %v5350_v31 = vrot.slane %v4311_v2, 1  ;;  %vm4778_vm3 = vcmp.ge.s32.totalorder %v640_v46, 1 }
  0x49   : > { %3485 = vmatmul.mubr.msk.f32.vlgmr.msra.gmra.mrb[0].mxu1 %vm899_vm0, %v872_v26  ;;  %v4767_v8 = vsel %vm857_vm9, %v851_v45, %v5348_v22  ;;  %v5288_v17 = vrot.slane %v4388_v43, 7  ;;  %v5289_v46 = vrot.slane %v4438_v23, 7  ;;  %v4866_v26 = vmul.f32 %v4583_v39, %v4533_v38 }
  0x4a   : > { %5345 = vst [vmem:[#allocation24_spill] sm:$0xff] %v4741_v62  ;;  %v5349_v62 = vrot.slane %v4125_v44, 1  ;;  %3751 = vmatpush3.bf16.msra.mxu1 %v4390_v47  ;;  %3487 = vmatprep.mubr.msk.f32.mxu1 %vm899_vm0, %v876_v32  ;;  %v3238_v44 = vld [vmem:[%s5250_s6 + $0x100] sm:$0xff]  ;;  %v3239_v47 = vld [vmem:[%s5250_s6 + $0x108] sm:$0xff]  ;;  %v4794_v32 = vpack.c.bf16 %v3139_v54, %v3138_v40  ;;  %v4810_v40 = vsel %vm857_vm9, %v850_v58, %v851_v45  ;;  %vm2925_vm5 = vcmask 97280  }
  0x4b   : > { %3645 = vmatmul.mubr.msk.f32.vlgmr.msra.gmra.mrb[0].mxu0 %vm899_vm0, %v4678_v4  ;;  %3753 = vmatprep.subr.bf16.mxu1 %v3752_v61  ;;  %v4814_v54 = vmul.f32 %v4354_v30, %v4219_v19  ;;  %v2201_v15 = vmul.f32 %v4710_v29, %v4767_v8  ;;  %v4828_v58 = vmul.f32 %v4368_v0, %v4358_v34  ;;  %v2190_v19 = vrot.slane %v4481_v59, 7 }
  0x4c   : > { %3647 = vmatprep.mubr.msk.f32.mxu0 %vm899_vm0, %v2195_v60  ;;  %v1318_v48 = vsel %vm1303_vm2, %v5350_v31, %v5349_v62  ;;  %v654_v60 = vand.u32 15, %v550_v13  ;;  %3791 = vmatpush3.bf16.msra.mxu0 %v4603_v33  ;;  %v5287_v13 = vrot.slane %v4458_v35, 7  ;;  %v3071_v62 = vsel %vm4759_vm1, 1.0, %v5327_v52 }
  0x4d   : > { %v4784_v22 = vmul.f32 %v4210_v16, %v1318_v48  ;;  %v4799_v16 = vmul.f32 %v4297_v55, %v4263_v37  ;;  %v2199_v33 = vmul.f32 %v4683_v24, %v4749_v6  ;;  %3793 = vmatprep.subr.bf16.mxu0 %v3792_v25  ;;  %3488 = vmatmul.mubr.msk.f32.gmra.mrb[2].mxu1 %vm899_vm0, %v4662_v27  ;;  %v4822_v37 = vsel %vm4778_vm3, 1.0, %v5327_v52 }
  0x4e   : > { %v4830_v45 = vpack.c.bf16 %v3239_v47, %v3238_v44  ;;  %3490 = vmatprep.mubr.msk.f32.mxu1 %vm899_vm0, %v878_v49  ;;  %3755 = vmatpush3.bf16.msra.mxu1 %v3752_v61  ;;  %vm4833_vm4 = vcmp.ge.s32.totalorder %v654_v60, 1  ;;  %v4843_v31 = vmul.f32 %v4462_v21, %v4424_v9  ;;  %v4847_v48 = vmul.f32 %v4529_v18, %v4470_v50 }
  0x4f   : > { %3648 = vmatmul.mubr.msk.f32.gmra.mrb[2].mxu0 %vm899_vm0, %v4730_v3  ;;  %v4855_v49 = vsel %vm857_vm9, %v853_v7, %v5288_v17  ;;  %3757 = vmatprep.subr.bf16.mxu1 %v4794_v32  ;;  %v1553_v61 = vsel %vm857_vm9, %v5289_v46, %v5287_v13  ;;  %v2595_v60 = vrot.slane %v4506_v28, 1  ;;  %v1286_v44 = vrot.slane %v4309_v63, 1  ;;  %v2839_v17 = vld [vmem:[%s4488_s28 + $0x58] sm:$0xff] }
  0x50   : > { %3650 = vmatprep.mubr.msk.f32.mxu0 %vm899_vm0, %v2197_v57  ;;  %v4839_v57 = vmul.f32 %v4431_v12, %v4384_v41  ;;  %3795 = vmatpush3.bf16.msra.mxu0 %v3792_v25  ;;  %v4875_v47 = vmul.f32 %v4614_v53, %v4601_v10  ;;  %v4879_v25 = vmul.f32 %v4674_v56, %v4654_v20  ;;  %v3073_v46 = vsel %vm4833_vm4, 1.0, %v5327_v52  ;;  %v2838_v20 = vld [vmem:[%s4488_s28 + $0x50] sm:$0xff]  ;;  %v3241_v63 = vld [vmem:[%s5250_s6 + $0x118] sm:$0xff] }
  0x51   : > { %3797 = vmatprep.subr.bf16.mxu0 %v4830_v45  ;;  %v4883_v13 = vmul.f32 %v4683_v24, %v4698_v11  ;;  %3491 = vmatmul.mubr.msk.f32.gmra.mrb[4].mxu1 %vm899_vm0, %v4678_v4  ;;  %v4894_v10 = vmul.f32 %v4297_v55, %v4358_v34  ;;  %v4898_v56 = vmul.f32 %v4710_v29, %v4749_v6  ;;  %v2840_v11 = vld [vmem:[%s4488_s28 + $0x60] sm:$0xff]  ;;  %v5357_v29 = vld [vmem:[#allocation24_spill] sm:$0xff] }
  0x52   : > { %v4902_v53 = vmul.f32 %v4354_v30, %v4384_v41  ;;  %3493 = vmatprep.mubr.msk.f32.mxu1 %vm899_vm0, %v4726_v51  ;;  %v4908_v24 = vmul.f32 %v3071_v62, %v4767_v8  ;;  %v4912_v55 = vmul.f32 %v4368_v0, %v4424_v9  ;;  %v4916_v34 = vmul.f32 %v4822_v37, %v4855_v49 }
  0x53   : > { %3651 = vmatmul.mubr.msk.f32.gmra.mrb[4].mxu0 %vm899_vm0, %v4745_v1  ;;  %v4920_v30 = vmul.f32 %v4431_v12, %v4470_v50  ;;  %v4922_v41 = vmul.f32 %v3073_v46, %v1553_v61  ;;  %v4926_v51 = vmul.f32 %v4462_v21, %v4533_v38  ;;  %v4930_v52 = vmul.f32 %v4529_v18, %v4589_v36  ;;  %v2841_v21 = vld [vmem:[%s4488_s28 + $0x68] sm:$0xff] }
  0x54   : > { %3653 = vmatprep.mubr.msk.f32.mxu0 %vm899_vm0, %v2199_v33  ;;  %v5355_v0 = vrot.slane %v4481_v59, 1  ;;  %2882 = vrot.lane.b32.xlu1 %v2839_v17, %s3955_s29  ;;  %v2597_v12 = vsel %vm1303_vm2, %v2595_v60, %v1286_v44  ;;  %v5356_v50 = vrot.slane %v4315_v5, 7  ;;  %v2203_v38 = vmul.f32 %v3071_v62, %v4855_v49  ;;  %v5358_v33 = vld [vmem:[#allocation18_spill] sm:$0xff] }
  0x55   : > { %2880 = vrot.lane.b32.xlu0 %v2838_v20, %s3955_s29  ;;  %3494 = vmatmul.mubr.msk.f32.gmra.mrb[6].mxu1 %vm899_vm0, %v4730_v3  ;;  %v4960_v36 = vmul.f32 %v4583_v39, %v2597_v12  ;;  %v884_v17 = vmul.f32 %v3071_v62, %v4749_v6  ;;  %v5359_v39 = vrot.slane %v4438_v23, 7  ;;  %v5360_v6 = vrot.slane %v4388_v43, 7  ;;  %v2842_v20 = vld [vmem:[%s4488_s28 + $0x70] sm:$0xff] }
  0x56   : > { %v4936_v9 = vsel %vm1303_vm2, %v5355_v0, %v2595_v60  ;;  %v4956_v18 = vsel %vm857_vm9, %v5356_v50, %v853_v7  ;;  %3496 = vmatprep.mubr.msk.f32.mxu1 %vm899_vm0, %v5357_v29  ;;  %v2843_v7 = vld [vmem:[%s4488_s28 + $0x78] sm:$0xff]  ;;  %v2205_v60 = vmul.f32 %v4822_v37, %v1553_v61  ;;  %v886_v0 = vmul.f32 %v4822_v37, %v4767_v8 }
  0x57   : > { %3654 = vmatmul.mubr.msk.f32.gmra.mrb[6].mxu0 %vm899_vm0, %v4810_v40  ;;  %v4982_v62 = vsel %vm857_vm9, %v5360_v6, %v5359_v39  ;;  %v5361_v61 = vrot.slane %v4458_v35, 7  ;;  %v5362_v50 = vrot.slane %v4506_v28, 7  ;;  %v3141_v29 = vld [vmem:[%s5250_s6 + $0x78] sm:$0xff]  ;;  %v5368_v39 = vld [vmem:[#allocation7_spill] sm:$0xff]  ;;  %v5369_v6 = vld [vmem:[#allocation8_spill] sm:$0xff] }
  0x58   : > { %3656 = vmatprep.mubr.msk.f32.mxu0 %vm899_vm0, %v2201_v15  ;;  %v1551_v15 = vrot.slane %v5358_v33, 7  ;;  %2886 = vrot.lane.b32.xlu1 %v2841_v21, %s3955_s29  ;;  %v888_v21 = vmul.f32 %v3073_v46, %v4855_v49  ;;  %v3140_v49 = vld [vmem:[%s5250_s6 + $0x70] sm:$0xff] }
  0x59   : > { %2884 = vrot.lane.b32.xlu0 %v2840_v11, %s3955_s29  ;;  %3497 = vmatmul.mubr.msk.f32.gmra.mrb[8].mxu1 %vm899_vm0, %v4745_v1  ;;  %v5363_v11 = vrot.slane %v4311_v2, 1  ;;  %v3760_v2 = vpack.c.bf16 %v3141_v29, %v3140_v49 }
  0x5a   : > { %3499 = vmatprep.mubr.msk.f32.mxu1 %vm899_vm0, %v884_v17  ;;  %v2192_v12 = vsel %vm857_vm9, %v1551_v15, %v2190_v19  ;;  %v5002_v8 = vsel %vm857_vm9, %v5361_v61, %v1551_v15  ;;  %v5364_v17 = vld [vmem:[#allocation4_spill] sm:$0xff]  ;;  %v3800_v15 = vpack.c.bf16 %v3241_v63, %v3240_v14 }
  0x5b   : > { %3657 = vmatmul.mubr.msk.f32.gmra.mrb[8].mxu0 %vm899_vm0, %v4956_v18  ;;  %v2207_v37 = vmul.f32 %v3073_v46, %v2192_v12  ;;  %v1319_v46 = vsel %vm1303_vm2, %v1286_v44, %v5363_v11  ;;  %v5365_v44 = vld [vmem:[#allocation5_spill] sm:$0xff]  ;;  %v5380_v12 = vld [vmem:[#allocation23_spill] sm:$0xff]  ;;  %vm2908_vm2 = vcmask 64512  }
  0x5c   : > { %3659 = vmatprep.mubr.msk.f32.mxu0 %vm899_vm0, %v2203_v38  ;;  %2890 = vrot.lane.b32.xlu1 %v2843_v7, %s3955_s29  ;;  %v2191_v38 = vsel %vm857_vm9, %v2190_v19, %v5362_v50  ;;  %v5366_v19 = vld [vmem:[#allocation6_spill] sm:$0xff]  ;;  %v5367_v7 = vld [vmem:[#allocation11_spill] sm:$0xff] }
  0x5d   : > { %2888 = vrot.lane.b32.xlu0 %v2842_v20, %s3955_s29  ;;  %3500 = vmatmul.mubr.msk.f32.gmra.mrb[10].mxu1 %vm899_vm0, %v4810_v40  ;;  %v5375_v20 = vld [vmem:[#allocation14_spill] sm:$0xff] }
  0x5e   : > { %3502 = vmatprep.mubr.msk.f32.mxu1 %vm899_vm0, %v886_v0  ;;  %v5376_v0 = vld [vmem:[#allocation16_spill] sm:$0xff] }
  0x5f   : > { %3660 = vmatmul.mubr.msk.f32.gmra.mrb[10].mxu0 %vm899_vm0, %v4982_v62 }
  0x60   : > { %3662 = vmatprep.mubr.msk.f32.mxu0 %vm899_vm0, %v2205_v60  ;;  %v5372_v60 = vld [vmem:[#allocation10_spill] sm:$0xff] }
  0x61   : > { %3503 = vmatmul.mubr.msk.f32.gmra.mrb[12].mxu1 %vm899_vm0, %v4956_v18 }
  0x62   : > { %3505 = vmatprep.mubr.msk.f32.mxu1 %vm899_vm0, %v888_v21 }
  0x63   : > { %3663 = vmatmul.mubr.msk.f32.gmra.mrb[12].mxu0 %vm899_vm0, %v5002_v8 }
  0x64   : > { %3665 = vmatprep.mubr.msk.f32.mxu0 %vm899_vm0, %v2207_v37 }
  0x65   : > { %3506 = vmatmul.mubr.msk.f32.gmra.mrb[14].mxu1 %vm899_vm0, %v4982_v62 }
  0x66   : > { %3516 = vmatprep.mubr.msk.f32.mxu1 %vm899_vm0, %v1319_v46 }
  0x67   : > { %3666 = vmatmul.mubr.msk.f32.gmra.mrb[14].mxu0 %vm899_vm0, %v2191_v38 }
  0x68   : > { %3676 = vmatprep.mubr.msk.f32.mxu0 %vm899_vm0, %v5364_v17 }
  0x69   : > { %3517 = vmatmul.mubr.msk.f32.vlgmr.msra.gmra.mrb[0].mxu1 %vm899_vm0, %v4784_v22  ;;  %v5370_v22 = vld [vmem:[#allocation13_spill] sm:$0xff] }
  0x6a   : > { %3759 = vmatpush3.bf16.msra.mxu1 %v4794_v32  ;;  %3519 = vmatprep.mubr.msk.f32.mxu1 %vm899_vm0, %v5367_v7  ;;  %v5371_v32 = vld [vmem:[#allocation2_spill] sm:$0xff] }
  0x6b   : > { %3677 = vmatmul.mubr.msk.f32.vlgmr.msra.gmra.mrb[0].mxu0 %vm899_vm0, %v5365_v44  ;;  %3761 = vmatprep.subr.bf16.mxu1 %v3760_v2 }
  0x6c   : > { %3679 = vmatprep.mubr.msk.f32.mxu0 %vm899_vm0, %v5366_v19  ;;  %3799 = vmatpush3.bf16.msra.mxu0 %v4830_v45  ;;  %v5373_v45 = vld [vmem:[#allocation12_spill] sm:$0xff] }
  0x6d   : > { %3801 = vmatprep.subr.bf16.mxu0 %v3800_v15  ;;  %3520 = vmatmul.mubr.msk.f32.gmra.mrb[2].mxu1 %vm899_vm0, %v4799_v16  ;;  %v5374_v16 = vld [vmem:[#allocation15_spill] sm:$0xff] }
  0x6e   : > { %3522 = vmatprep.mubr.msk.f32.mxu1 %vm899_vm0, %v5370_v22  ;;  %3763 = vmatpush3.bf16.msra.mxu1 %v3760_v2 }
  0x6f   : > { %3680 = vmatmul.mubr.msk.f32.gmra.mrb[2].mxu0 %vm899_vm0, %v5368_v39  ;;  %3804 = vmatprep.subr.bf16.mxu1 %v5371_v32 }
  0x70   : > { %3682 = vmatprep.mubr.msk.f32.mxu0 %vm899_vm0, %v5369_v6  ;;  %3803 = vmatpush3.bf16.msra.mxu0 %v3800_v15 }
  0x71   : > { %3523 = vmatmul.mubr.msk.f32.gmra.mrb[4].mxu1 %vm899_vm0, %v4814_v54  ;;  %v5377_v54 = vld [vmem:[#allocation17_spill] sm:$0xff] }
  0x72   : > { %3525 = vmatprep.mubr.msk.f32.mxu1 %vm899_vm0, %v5374_v16 }
  0x73   : > { %3683 = vmatmul.mubr.msk.f32.gmra.mrb[4].mxu0 %vm899_vm0, %v5372_v60 }
  0x74   : > { %3685 = vmatprep.mubr.msk.f32.mxu0 %vm899_vm0, %v5373_v45 }
  0x75   : > { %3526 = vmatmul.mubr.msk.f32.gmra.mrb[6].mxu1 %vm899_vm0, %v4828_v58  ;;  %v5378_v58 = vld [vmem:[#allocation19_spill] sm:$0xff] }
  0x76   : > { %3528 = vmatprep.mubr.msk.f32.mxu1 %vm899_vm0, %v5376_v0 }
  0x77   : > { %3686 = vmatmul.mubr.msk.f32.gmra.mrb[6].mxu0 %vm899_vm0, %v5375_v20 }
  0x78   : > { %3688 = vmatprep.mubr.msk.f32.mxu0 %vm899_vm0, %v4315_v5 }
  0x79   : > { %3529 = vmatmul.mubr.msk.f32.gmra.mrb[8].mxu1 %vm899_vm0, %v4839_v57  ;;  %v5379_v57 = vld [vmem:[#allocation20_spill] sm:$0xff] }
  0x7a   : > { %3531 = vmatprep.mubr.msk.f32.mxu1 %vm899_vm0, %v5377_v54 }
  0x7b   : > { %3689 = vmatmul.mubr.msk.f32.gmra.mrb[8].mxu0 %vm899_vm0, %v4386_v42 }
  0x7c   : > { %3691 = vmatprep.mubr.msk.f32.mxu0 %vm899_vm0, %v4388_v43 }
  0x7d   : > { %3532 = vmatmul.mubr.msk.f32.gmra.mrb[10].mxu1 %vm899_vm0, %v4843_v31  ;;  %v5381_v31 = vld [vmem:[#allocation21_spill] sm:$0xff] }
  0x7e   : > { %3534 = vmatprep.mubr.msk.f32.mxu1 %vm899_vm0, %v5378_v58  ;;  %v1554_v61 = vmul.f32 %v5381_v31, %v5380_v12 }
  0x7f   : > { %3692 = vmatmul.mubr.msk.f32.gmra.mrb[10].mxu0 %vm899_vm0, %v4438_v23 }
  0x80   : > { %3694 = vmatprep.mubr.msk.f32.mxu0 %vm899_vm0, %v4458_v35 }
  0x81   : > { %3535 = vmatmul.mubr.msk.f32.gmra.mrb[12].mxu1 %vm899_vm0, %v4847_v48  ;;  %v5382_v48 = vld [vmem:[#allocation9_spill] sm:$0xff] }
  0x82   : > { %3537 = vmatprep.mubr.msk.f32.mxu1 %vm899_vm0, %v5379_v57 }
  0x83   : > { %3695 = vmatmul.mubr.msk.f32.gmra.mrb[12].mxu0 %vm899_vm0, %v5358_v33 }
  0x84   : > { %3697 = vmatprep.mubr.msk.f32.mxu0 %vm899_vm0, %v4481_v59  ;;  %v5383_v59 = vld [vmem:[#allocation3_spill] sm:$0xff] }
  0x85   : > { %3538 = vmatmul.mubr.msk.f32.gmra.mrb[14].mxu1 %vm899_vm0, %v4866_v26 }
  0x86   : > { %3548 = vmatprep.mubr.msk.f32.mxu1 %vm899_vm0, %v1554_v61 }
  0x87   : > { %3698 = vmatmul.mubr.msk.f32.gmra.mrb[14].mxu0 %vm899_vm0, %v4506_v28 }
  0x88   : > { %3708 = vmatprep.mubr.msk.f32.mxu0 %vm899_vm0, %v5370_v22 }
  0x89   : > { %3549 = vmatmul.mubr.msk.f32.vlgmr.msra.gmra.mrb[0].mxu1 %vm899_vm0, %v4662_v27 }
  0x8a   : > { %3806 = vmatpush3.bf16.msra.mxu1 %v5371_v32  ;;  %3551 = vmatprep.mubr.msk.f32.mxu1 %vm899_vm0, %v4875_v47 }
  0x8b   : > { %3709 = vmatmul.mubr.msk.f32.vlgmr.msra.gmra.mrb[0].mxu0 %vm899_vm0, %v5382_v48  ;;  %3805 = vmatprep.subr.bf16.mxu1 %v5383_v59 }
  0x8c   : > { %3711 = vmatprep.mubr.msk.f32.mxu0 %vm899_vm0, %v5374_v16 }
  0x8d   : > { %3552 = vmatmul.mubr.msk.f32.gmra.mrb[2].mxu1 %vm899_vm0, %v4678_v4 }
  0x8e   : > { %3554 = vmatprep.mubr.msk.f32.mxu1 %vm899_vm0, %v4879_v25  ;;  %3807 = vmatpush3.bf16.msra.mxu1 %v5383_v59 }
  0x8f   : > { %3712 = vmatmul.mubr.msk.f32.gmra.mrb[2].mxu0 %vm899_vm0, %v4894_v10 }
  0x90   : > { %3714 = vmatprep.mubr.msk.f32.mxu0 %vm899_vm0, %v5376_v0 }
  0x91   : > { %3555 = vmatmul.mubr.msk.f32.gmra.mrb[4].mxu1 %vm899_vm0, %v4730_v3  ;;  %v5384_v3 = vld [vmem:[#allocation22_spill] sm:$0xff] }
  0x92   : > { %3557 = vmatprep.mubr.msk.f32.mxu1 %vm899_vm0, %v4883_v13 }
  0x93   : > { %3715 = vmatmul.mubr.msk.f32.gmra.mrb[4].mxu0 %vm899_vm0, %v4902_v53 }
  0x94   : > { %3717 = vmatprep.mubr.msk.f32.mxu0 %vm899_vm0, %v5377_v54 }
  0x95   : > { %3558 = vmatmul.mubr.msk.f32.gmra.mrb[6].mxu1 %vm899_vm0, %v4745_v1 }
  0x96   : > { %3560 = vmatprep.mubr.msk.f32.mxu1 %vm899_vm0, %v4898_v56 }
  0x97   : > { %3718 = vmatmul.mubr.msk.f32.gmra.mrb[6].mxu0 %vm899_vm0, %v4912_v55 }
  0x98   : > { %3720 = vmatprep.mubr.msk.f32.mxu0 %vm899_vm0, %v5378_v58 }
  0x99   : > { %3561 = vmatmul.mubr.msk.f32.gmra.mrb[8].mxu1 %vm899_vm0, %v4810_v40 }
  0x9a   : > { %3563 = vmatprep.mubr.msk.f32.mxu1 %vm899_vm0, %v4908_v24 }
  0x9b   : > { %3721 = vmatmul.mubr.msk.f32.gmra.mrb[8].mxu0 %vm899_vm0, %v4920_v30 }
  0x9c   : > { %3723 = vmatprep.mubr.msk.f32.mxu0 %vm899_vm0, %v5379_v57 }
  0x9d   : > { %3564 = vmatmul.mubr.msk.f32.gmra.mrb[10].mxu1 %vm899_vm0, %v4956_v18 }
  0x9e   : > { %3566 = vmatprep.mubr.msk.f32.mxu1 %vm899_vm0, %v4916_v34 }
  0x9f   : > { %3724 = vmatmul.mubr.msk.f32.gmra.mrb[10].mxu0 %vm899_vm0, %v4926_v51 }
  0xa0   : > { %3726 = vmatprep.mubr.msk.f32.mxu0 %vm899_vm0, %v5384_v3 }
  0xa1   : > { %3567 = vmatmul.mubr.msk.f32.gmra.mrb[12].mxu1 %vm899_vm0, %v4982_v62 }
  0xa2   : > { %3569 = vmatprep.mubr.msk.f32.mxu1 %vm899_vm0, %v4922_v41 }
  0xa3   : > { %3727 = vmatmul.mubr.msk.f32.gmra.mrb[12].mxu0 %vm899_vm0, %v4930_v52 }
  0xa4   : > { %3729 = vmatprep.mubr.msk.f32.mxu0 %vm899_vm0, %v4936_v9  ;;  %v2861_v28 = vpop.permute.xlu0 %2860 }
  0xa5   : > { %3570 = vmatmul.mubr.msk.f32.gmra.mrb[14].mxu1 %vm899_vm0, %v5002_v8  ;;  %v2865_v27 = vpop.permute.xlu1 %2864 }
  0xa6   : > { %3592 = vmatprep.mubr.msk.f32.mxu1 %vm899_vm0, %v5373_v45 }
  0xa7   : > { %3730 = vmatmul.mubr.msk.f32.gmra.mrb[14].mxu0 %vm899_vm0, %v4960_v36 }
  0xa8   : > { %v2863_v4 = vpop.permute.xlu0 %2862 }
  0xa9   : > { %3593 = vmatmul.mubr.msk.f32.vlgmr.msra.gmra.mrb[8].mxu1 %vm899_vm0, %v5375_v20  ;;  %v2867_v1 = vpop.permute.xlu1 %2866 }
  0xaa   : > { %3595 = vmatprep.mubr.msk.f32.mxu1 %vm899_vm0, %v4315_v5 }
  0xac   : > { %v2869_v41 = vpop.permute.xlu0 %2868 }
  0xad   : > { %3596 = vmatmul.mubr.msk.f32.gmra.mrb[10].mxu1 %vm899_vm0, %v4386_v42 }
  0xae   : > { %3598 = vmatprep.mubr.msk.f32.mxu1 %vm899_vm0, %v4388_v43 }
  0xaf   : > { %v2871_v24 = vpop.permute.xlu1 %2870 }
  0xb1   : > { %3599 = vmatmul.mubr.msk.f32.gmra.mrb[12].mxu1 %vm899_vm0, %v4438_v23  ;;  %v2873_v49 = vpop.permute.xlu0 %2872 }
  0xb2   : > { %3601 = vmatprep.mubr.msk.f32.mxu1 %vm899_vm0, %v4458_v35 }
  0xb3   : > { %v2875_v37 = vpop.permute.xlu1 %2874 }
  0xb5   : > { %3602 = vmatmul.mubr.msk.f32.gmra.mrb[14].mxu1 %vm899_vm0, %v5358_v33  ;;  %v2877_v6 = vpop.permute.xlu0 %2876 }
  0xb7   : > { %v2879_v39 = vpop.permute.xlu1 %2878 }
  0xc6   : > { %v2883_v45 = vpop.permute.xlu1 %2882 }
  0xc7   : > { %v2881_v0 = vpop.permute.xlu0 %2880 }
  0xca   : > { %v2887_v59 = vpop.permute.xlu1 %2886 }
 0x15c   : > { %v3550_v13 = vpop.f32.mrb[0].mxu1 }
 0x15d   : > { %v1689_v42 = vpop.f32.mrb[1].mxu1 }
 0x15e   : > { %v3710_v5 = vpop.f32.mrb[0].mxu0 }
 0x15f   : > { %v2733_v40 = vpop.f32.mrb[1].mxu0  ;;  %v3808_v26 = vadd.f32 %v3710_v5, %v3550_v13 }
 0x160   : > { %v3809_v43 = vadd.f32 %v2733_v40, %v1689_v42  ;;  %v3553_v47 = vpop.f32.mrb[2].mxu1 }
 0x161   : > { %v2910_v23 = vsel %vm2908_vm2, %v3808_v26, %v2863_v4  ;;  %v1699_v56 = vpop.f32.mrb[3].mxu1 }
 0x162   : > { %v3713_v35 = vpop.f32.mrb[2].mxu0  ;;  %v2909_v25 = vsel %vm2908_vm2, %v3809_v43, %v2861_v28  ;;  %2927 = vst.msk [vmem:[%s5191_s10 + $0x8] sm:$0xff] %vm2925_vm5, %v2910_v23  ;;  %v2885_v28 = vpop.permute.xlu0 %2884 }
 0x163   : > { %v2743_v10 = vpop.f32.mrb[3].mxu0  ;;  %2926 = vst.msk [vmem:[%s5191_s10] sm:$0xff] %vm2925_vm5, %v2909_v25  ;;  %v3810_v53 = vadd.f32 %v3713_v35, %v3553_v47  ;;  %v2891_v43 = vpop.permute.xlu1 %2890 }
 0x164   : > { %v3811_v55 = vadd.f32 %v2743_v10, %v1699_v56  ;;  %v3556_v51 = vpop.f32.mrb[4].mxu1 }
 0x165   : > { %v2912_v34 = vsel %vm2908_vm2, %v3810_v53, %v2867_v1  ;;  %v1709_v18 = vpop.f32.mrb[5].mxu1 }
 0x166   : > { %v3716_v30 = vpop.f32.mrb[4].mxu0  ;;  %v2911_v52 = vsel %vm2908_vm2, %v3811_v55, %v2865_v27  ;;  %2929 = vst.msk [vmem:[%s5191_s10 + $0x18] sm:$0xff] %vm2925_vm5, %v2912_v34  ;;  %v2889_v47 = vpop.permute.xlu0 %2888 }
 0x167   : > { %v2753_v9 = vpop.f32.mrb[5].mxu0  ;;  %2928 = vst.msk [vmem:[%s5191_s10 + $0x10] sm:$0xff] %vm2925_vm5, %v2911_v52  ;;  %v3812_v36 = vadd.f32 %v3716_v30, %v3556_v51 }
 0x168   : > { %v3813_v33 = vadd.f32 %v2753_v9, %v1709_v18  ;;  %v3559_v21 = vpop.f32.mrb[6].mxu1 }
 0x169   : > { %v2914_v62 = vsel %vm2908_vm2, %v3812_v36, %v2871_v24  ;;  %v1719_v11 = vpop.f32.mrb[7].mxu1 }
 0x16a   : > { %v3719_v8 = vpop.f32.mrb[6].mxu0  ;;  %2931 = vst.msk [vmem:[%s5191_s10 + $0x28] sm:$0xff] %vm2925_vm5, %v2914_v62  ;;  %v2913_v50 = vsel %vm2908_vm2, %v3813_v33, %v2869_v41 }
 0x16b   : > { %v2763_v38 = vpop.f32.mrb[7].mxu0  ;;  %2930 = vst.msk [vmem:[%s5191_s10 + $0x20] sm:$0xff] %vm2925_vm5, %v2913_v50  ;;  %v3814_v46 = vadd.f32 %v3719_v8, %v3559_v21 }
 0x16c   : > { %v3815_v29 = vadd.f32 %v2763_v38, %v1719_v11 }
 0x16d   : > { %v2916_v17 = vsel %vm2908_vm2, %v3814_v46, %v2875_v37 }
 0x16e   : > { %v3722_v14 = vpop.f32.mrb[8].mxu0  ;;  %2933 = vst.msk [vmem:[%s5191_s10 + $0x38] sm:$0xff] %vm2925_vm5, %v2916_v17  ;;  %v2915_v63 = vsel %vm2908_vm2, %v3815_v29, %v2873_v49 }
 0x16f   : > { %v2773_v2 = vpop.f32.mrb[9].mxu0  ;;  %2932 = vst.msk [vmem:[%s5191_s10 + $0x30] sm:$0xff] %vm2925_vm5, %v2915_v63 }
 0x172   : > { %v3725_v44 = vpop.f32.mrb[10].mxu0 }
 0x173   : > { %v2783_v15 = vpop.f32.mrb[11].mxu0 }
 0x176   : > { %v3728_v19 = vpop.f32.mrb[12].mxu0 }
 0x177   : > { %v2793_v7 = vpop.f32.mrb[13].mxu0 }
 0x17a   : > { %v3731_v22 = vpop.f32.mrb[14].mxu0 }
 0x17b   : > { %v2803_v32 = vpop.f32.mrb[15].mxu0 }
 0x17c   : > { %v3594_v60 = vpop.f32.mrb[8].mxu1 }
 0x17d   : > { %v3816_v16 = vadd.f32 %v3722_v14, %v3594_v60  ;;  %v1901_v20 = vpop.f32.mrb[9].mxu1 }
 0x17e   : > { %v3817_v54 = vadd.f32 %v2773_v2, %v1901_v20 }
 0x17f   : > { %v2918_v58 = vsel %vm2908_vm2, %v3816_v16, %v2879_v39 }
 0x180   : > { %2935 = vst.msk [vmem:[%s5191_s10 + $0x48] sm:$0xff] %vm2925_vm5, %v2918_v58  ;;  %v2917_v57 = vsel %vm2908_vm2, %v3817_v54, %v2877_v6  ;;  %v3597_v12 = vpop.f32.mrb[10].mxu1 }
 0x181   : > { %2934 = vst.msk [vmem:[%s5191_s10 + $0x40] sm:$0xff] %vm2925_vm5, %v2917_v57  ;;  %v3818_v31 = vadd.f32 %v3725_v44, %v3597_v12  ;;  %v1911_v61 = vpop.f32.mrb[11].mxu1 }
 0x182   : > { %v3819_v48 = vadd.f32 %v2783_v15, %v1911_v61 }
 0x183   : > { %v2920_v3 = vsel %vm2908_vm2, %v3818_v31, %v2883_v45 }
 0x184   : > { %2937 = vst.msk [vmem:[%s5191_s10 + $0x58] sm:$0xff] %vm2925_vm5, %v2920_v3  ;;  %v2919_v27 = vsel %vm2908_vm2, %v3819_v48, %v2881_v0  ;;  %v3600_v4 = vpop.f32.mrb[12].mxu1 }
 0x185   : > { %2936 = vst.msk [vmem:[%s5191_s10 + $0x50] sm:$0xff] %vm2925_vm5, %v2919_v27  ;;  %v3820_v5 = vadd.f32 %v3728_v19, %v3600_v4  ;;  %v1921_v1 = vpop.f32.mrb[13].mxu1 }
 0x186   : > { %v3821_v13 = vadd.f32 %v2793_v7, %v1921_v1 }
 0x187   : > { %v2922_v40 = vsel %vm2908_vm2, %v3820_v5, %v2887_v59 }
 0x188   : > { %2939 = vst.msk [vmem:[%s5191_s10 + $0x68] sm:$0xff] %vm2925_vm5, %v2922_v40  ;;  %v2921_v42 = vsel %vm2908_vm2, %v3821_v13, %v2885_v28  ;;  %v3603_v26 = vpop.f32.mrb[14].mxu1 }
 0x189   : > { %2938 = vst.msk [vmem:[%s5191_s10 + $0x60] sm:$0xff] %vm2925_vm5, %v2921_v42  ;;  %v3822_v23 = vadd.f32 %v3731_v22, %v3603_v26  ;;  %v1931_v35 = vpop.f32.mrb[15].mxu1 }
 0x18a   : > { %v3823_v25 = vadd.f32 %v2803_v32, %v1931_v35 }
 0x18b   : > { %v2924_v10 = vsel %vm2908_vm2, %v3822_v23, %v2891_v43 }
 0x18c   : > { %2941 = vst.msk [vmem:[%s5191_s10 + $0x78] sm:$0xff] %vm2925_vm5, %v2924_v10  ;;  %v2923_v56 = vsel %vm2908_vm2, %v3823_v25, %v2889_v47 }
 0x18d   : > { %2940 = vst.msk [vmem:[%s5191_s10 + $0x70] sm:$0xff] %vm2925_vm5, %v2923_v56 }
 0x18e PF: > { %s17_s24 = sadd.s32 1, %s3952_s24  }
 0x18f   : > { %p14_p0 = scmp.ge.s32.totalorder %s17_s24, 6  }
 0x191   :  { %16 = sbr.rel (!%p14_p0) target bundleno = 1 (0x1), region = 95 }

</bundles_post_ra>
